<compile_context>
chip_gen: v6e
topology: v6e:2x2x1
jax: 0.10.0
libtpu: 0.0.40
codegen_flags: <defaults>
</compile_context>

<pallas_src>
import functools

import jax
import jax.numpy as jnp
from jax.experimental import pallas as pl
from jax.experimental.pallas import tpu as pltpu


_LANE = 128      # TPU vreg lane width (last-dim alignment)
_SUBLANE = 8     # TPU vreg sublane count for f32 (second-to-last-dim alignment)


def _round_up(n, m):
    return ((n + m - 1) // m) * m


def _fused_mlp_kernel(x_ref, w1_ref, b1_ref, w2_ref, b2_ref, o_ref):
    """Single invocation: runs all num_layers SimpleMLP blocks, VMEM/vreg resident.

    x_ref:  (Bp, 128)       padded input activation (VMEM)
    w1_ref: (L, 128, 128)   all padded fc1 weights (VMEM resident, f32 or bf16)
    b1_ref: (L, 1, 128)     all padded fc1 biases  (f32)
    w2_ref: (L, 128, 128)   all padded fc2 weights
    b2_ref: (L, 1, 128)     all padded fc2 biases
    o_ref:  (Bp, 128)       padded output (written once at the end)
    """
    num_layers = w1_ref.shape[0]
    mm_dtype = w1_ref.dtype          # f32 (exact) or bf16 (MXU-native on v6e/v7x)

    act = x_ref[...]                 # f32, stays in vregs across the whole chain
    for l in range(num_layers):      # statically unrolled; ~40 tiny 8x128x128 matmuls
        h = jnp.dot(act.astype(mm_dtype), w1_ref[l],
                    preferred_element_type=jnp.float32) + b1_ref[l]
        h = jnp.maximum(h, 0.0)
        act = jnp.dot(h.astype(mm_dtype), w2_ref[l],
                      preferred_element_type=jnp.float32) + b2_ref[l]

    o_ref[...] = act.astype(o_ref.dtype)


def _pad2(a, rows, cols):
    return jnp.pad(a, ((0, rows - a.shape[0]), (0, cols - a.shape[1])))


def pack_mlp_params(params, weight_dtype=jnp.float32):
    """Zero-pad every per-layer weight/bias to lane-aligned tiles and stack on a layer axis."""
    for (w1, b1, w2, b2) in params:
        in_dim, hid = w1.shape
        hid2, out_dim = w2.shape
        assert hid2 == hid, "fc1 output dim must equal fc2 input dim"
        assert b1.shape == (1, hid) and b2.shape == (1, out_dim), "bias shapes must be (1, dim)"
        assert max(in_dim, hid, out_dim) <= _LANE, (
            "feature dims must be <= 128 for the single-tile fused kernel")
    w1s = jnp.stack([_pad2(w1, _LANE, _LANE) for (w1, _, _, _) in params]).astype(weight_dtype)
    b1s = jnp.stack([_pad2(b1, 1, _LANE) for (_, b1, _, _) in params]).astype(jnp.float32)
    w2s = jnp.stack([_pad2(w2, _LANE, _LANE) for (_, _, w2, _) in params]).astype(weight_dtype)
    b2s = jnp.stack([_pad2(b2, 1, _LANE) for (_, _, _, b2) in params]).astype(jnp.float32)
    return w1s, b1s, w2s, b2s


@functools.partial(jax.jit, static_argnames=("matmul_dtype",))
def mlp_module_list_forward(x, params, matmul_dtype=jnp.float32):
    """Full MLPModuleList forward as a single fused Pallas kernel (one grid step)."""
    B, D_in = x.shape
    D_out = params[0][2].shape[1]

    Bp = max(_round_up(B, _SUBLANE), _SUBLANE)
    x_p = jnp.pad(x.astype(jnp.float32), ((0, Bp - B), (0, _LANE - D_in)))
    w1s, b1s, w2s, b2s = pack_mlp_params(params, weight_dtype=matmul_dtype)

    vmem_spec = pl.BlockSpec(memory_space=pltpu.MemorySpace.VMEM)
    out_p = pl.pallas_call(
        _fused_mlp_kernel,
        out_shape=jax.ShapeDtypeStruct((Bp, _LANE), jnp.float32),
        # No grid: single invocation, all operands whole-array resident in VMEM.
        in_specs=[vmem_spec] * 5,
        out_specs=vmem_spec,
    )(x_p, w1s, b1s, w2s, b2s)

    return out_p[:B, :D_out]


def init_mlp_module_list_params(key, input_dim, output_dim, num_layers=20):
    """Deterministic parameter init matching MLPModuleList's per-layer shapes."""
    params = []
    current_dim = input_dim
    for i in range(num_layers):
        hidden_dim = current_dim + i * 2
        k1, k2, k3, k4, key = jax.random.split(key, 5)
        # Uniform(-1/sqrt(fan_in), 1/sqrt(fan_in)), same family as torch.nn.Linear default.
        lim1 = 1.0 / jnp.sqrt(jnp.float32(current_dim))
        lim2 = 1.0 / jnp.sqrt(jnp.float32(hidden_dim))
        w1 = jax.random.uniform(k1, (current_dim, hidden_dim), jnp.float32, -lim1, lim1)
        b1 = jax.random.uniform(k2, (1, hidden_dim), jnp.float32, -lim1, lim1)
        w2 = jax.random.uniform(k3, (hidden_dim, output_dim), jnp.float32, -lim2, lim2)
        b2 = jax.random.uniform(k4, (1, output_dim), jnp.float32, -lim2, lim2)
        params.append((w1, b1, w2, b2))
        current_dim = output_dim
    return params


def _reference_forward(x, params, matmul_dtype=jnp.float32):
    """Pure-JAX reference (optionally with the same per-dot bf16 casting as the kernel)."""
    x = x.astype(jnp.float32)
    for (w1, b1, w2, b2) in params:
        h = jnp.dot(x.astype(matmul_dtype), w1.astype(matmul_dtype),
                    preferred_element_type=jnp.float32) + b1
        h = jnp.maximum(h, 0.0)
        x = jnp.dot(h.astype(matmul_dtype), w2.astype(matmul_dtype),
                    preferred_element_type=jnp.float32) + b2
    return x


if __name__ == "__main__":
    key = jax.random.PRNGKey(0)
    kx, kp = jax.random.split(key)

    batch = 2
    input_dim = 16
    output_dim = 32
    num_layers = 20

    x = jax.random.normal(kx, (batch, input_dim), dtype=jnp.float32)
    params = init_mlp_module_list_params(kp, input_dim, output_dim, num_layers)

    # Exact f32 path (default).
    out_f32 = jax.block_until_ready(mlp_module_list_forward(x, params))
    ref_f32 = _reference_forward(x, params)
    assert out_f32.shape == (batch, output_dim), out_f32.shape
    assert jnp.allclose(out_f32, ref_f32, atol=1e-4, rtol=1e-4), "f32 mismatch vs reference"

    # bf16-input / f32-accumulate MXU path (v6e/v7x friendly), checked against a reference
    # that applies the identical per-dot casts.
    out_bf16 = jax.block_until_ready(
        mlp_module_list_forward(x, params, matmul_dtype=jnp.bfloat16))
    ref_bf16 = _reference_forward(x, params, matmul_dtype=jnp.bfloat16)
    assert out_bf16.shape == (batch, output_dim), out_bf16.shape
    assert jnp.allclose(out_bf16, ref_bf16, atol=2e-2, rtol=2e-2), "bf16 mismatch vs reference"

    print("KERNEL_OK")
</pallas_src>

<mosaic_0001>
module attributes {stable_mosaic.version = 11 : i64} {
  func.func @_fused_mlp_kernel(%arg0: memref<8x128xf32, #tpu.memory_space<vmem>>, %arg1: memref<20x128x128xf32, #tpu.memory_space<vmem>>, %arg2: memref<20x1x128xf32, #tpu.memory_space<vmem>>, %arg3: memref<20x128x128xf32, #tpu.memory_space<vmem>>, %arg4: memref<20x1x128xf32, #tpu.memory_space<vmem>>, %arg5: memref<8x128xf32, #tpu.memory_space<vmem>>) attributes {dimension_semantics = [], scalar_prefetch = 0 : i64, scratch_operands = 0 : i64, tpu.core_type = #tpu.core_type<tc>} {
    %c0 = arith.constant 0 : index
    %c0_0 = arith.constant 0 : index
    %0 = vector.load %arg0[%c0, %c0_0] : memref<8x128xf32, #tpu.memory_space<vmem>>, vector<8x128xf32>
    %c0_1 = arith.constant 0 : index
    %c0_2 = arith.constant 0 : index
    %c0_3 = arith.constant 0 : index
    %1 = vector.load %arg1[%c0_1, %c0_2, %c0_3] : memref<20x128x128xf32, #tpu.memory_space<vmem>>, vector<1x128x128xf32>
    %2 = vector.shape_cast %1 : vector<1x128x128xf32> to vector<128x128xf32>
    %cst = arith.constant dense<0.000000e+00> : vector<8x128xf32>
    %3 = tpu.matmul %0, %2, %cst {dimension_numbers = #tpu.dot_dimension_numbers<[1], [0], [0], [1], [0, 0, 1, 1], [], []>} : vector<8x128xf32>, vector<128x128xf32>, vector<8x128xf32> -> vector<8x128xf32>
    %c0_4 = arith.constant 0 : index
    %c0_5 = arith.constant 0 : index
    %c0_6 = arith.constant 0 : index
    %4 = vector.load %arg2[%c0_4, %c0_5, %c0_6] : memref<20x1x128xf32, #tpu.memory_space<vmem>>, vector<1x1x128xf32>
    %5 = vector.shape_cast %4 : vector<1x1x128xf32> to vector<1x128xf32>
    %6 = vector.broadcast %5 : vector<1x128xf32> to vector<8x128xf32>
    %7 = arith.addf %3, %6 : vector<8x128xf32>
    %cst_7 = arith.constant 0.000000e+00 : f32
    %8 = vector.broadcast %cst_7 : f32 to vector<8x128xf32>
    %9 = arith.maximumf %7, %8 : vector<8x128xf32>
    %c0_8 = arith.constant 0 : index
    %c0_9 = arith.constant 0 : index
    %c0_10 = arith.constant 0 : index
    %10 = vector.load %arg3[%c0_8, %c0_9, %c0_10] : memref<20x128x128xf32, #tpu.memory_space<vmem>>, vector<1x128x128xf32>
    %11 = vector.shape_cast %10 : vector<1x128x128xf32> to vector<128x128xf32>
    %cst_11 = arith.constant dense<0.000000e+00> : vector<8x128xf32>
    %12 = tpu.matmul %9, %11, %cst_11 {dimension_numbers = #tpu.dot_dimension_numbers<[1], [0], [0], [1], [0, 0, 1, 1], [], []>} : vector<8x128xf32>, vector<128x128xf32>, vector<8x128xf32> -> vector<8x128xf32>
    %c0_12 = arith.constant 0 : index
    %c0_13 = arith.constant 0 : index
    %c0_14 = arith.constant 0 : index
    %13 = vector.load %arg4[%c0_12, %c0_13, %c0_14] : memref<20x1x128xf32, #tpu.memory_space<vmem>>, vector<1x1x128xf32>
    %14 = vector.shape_cast %13 : vector<1x1x128xf32> to vector<1x128xf32>
    %15 = vector.broadcast %14 : vector<1x128xf32> to vector<8x128xf32>
    %16 = arith.addf %12, %15 : vector<8x128xf32>
    %c1 = arith.constant 1 : index
    %c0_15 = arith.constant 0 : index
    %c0_16 = arith.constant 0 : index
    %17 = vector.load %arg1[%c1, %c0_15, %c0_16] : memref<20x128x128xf32, #tpu.memory_space<vmem>>, vector<1x128x128xf32>
    %18 = vector.shape_cast %17 : vector<1x128x128xf32> to vector<128x128xf32>
    %cst_17 = arith.constant dense<0.000000e+00> : vector<8x128xf32>
    %19 = tpu.matmul %16, %18, %cst_17 {dimension_numbers = #tpu.dot_dimension_numbers<[1], [0], [0], [1], [0, 0, 1, 1], [], []>} : vector<8x128xf32>, vector<128x128xf32>, vector<8x128xf32> -> vector<8x128xf32>
    %c1_18 = arith.constant 1 : index
    %c0_19 = arith.constant 0 : index
    %c0_20 = arith.constant 0 : index
    %20 = vector.load %arg2[%c1_18, %c0_19, %c0_20] : memref<20x1x128xf32, #tpu.memory_space<vmem>>, vector<1x1x128xf32>
    %21 = vector.shape_cast %20 : vector<1x1x128xf32> to vector<1x128xf32>
    %22 = vector.broadcast %21 : vector<1x128xf32> to vector<8x128xf32>
    %23 = arith.addf %19, %22 : vector<8x128xf32>
    %cst_21 = arith.constant 0.000000e+00 : f32
    %24 = vector.broadcast %cst_21 : f32 to vector<8x128xf32>
    %25 = arith.maximumf %23, %24 : vector<8x128xf32>
    %c1_22 = arith.constant 1 : index
    %c0_23 = arith.constant 0 : index
    %c0_24 = arith.constant 0 : index
    %26 = vector.load %arg3[%c1_22, %c0_23, %c0_24] : memref<20x128x128xf32, #tpu.memory_space<vmem>>, vector<1x128x128xf32>
    %27 = vector.shape_cast %26 : vector<1x128x128xf32> to vector<128x128xf32>
    %cst_25 = arith.constant dense<0.000000e+00> : vector<8x128xf32>
    %28 = tpu.matmul %25, %27, %cst_25 {dimension_numbers = #tpu.dot_dimension_numbers<[1], [0], [0], [1], [0, 0, 1, 1], [], []>} : vector<8x128xf32>, vector<128x128xf32>, vector<8x128xf32> -> vector<8x128xf32>
    %c1_26 = arith.constant 1 : index
    %c0_27 = arith.constant 0 : index
    %c0_28 = arith.constant 0 : index
    %29 = vector.load %arg4[%c1_26, %c0_27, %c0_28] : memref<20x1x128xf32, #tpu.memory_space<vmem>>, vector<1x1x128xf32>
    %30 = vector.shape_cast %29 : vector<1x1x128xf32> to vector<1x128xf32>
    %31 = vector.broadcast %30 : vector<1x128xf32> to vector<8x128xf32>
    %32 = arith.addf %28, %31 : vector<8x128xf32>
    %c2 = arith.constant 2 : index
    %c0_29 = arith.constant 0 : index
    %c0_30 = arith.constant 0 : index
    %33 = vector.load %arg1[%c2, %c0_29, %c0_30] : memref<20x128x128xf32, #tpu.memory_space<vmem>>, vector<1x128x128xf32>
    %34 = vector.shape_cast %33 : vector<1x128x128xf32> to vector<128x128xf32>
    %cst_31 = arith.constant dense<0.000000e+00> : vector<8x128xf32>
    %35 = tpu.matmul %32, %34, %cst_31 {dimension_numbers = #tpu.dot_dimension_numbers<[1], [0], [0], [1], [0, 0, 1, 1], [], []>} : vector<8x128xf32>, vector<128x128xf32>, vector<8x128xf32> -> vector<8x128xf32>
    %c2_32 = arith.constant 2 : index
    %c0_33 = arith.constant 0 : index
    %c0_34 = arith.constant 0 : index
    %36 = vector.load %arg2[%c2_32, %c0_33, %c0_34] : memref<20x1x128xf32, #tpu.memory_space<vmem>>, vector<1x1x128xf32>
    %37 = vector.shape_cast %36 : vector<1x1x128xf32> to vector<1x128xf32>
    %38 = vector.broadcast %37 : vector<1x128xf32> to vector<8x128xf32>
    %39 = arith.addf %35, %38 : vector<8x128xf32>
    %cst_35 = arith.constant 0.000000e+00 : f32
    %40 = vector.broadcast %cst_35 : f32 to vector<8x128xf32>
    %41 = arith.maximumf %39, %40 : vector<8x128xf32>
    %c2_36 = arith.constant 2 : index
    %c0_37 = arith.constant 0 : index
    %c0_38 = arith.constant 0 : index
    %42 = vector.load %arg3[%c2_36, %c0_37, %c0_38] : memref<20x128x128xf32, #tpu.memory_space<vmem>>, vector<1x128x128xf32>
    %43 = vector.shape_cast %42 : vector<1x128x128xf32> to vector<128x128xf32>
    %cst_39 = arith.constant dense<0.000000e+00> : vector<8x128xf32>
    %44 = tpu.matmul %41, %43, %cst_39 {dimension_numbers = #tpu.dot_dimension_numbers<[1], [0], [0], [1], [0, 0, 1, 1], [], []>} : vector<8x128xf32>, vector<128x128xf32>, vector<8x128xf32> -> vector<8x128xf32>
    %c2_40 = arith.constant 2 : index
    %c0_41 = arith.constant 0 : index
    %c0_42 = arith.constant 0 : index
    %45 = vector.load %arg4[%c2_40, %c0_41, %c0_42] : memref<20x1x128xf32, #tpu.memory_space<vmem>>, vector<1x1x128xf32>
    %46 = vector.shape_cast %45 : vector<1x1x128xf32> to vector<1x128xf32>
    %47 = vector.broadcast %46 : vector<1x128xf32> to vector<8x128xf32>
    %48 = arith.addf %44, %47 : vector<8x128xf32>
    %c3 = arith.constant 3 : index
    %c0_43 = arith.constant 0 : index
    %c0_44 = arith.constant 0 : index
    %49 = vector.load %arg1[%c3, %c0_43, %c0_44] : memref<20x128x128xf32, #tpu.memory_space<vmem>>, vector<1x128x128xf32>
    %50 = vector.shape_cast %49 : vector<1x128x128xf32> to vector<128x128xf32>
    %cst_45 = arith.constant dense<0.000000e+00> : vector<8x128xf32>
    %51 = tpu.matmul %48, %50, %cst_45 {dimension_numbers = #tpu.dot_dimension_numbers<[1], [0], [0], [1], [0, 0, 1, 1], [], []>} : vector<8x128xf32>, vector<128x128xf32>, vector<8x128xf32> -> vector<8x128xf32>
    %c3_46 = arith.constant 3 : index
    %c0_47 = arith.constant 0 : index
    %c0_48 = arith.constant 0 : index
    %52 = vector.load %arg2[%c3_46, %c0_47, %c0_48] : memref<20x1x128xf32, #tpu.memory_space<vmem>>, vector<1x1x128xf32>
    %53 = vector.shape_cast %52 : vector<1x1x128xf32> to vector<1x128xf32>
    %54 = vector.broadcast %53 : vector<1x128xf32> to vector<8x128xf32>
    %55 = arith.addf %51, %54 : vector<8x128xf32>
    %cst_49 = arith.constant 0.000000e+00 : f32
    %56 = vector.broadcast %cst_49 : f32 to vector<8x128xf32>
    %57 = arith.maximumf %55, %56 : vector<8x128xf32>
    %c3_50 = arith.constant 3 : index
    %c0_51 = arith.constant 0 : index
    %c0_52 = arith.constant 0 : index
    %58 = vector.load %arg3[%c3_50, %c0_51, %c0_52] : memref<20x128x128xf32, #tpu.memory_space<vmem>>, vector<1x128x128xf32>
    %59 = vector.shape_cast %58 : vector<1x128x128xf32> to vector<128x128xf32>
    %cst_53 = arith.constant dense<0.000000e+00> : vector<8x128xf32>
    %60 = tpu.matmul %57, %59, %cst_53 {dimension_numbers = #tpu.dot_dimension_numbers<[1], [0], [0], [1], [0, 0, 1, 1], [], []>} : vector<8x128xf32>, vector<128x128xf32>, vector<8x128xf32> -> vector<8x128xf32>
    %c3_54 = arith.constant 3 : index
    %c0_55 = arith.constant 0 : index
    %c0_56 = arith.constant 0 : index
    %61 = vector.load %arg4[%c3_54, %c0_55, %c0_56] : memref<20x1x128xf32, #tpu.memory_space<vmem>>, vector<1x1x128xf32>
    %62 = vector.shape_cast %61 : vector<1x1x128xf32> to vector<1x128xf32>
    %63 = vector.broadcast %62 : vector<1x128xf32> to vector<8x128xf32>
    %64 = arith.addf %60, %63 : vector<8x128xf32>
    %c4 = arith.constant 4 : index
    %c0_57 = arith.constant 0 : index
    %c0_58 = arith.constant 0 : index
    %65 = vector.load %arg1[%c4, %c0_57, %c0_58] : memref<20x128x128xf32, #tpu.memory_space<vmem>>, vector<1x128x128xf32>
    %66 = vector.shape_cast %65 : vector<1x128x128xf32> to vector<128x128xf32>
    %cst_59 = arith.constant dense<0.000000e+00> : vector<8x128xf32>
    %67 = tpu.matmul %64, %66, %cst_59 {dimension_numbers = #tpu.dot_dimension_numbers<[1], [0], [0], [1], [0, 0, 1, 1], [], []>} : vector<8x128xf32>, vector<128x128xf32>, vector<8x128xf32> -> vector<8x128xf32>
    %c4_60 = arith.constant 4 : index
    %c0_61 = arith.constant 0 : index
    %c0_62 = arith.constant 0 : index
    %68 = vector.load %arg2[%c4_60, %c0_61, %c0_62] : memref<20x1x128xf32, #tpu.memory_space<vmem>>, vector<1x1x128xf32>
    %69 = vector.shape_cast %68 : vector<1x1x128xf32> to vector<1x128xf32>
    %70 = vector.broadcast %69 : vector<1x128xf32> to vector<8x128xf32>
    %71 = arith.addf %67, %70 : vector<8x128xf32>
    %cst_63 = arith.constant 0.000000e+00 : f32
    %72 = vector.broadcast %cst_63 : f32 to vector<8x128xf32>
    %73 = arith.maximumf %71, %72 : vector<8x128xf32>
    %c4_64 = arith.constant 4 : index
    %c0_65 = arith.constant 0 : index
    %c0_66 = arith.constant 0 : index
    %74 = vector.load %arg3[%c4_64, %c0_65, %c0_66] : memref<20x128x128xf32, #tpu.memory_space<vmem>>, vector<1x128x128xf32>
    %75 = vector.shape_cast %74 : vector<1x128x128xf32> to vector<128x128xf32>
    %cst_67 = arith.constant dense<0.000000e+00> : vector<8x128xf32>
    %76 = tpu.matmul %73, %75, %cst_67 {dimension_numbers = #tpu.dot_dimension_numbers<[1], [0], [0], [1], [0, 0, 1, 1], [], []>} : vector<8x128xf32>, vector<128x128xf32>, vector<8x128xf32> -> vector<8x128xf32>
    %c4_68 = arith.constant 4 : index
    %c0_69 = arith.constant 0 : index
    %c0_70 = arith.constant 0 : index
    %77 = vector.load %arg4[%c4_68, %c0_69, %c0_70] : memref<20x1x128xf32, #tpu.memory_space<vmem>>, vector<1x1x128xf32>
    %78 = vector.shape_cast %77 : vector<1x1x128xf32> to vector<1x128xf32>
    %79 = vector.broadcast %78 : vector<1x128xf32> to vector<8x128xf32>
    %80 = arith.addf %76, %79 : vector<8x128xf32>
    %c5 = arith.constant 5 : index
    %c0_71 = arith.constant 0 : index
    %c0_72 = arith.constant 0 : index
    %81 = vector.load %arg1[%c5, %c0_71, %c0_72] : memref<20x128x128xf32, #tpu.memory_space<vmem>>, vector<1x128x128xf32>
    %82 = vector.shape_cast %81 : vector<1x128x128xf32> to vector<128x128xf32>
    %cst_73 = arith.constant dense<0.000000e+00> : vector<8x128xf32>
    %83 = tpu.matmul %80, %82, %cst_73 {dimension_numbers = #tpu.dot_dimension_numbers<[1], [0], [0], [1], [0, 0, 1, 1], [], []>} : vector<8x128xf32>, vector<128x128xf32>, vector<8x128xf32> -> vector<8x128xf32>
    %c5_74 = arith.constant 5 : index
    %c0_75 = arith.constant 0 : index
    %c0_76 = arith.constant 0 : index
    %84 = vector.load %arg2[%c5_74, %c0_75, %c0_76] : memref<20x1x128xf32, #tpu.memory_space<vmem>>, vector<1x1x128xf32>
    %85 = vector.shape_cast %84 : vector<1x1x128xf32> to vector<1x128xf32>
    %86 = vector.broadcast %85 : vector<1x128xf32> to vector<8x128xf32>
    %87 = arith.addf %83, %86 : vector<8x128xf32>
    %cst_77 = arith.constant 0.000000e+00 : f32
    %88 = vector.broadcast %cst_77 : f32 to vector<8x128xf32>
    %89 = arith.maximumf %87, %88 : vector<8x128xf32>
    %c5_78 = arith.constant 5 : index
    %c0_79 = arith.constant 0 : index
    %c0_80 = arith.constant 0 : index
    %90 = vector.load %arg3[%c5_78, %c0_79, %c0_80] : memref<20x128x128xf32, #tpu.memory_space<vmem>>, vector<1x128x128xf32>
    %91 = vector.shape_cast %90 : vector<1x128x128xf32> to vector<128x128xf32>
    %cst_81 = arith.constant dense<0.000000e+00> : vector<8x128xf32>
    %92 = tpu.matmul %89, %91, %cst_81 {dimension_numbers = #tpu.dot_dimension_numbers<[1], [0], [0], [1], [0, 0, 1, 1], [], []>} : vector<8x128xf32>, vector<128x128xf32>, vector<8x128xf32> -> vector<8x128xf32>
    %c5_82 = arith.constant 5 : index
    %c0_83 = arith.constant 0 : index
    %c0_84 = arith.constant 0 : index
    %93 = vector.load %arg4[%c5_82, %c0_83, %c0_84] : memref<20x1x128xf32, #tpu.memory_space<vmem>>, vector<1x1x128xf32>
    %94 = vector.shape_cast %93 : vector<1x1x128xf32> to vector<1x128xf32>
    %95 = vector.broadcast %94 : vector<1x128xf32> to vector<8x128xf32>
    %96 = arith.addf %92, %95 : vector<8x128xf32>
    %c6 = arith.constant 6 : index
    %c0_85 = arith.constant 0 : index
    %c0_86 = arith.constant 0 : index
    %97 = vector.load %arg1[%c6, %c0_85, %c0_86] : memref<20x128x128xf32, #tpu.memory_space<vmem>>, vector<1x128x128xf32>
    %98 = vector.shape_cast %97 : vector<1x128x128xf32> to vector<128x128xf32>
    %cst_87 = arith.constant dense<0.000000e+00> : vector<8x128xf32>
    %99 = tpu.matmul %96, %98, %cst_87 {dimension_numbers = #tpu.dot_dimension_numbers<[1], [0], [0], [1], [0, 0, 1, 1], [], []>} : vector<8x128xf32>, vector<128x128xf32>, vector<8x128xf32> -> vector<8x128xf32>
    %c6_88 = arith.constant 6 : index
    %c0_89 = arith.constant 0 : index
    %c0_90 = arith.constant 0 : index
    %100 = vector.load %arg2[%c6_88, %c0_89, %c0_90] : memref<20x1x128xf32, #tpu.memory_space<vmem>>, vector<1x1x128xf32>
    %101 = vector.shape_cast %100 : vector<1x1x128xf32> to vector<1x128xf32>
    %102 = vector.broadcast %101 : vector<1x128xf32> to vector<8x128xf32>
    %103 = arith.addf %99, %102 : vector<8x128xf32>
    %cst_91 = arith.constant 0.000000e+00 : f32
    %104 = vector.broadcast %cst_91 : f32 to vector<8x128xf32>
    %105 = arith.maximumf %103, %104 : vector<8x128xf32>
    %c6_92 = arith.constant 6 : index
    %c0_93 = arith.constant 0 : index
    %c0_94 = arith.constant 0 : index
    %106 = vector.load %arg3[%c6_92, %c0_93, %c0_94] : memref<20x128x128xf32, #tpu.memory_space<vmem>>, vector<1x128x128xf32>
    %107 = vector.shape_cast %106 : vector<1x128x128xf32> to vector<128x128xf32>
    %cst_95 = arith.constant dense<0.000000e+00> : vector<8x128xf32>
    %108 = tpu.matmul %105, %107, %cst_95 {dimension_numbers = #tpu.dot_dimension_numbers<[1], [0], [0], [1], [0, 0, 1, 1], [], []>} : vector<8x128xf32>, vector<128x128xf32>, vector<8x128xf32> -> vector<8x128xf32>
    %c6_96 = arith.constant 6 : index
    %c0_97 = arith.constant 0 : index
    %c0_98 = arith.constant 0 : index
    %109 = vector.load %arg4[%c6_96, %c0_97, %c0_98] : memref<20x1x128xf32, #tpu.memory_space<vmem>>, vector<1x1x128xf32>
    %110 = vector.shape_cast %109 : vector<1x1x128xf32> to vector<1x128xf32>
    %111 = vector.broadcast %110 : vector<1x128xf32> to vector<8x128xf32>
    %112 = arith.addf %108, %111 : vector<8x128xf32>
    %c7 = arith.constant 7 : index
    %c0_99 = arith.constant 0 : index
    %c0_100 = arith.constant 0 : index
    %113 = vector.load %arg1[%c7, %c0_99, %c0_100] : memref<20x128x128xf32, #tpu.memory_space<vmem>>, vector<1x128x128xf32>
    %114 = vector.shape_cast %113 : vector<1x128x128xf32> to vector<128x128xf32>
    %cst_101 = arith.constant dense<0.000000e+00> : vector<8x128xf32>
    %115 = tpu.matmul %112, %114, %cst_101 {dimension_numbers = #tpu.dot_dimension_numbers<[1], [0], [0], [1], [0, 0, 1, 1], [], []>} : vector<8x128xf32>, vector<128x128xf32>, vector<8x128xf32> -> vector<8x128xf32>
    %c7_102 = arith.constant 7 : index
    %c0_103 = arith.constant 0 : index
    %c0_104 = arith.constant 0 : index
    %116 = vector.load %arg2[%c7_102, %c0_103, %c0_104] : memref<20x1x128xf32, #tpu.memory_space<vmem>>, vector<1x1x128xf32>
    %117 = vector.shape_cast %116 : vector<1x1x128xf32> to vector<1x128xf32>
    %118 = vector.broadcast %117 : vector<1x128xf32> to vector<8x128xf32>
    %119 = arith.addf %115, %118 : vector<8x128xf32>
    %cst_105 = arith.constant 0.000000e+00 : f32
    %120 = vector.broadcast %cst_105 : f32 to vector<8x128xf32>
    %121 = arith.maximumf %119, %120 : vector<8x128xf32>
    %c7_106 = arith.constant 7 : index
    %c0_107 = arith.constant 0 : index
    %c0_108 = arith.constant 0 : index
    %122 = vector.load %arg3[%c7_106, %c0_107, %c0_108] : memref<20x128x128xf32, #tpu.memory_space<vmem>>, vector<1x128x128xf32>
    %123 = vector.shape_cast %122 : vector<1x128x128xf32> to vector<128x128xf32>
    %cst_109 = arith.constant dense<0.000000e+00> : vector<8x128xf32>
    %124 = tpu.matmul %121, %123, %cst_109 {dimension_numbers = #tpu.dot_dimension_numbers<[1], [0], [0], [1], [0, 0, 1, 1], [], []>} : vector<8x128xf32>, vector<128x128xf32>, vector<8x128xf32> -> vector<8x128xf32>
    %c7_110 = arith.constant 7 : index
    %c0_111 = arith.constant 0 : index
    %c0_112 = arith.constant 0 : index
    %125 = vector.load %arg4[%c7_110, %c0_111, %c0_112] : memref<20x1x128xf32, #tpu.memory_space<vmem>>, vector<1x1x128xf32>
    %126 = vector.shape_cast %125 : vector<1x1x128xf32> to vector<1x128xf32>
    %127 = vector.broadcast %126 : vector<1x128xf32> to vector<8x128xf32>
    %128 = arith.addf %124, %127 : vector<8x128xf32>
    %c8 = arith.constant 8 : index
    %c0_113 = arith.constant 0 : index
    %c0_114 = arith.constant 0 : index
    %129 = vector.load %arg1[%c8, %c0_113, %c0_114] : memref<20x128x128xf32, #tpu.memory_space<vmem>>, vector<1x128x128xf32>
    %130 = vector.shape_cast %129 : vector<1x128x128xf32> to vector<128x128xf32>
    %cst_115 = arith.constant dense<0.000000e+00> : vector<8x128xf32>
    %131 = tpu.matmul %128, %130, %cst_115 {dimension_numbers = #tpu.dot_dimension_numbers<[1], [0], [0], [1], [0, 0, 1, 1], [], []>} : vector<8x128xf32>, vector<128x128xf32>, vector<8x128xf32> -> vector<8x128xf32>
    %c8_116 = arith.constant 8 : index
    %c0_117 = arith.constant 0 : index
    %c0_118 = arith.constant 0 : index
    %132 = vector.load %arg2[%c8_116, %c0_117, %c0_118] : memref<20x1x128xf32, #tpu.memory_space<vmem>>, vector<1x1x128xf32>
    %133 = vector.shape_cast %132 : vector<1x1x128xf32> to vector<1x128xf32>
    %134 = vector.broadcast %133 : vector<1x128xf32> to vector<8x128xf32>
    %135 = arith.addf %131, %134 : vector<8x128xf32>
    %cst_119 = arith.constant 0.000000e+00 : f32
    %136 = vector.broadcast %cst_119 : f32 to vector<8x128xf32>
    %137 = arith.maximumf %135, %136 : vector<8x128xf32>
    %c8_120 = arith.constant 8 : index
    %c0_121 = arith.constant 0 : index
    %c0_122 = arith.constant 0 : index
    %138 = vector.load %arg3[%c8_120, %c0_121, %c0_122] : memref<20x128x128xf32, #tpu.memory_space<vmem>>, vector<1x128x128xf32>
    %139 = vector.shape_cast %138 : vector<1x128x128xf32> to vector<128x128xf32>
    %cst_123 = arith.constant dense<0.000000e+00> : vector<8x128xf32>
    %140 = tpu.matmul %137, %139, %cst_123 {dimension_numbers = #tpu.dot_dimension_numbers<[1], [0], [0], [1], [0, 0, 1, 1], [], []>} : vector<8x128xf32>, vector<128x128xf32>, vector<8x128xf32> -> vector<8x128xf32>
    %c8_124 = arith.constant 8 : index
    %c0_125 = arith.constant 0 : index
    %c0_126 = arith.constant 0 : index
    %141 = vector.load %arg4[%c8_124, %c0_125, %c0_126] : memref<20x1x128xf32, #tpu.memory_space<vmem>>, vector<1x1x128xf32>
    %142 = vector.shape_cast %141 : vector<1x1x128xf32> to vector<1x128xf32>
    %143 = vector.broadcast %142 : vector<1x128xf32> to vector<8x128xf32>
    %144 = arith.addf %140, %143 : vector<8x128xf32>
    %c9 = arith.constant 9 : index
    %c0_127 = arith.constant 0 : index
    %c0_128 = arith.constant 0 : index
    %145 = vector.load %arg1[%c9, %c0_127, %c0_128] : memref<20x128x128xf32, #tpu.memory_space<vmem>>, vector<1x128x128xf32>
    %146 = vector.shape_cast %145 : vector<1x128x128xf32> to vector<128x128xf32>
    %cst_129 = arith.constant dense<0.000000e+00> : vector<8x128xf32>
    %147 = tpu.matmul %144, %146, %cst_129 {dimension_numbers = #tpu.dot_dimension_numbers<[1], [0], [0], [1], [0, 0, 1, 1], [], []>} : vector<8x128xf32>, vector<128x128xf32>, vector<8x128xf32> -> vector<8x128xf32>
    %c9_130 = arith.constant 9 : index
    %c0_131 = arith.constant 0 : index
    %c0_132 = arith.constant 0 : index
    %148 = vector.load %arg2[%c9_130, %c0_131, %c0_132] : memref<20x1x128xf32, #tpu.memory_space<vmem>>, vector<1x1x128xf32>
    %149 = vector.shape_cast %148 : vector<1x1x128xf32> to vector<1x128xf32>
    %150 = vector.broadcast %149 : vector<1x128xf32> to vector<8x128xf32>
    %151 = arith.addf %147, %150 : vector<8x128xf32>
    %cst_133 = arith.constant 0.000000e+00 : f32
    %152 = vector.broadcast %cst_133 : f32 to vector<8x128xf32>
    %153 = arith.maximumf %151, %152 : vector<8x128xf32>
    %c9_134 = arith.constant 9 : index
    %c0_135 = arith.constant 0 : index
    %c0_136 = arith.constant 0 : index
    %154 = vector.load %arg3[%c9_134, %c0_135, %c0_136] : memref<20x128x128xf32, #tpu.memory_space<vmem>>, vector<1x128x128xf32>
    %155 = vector.shape_cast %154 : vector<1x128x128xf32> to vector<128x128xf32>
    %cst_137 = arith.constant dense<0.000000e+00> : vector<8x128xf32>
    %156 = tpu.matmul %153, %155, %cst_137 {dimension_numbers = #tpu.dot_dimension_numbers<[1], [0], [0], [1], [0, 0, 1, 1], [], []>} : vector<8x128xf32>, vector<128x128xf32>, vector<8x128xf32> -> vector<8x128xf32>
    %c9_138 = arith.constant 9 : index
    %c0_139 = arith.constant 0 : index
    %c0_140 = arith.constant 0 : index
    %157 = vector.load %arg4[%c9_138, %c0_139, %c0_140] : memref<20x1x128xf32, #tpu.memory_space<vmem>>, vector<1x1x128xf32>
    %158 = vector.shape_cast %157 : vector<1x1x128xf32> to vector<1x128xf32>
    %159 = vector.broadcast %158 : vector<1x128xf32> to vector<8x128xf32>
    %160 = arith.addf %156, %159 : vector<8x128xf32>
    %c10 = arith.constant 10 : index
    %c0_141 = arith.constant 0 : index
    %c0_142 = arith.constant 0 : index
    %161 = vector.load %arg1[%c10, %c0_141, %c0_142] : memref<20x128x128xf32, #tpu.memory_space<vmem>>, vector<1x128x128xf32>
    %162 = vector.shape_cast %161 : vector<1x128x128xf32> to vector<128x128xf32>
    %cst_143 = arith.constant dense<0.000000e+00> : vector<8x128xf32>
    %163 = tpu.matmul %160, %162, %cst_143 {dimension_numbers = #tpu.dot_dimension_numbers<[1], [0], [0], [1], [0, 0, 1, 1], [], []>} : vector<8x128xf32>, vector<128x128xf32>, vector<8x128xf32> -> vector<8x128xf32>
    %c10_144 = arith.constant 10 : index
    %c0_145 = arith.constant 0 : index
    %c0_146 = arith.constant 0 : index
    %164 = vector.load %arg2[%c10_144, %c0_145, %c0_146] : memref<20x1x128xf32, #tpu.memory_space<vmem>>, vector<1x1x128xf32>
    %165 = vector.shape_cast %164 : vector<1x1x128xf32> to vector<1x128xf32>
    %166 = vector.broadcast %165 : vector<1x128xf32> to vector<8x128xf32>
    %167 = arith.addf %163, %166 : vector<8x128xf32>
    %cst_147 = arith.constant 0.000000e+00 : f32
    %168 = vector.broadcast %cst_147 : f32 to vector<8x128xf32>
    %169 = arith.maximumf %167, %168 : vector<8x128xf32>
    %c10_148 = arith.constant 10 : index
    %c0_149 = arith.constant 0 : index
    %c0_150 = arith.constant 0 : index
    %170 = vector.load %arg3[%c10_148, %c0_149, %c0_150] : memref<20x128x128xf32, #tpu.memory_space<vmem>>, vector<1x128x128xf32>
    %171 = vector.shape_cast %170 : vector<1x128x128xf32> to vector<128x128xf32>
    %cst_151 = arith.constant dense<0.000000e+00> : vector<8x128xf32>
    %172 = tpu.matmul %169, %171, %cst_151 {dimension_numbers = #tpu.dot_dimension_numbers<[1], [0], [0], [1], [0, 0, 1, 1], [], []>} : vector<8x128xf32>, vector<128x128xf32>, vector<8x128xf32> -> vector<8x128xf32>
    %c10_152 = arith.constant 10 : index
    %c0_153 = arith.constant 0 : index
    %c0_154 = arith.constant 0 : index
    %173 = vector.load %arg4[%c10_152, %c0_153, %c0_154] : memref<20x1x128xf32, #tpu.memory_space<vmem>>, vector<1x1x128xf32>
    %174 = vector.shape_cast %173 : vector<1x1x128xf32> to vector<1x128xf32>
    %175 = vector.broadcast %174 : vector<1x128xf32> to vector<8x128xf32>
    %176 = arith.addf %172, %175 : vector<8x128xf32>
    %c11 = arith.constant 11 : index
    %c0_155 = arith.constant 0 : index
    %c0_156 = arith.constant 0 : index
    %177 = vector.load %arg1[%c11, %c0_155, %c0_156] : memref<20x128x128xf32, #tpu.memory_space<vmem>>, vector<1x128x128xf32>
    %178 = vector.shape_cast %177 : vector<1x128x128xf32> to vector<128x128xf32>
    %cst_157 = arith.constant dense<0.000000e+00> : vector<8x128xf32>
    %179 = tpu.matmul %176, %178, %cst_157 {dimension_numbers = #tpu.dot_dimension_numbers<[1], [0], [0], [1], [0, 0, 1, 1], [], []>} : vector<8x128xf32>, vector<128x128xf32>, vector<8x128xf32> -> vector<8x128xf32>
    %c11_158 = arith.constant 11 : index
    %c0_159 = arith.constant 0 : index
    %c0_160 = arith.constant 0 : index
    %180 = vector.load %arg2[%c11_158, %c0_159, %c0_160] : memref<20x1x128xf32, #tpu.memory_space<vmem>>, vector<1x1x128xf32>
    %181 = vector.shape_cast %180 : vector<1x1x128xf32> to vector<1x128xf32>
    %182 = vector.broadcast %181 : vector<1x128xf32> to vector<8x128xf32>
    %183 = arith.addf %179, %182 : vector<8x128xf32>
    %cst_161 = arith.constant 0.000000e+00 : f32
    %184 = vector.broadcast %cst_161 : f32 to vector<8x128xf32>
    %185 = arith.maximumf %183, %184 : vector<8x128xf32>
    %c11_162 = arith.constant 11 : index
    %c0_163 = arith.constant 0 : index
    %c0_164 = arith.constant 0 : index
    %186 = vector.load %arg3[%c11_162, %c0_163, %c0_164] : memref<20x128x128xf32, #tpu.memory_space<vmem>>, vector<1x128x128xf32>
    %187 = vector.shape_cast %186 : vector<1x128x128xf32> to vector<128x128xf32>
    %cst_165 = arith.constant dense<0.000000e+00> : vector<8x128xf32>
    %188 = tpu.matmul %185, %187, %cst_165 {dimension_numbers = #tpu.dot_dimension_numbers<[1], [0], [0], [1], [0, 0, 1, 1], [], []>} : vector<8x128xf32>, vector<128x128xf32>, vector<8x128xf32> -> vector<8x128xf32>
    %c11_166 = arith.constant 11 : index
    %c0_167 = arith.constant 0 : index
    %c0_168 = arith.constant 0 : index
    %189 = vector.load %arg4[%c11_166, %c0_167, %c0_168] : memref<20x1x128xf32, #tpu.memory_space<vmem>>, vector<1x1x128xf32>
    %190 = vector.shape_cast %189 : vector<1x1x128xf32> to vector<1x128xf32>
    %191 = vector.broadcast %190 : vector<1x128xf32> to vector<8x128xf32>
    %192 = arith.addf %188, %191 : vector<8x128xf32>
    %c12 = arith.constant 12 : index
    %c0_169 = arith.constant 0 : index
    %c0_170 = arith.constant 0 : index
    %193 = vector.load %arg1[%c12, %c0_169, %c0_170] : memref<20x128x128xf32, #tpu.memory_space<vmem>>, vector<1x128x128xf32>
    %194 = vector.shape_cast %193 : vector<1x128x128xf32> to vector<128x128xf32>
    %cst_171 = arith.constant dense<0.000000e+00> : vector<8x128xf32>
    %195 = tpu.matmul %192, %194, %cst_171 {dimension_numbers = #tpu.dot_dimension_numbers<[1], [0], [0], [1], [0, 0, 1, 1], [], []>} : vector<8x128xf32>, vector<128x128xf32>, vector<8x128xf32> -> vector<8x128xf32>
    %c12_172 = arith.constant 12 : index
    %c0_173 = arith.constant 0 : index
    %c0_174 = arith.constant 0 : index
    %196 = vector.load %arg2[%c12_172, %c0_173, %c0_174] : memref<20x1x128xf32, #tpu.memory_space<vmem>>, vector<1x1x128xf32>
    %197 = vector.shape_cast %196 : vector<1x1x128xf32> to vector<1x128xf32>
    %198 = vector.broadcast %197 : vector<1x128xf32> to vector<8x128xf32>
    %199 = arith.addf %195, %198 : vector<8x128xf32>
    %cst_175 = arith.constant 0.000000e+00 : f32
    %200 = vector.broadcast %cst_175 : f32 to vector<8x128xf32>
    %201 = arith.maximumf %199, %200 : vector<8x128xf32>
    %c12_176 = arith.constant 12 : index
    %c0_177 = arith.constant 0 : index
    %c0_178 = arith.constant 0 : index
    %202 = vector.load %arg3[%c12_176, %c0_177, %c0_178] : memref<20x128x128xf32, #tpu.memory_space<vmem>>, vector<1x128x128xf32>
    %203 = vector.shape_cast %202 : vector<1x128x128xf32> to vector<128x128xf32>
    %cst_179 = arith.constant dense<0.000000e+00> : vector<8x128xf32>
    %204 = tpu.matmul %201, %203, %cst_179 {dimension_numbers = #tpu.dot_dimension_numbers<[1], [0], [0], [1], [0, 0, 1, 1], [], []>} : vector<8x128xf32>, vector<128x128xf32>, vector<8x128xf32> -> vector<8x128xf32>
    %c12_180 = arith.constant 12 : index
    %c0_181 = arith.constant 0 : index
    %c0_182 = arith.constant 0 : index
    %205 = vector.load %arg4[%c12_180, %c0_181, %c0_182] : memref<20x1x128xf32, #tpu.memory_space<vmem>>, vector<1x1x128xf32>
    %206 = vector.shape_cast %205 : vector<1x1x128xf32> to vector<1x128xf32>
    %207 = vector.broadcast %206 : vector<1x128xf32> to vector<8x128xf32>
    %208 = arith.addf %204, %207 : vector<8x128xf32>
    %c13 = arith.constant 13 : index
    %c0_183 = arith.constant 0 : index
    %c0_184 = arith.constant 0 : index
    %209 = vector.load %arg1[%c13, %c0_183, %c0_184] : memref<20x128x128xf32, #tpu.memory_space<vmem>>, vector<1x128x128xf32>
    %210 = vector.shape_cast %209 : vector<1x128x128xf32> to vector<128x128xf32>
    %cst_185 = arith.constant dense<0.000000e+00> : vector<8x128xf32>
    %211 = tpu.matmul %208, %210, %cst_185 {dimension_numbers = #tpu.dot_dimension_numbers<[1], [0], [0], [1], [0, 0, 1, 1], [], []>} : vector<8x128xf32>, vector<128x128xf32>, vector<8x128xf32> -> vector<8x128xf32>
    %c13_186 = arith.constant 13 : index
    %c0_187 = arith.constant 0 : index
    %c0_188 = arith.constant 0 : index
    %212 = vector.load %arg2[%c13_186, %c0_187, %c0_188] : memref<20x1x128xf32, #tpu.memory_space<vmem>>, vector<1x1x128xf32>
    %213 = vector.shape_cast %212 : vector<1x1x128xf32> to vector<1x128xf32>
    %214 = vector.broadcast %213 : vector<1x128xf32> to vector<8x128xf32>
    %215 = arith.addf %211, %214 : vector<8x128xf32>
    %cst_189 = arith.constant 0.000000e+00 : f32
    %216 = vector.broadcast %cst_189 : f32 to vector<8x128xf32>
    %217 = arith.maximumf %215, %216 : vector<8x128xf32>
    %c13_190 = arith.constant 13 : index
    %c0_191 = arith.constant 0 : index
    %c0_192 = arith.constant 0 : index
    %218 = vector.load %arg3[%c13_190, %c0_191, %c0_192] : memref<20x128x128xf32, #tpu.memory_space<vmem>>, vector<1x128x128xf32>
    %219 = vector.shape_cast %218 : vector<1x128x128xf32> to vector<128x128xf32>
    %cst_193 = arith.constant dense<0.000000e+00> : vector<8x128xf32>
    %220 = tpu.matmul %217, %219, %cst_193 {dimension_numbers = #tpu.dot_dimension_numbers<[1], [0], [0], [1], [0, 0, 1, 1], [], []>} : vector<8x128xf32>, vector<128x128xf32>, vector<8x128xf32> -> vector<8x128xf32>
    %c13_194 = arith.constant 13 : index
    %c0_195 = arith.constant 0 : index
    %c0_196 = arith.constant 0 : index
    %221 = vector.load %arg4[%c13_194, %c0_195, %c0_196] : memref<20x1x128xf32, #tpu.memory_space<vmem>>, vector<1x1x128xf32>
    %222 = vector.shape_cast %221 : vector<1x1x128xf32> to vector<1x128xf32>
    %223 = vector.broadcast %222 : vector<1x128xf32> to vector<8x128xf32>
    %224 = arith.addf %220, %223 : vector<8x128xf32>
    %c14 = arith.constant 14 : index
    %c0_197 = arith.constant 0 : index
    %c0_198 = arith.constant 0 : index
    %225 = vector.load %arg1[%c14, %c0_197, %c0_198] : memref<20x128x128xf32, #tpu.memory_space<vmem>>, vector<1x128x128xf32>
    %226 = vector.shape_cast %225 : vector<1x128x128xf32> to vector<128x128xf32>
    %cst_199 = arith.constant dense<0.000000e+00> : vector<8x128xf32>
    %227 = tpu.matmul %224, %226, %cst_199 {dimension_numbers = #tpu.dot_dimension_numbers<[1], [0], [0], [1], [0, 0, 1, 1], [], []>} : vector<8x128xf32>, vector<128x128xf32>, vector<8x128xf32> -> vector<8x128xf32>
    %c14_200 = arith.constant 14 : index
    %c0_201 = arith.constant 0 : index
    %c0_202 = arith.constant 0 : index
    %228 = vector.load %arg2[%c14_200, %c0_201, %c0_202] : memref<20x1x128xf32, #tpu.memory_space<vmem>>, vector<1x1x128xf32>
    %229 = vector.shape_cast %228 : vector<1x1x128xf32> to vector<1x128xf32>
    %230 = vector.broadcast %229 : vector<1x128xf32> to vector<8x128xf32>
    %231 = arith.addf %227, %230 : vector<8x128xf32>
    %cst_203 = arith.constant 0.000000e+00 : f32
    %232 = vector.broadcast %cst_203 : f32 to vector<8x128xf32>
    %233 = arith.maximumf %231, %232 : vector<8x128xf32>
    %c14_204 = arith.constant 14 : index
    %c0_205 = arith.constant 0 : index
    %c0_206 = arith.constant 0 : index
    %234 = vector.load %arg3[%c14_204, %c0_205, %c0_206] : memref<20x128x128xf32, #tpu.memory_space<vmem>>, vector<1x128x128xf32>
    %235 = vector.shape_cast %234 : vector<1x128x128xf32> to vector<128x128xf32>
    %cst_207 = arith.constant dense<0.000000e+00> : vector<8x128xf32>
    %236 = tpu.matmul %233, %235, %cst_207 {dimension_numbers = #tpu.dot_dimension_numbers<[1], [0], [0], [1], [0, 0, 1, 1], [], []>} : vector<8x128xf32>, vector<128x128xf32>, vector<8x128xf32> -> vector<8x128xf32>
    %c14_208 = arith.constant 14 : index
    %c0_209 = arith.constant 0 : index
    %c0_210 = arith.constant 0 : index
    %237 = vector.load %arg4[%c14_208, %c0_209, %c0_210] : memref<20x1x128xf32, #tpu.memory_space<vmem>>, vector<1x1x128xf32>
    %238 = vector.shape_cast %237 : vector<1x1x128xf32> to vector<1x128xf32>
    %239 = vector.broadcast %238 : vector<1x128xf32> to vector<8x128xf32>
    %240 = arith.addf %236, %239 : vector<8x128xf32>
    %c15 = arith.constant 15 : index
    %c0_211 = arith.constant 0 : index
    %c0_212 = arith.constant 0 : index
    %241 = vector.load %arg1[%c15, %c0_211, %c0_212] : memref<20x128x128xf32, #tpu.memory_space<vmem>>, vector<1x128x128xf32>
    %242 = vector.shape_cast %241 : vector<1x128x128xf32> to vector<128x128xf32>
    %cst_213 = arith.constant dense<0.000000e+00> : vector<8x128xf32>
    %243 = tpu.matmul %240, %242, %cst_213 {dimension_numbers = #tpu.dot_dimension_numbers<[1], [0], [0], [1], [0, 0, 1, 1], [], []>} : vector<8x128xf32>, vector<128x128xf32>, vector<8x128xf32> -> vector<8x128xf32>
    %c15_214 = arith.constant 15 : index
    %c0_215 = arith.constant 0 : index
    %c0_216 = arith.constant 0 : index
    %244 = vector.load %arg2[%c15_214, %c0_215, %c0_216] : memref<20x1x128xf32, #tpu.memory_space<vmem>>, vector<1x1x128xf32>
    %245 = vector.shape_cast %244 : vector<1x1x128xf32> to vector<1x128xf32>
    %246 = vector.broadcast %245 : vector<1x128xf32> to vector<8x128xf32>
    %247 = arith.addf %243, %246 : vector<8x128xf32>
    %cst_217 = arith.constant 0.000000e+00 : f32
    %248 = vector.broadcast %cst_217 : f32 to vector<8x128xf32>
    %249 = arith.maximumf %247, %248 : vector<8x128xf32>
    %c15_218 = arith.constant 15 : index
    %c0_219 = arith.constant 0 : index
    %c0_220 = arith.constant 0 : index
    %250 = vector.load %arg3[%c15_218, %c0_219, %c0_220] : memref<20x128x128xf32, #tpu.memory_space<vmem>>, vector<1x128x128xf32>
    %251 = vector.shape_cast %250 : vector<1x128x128xf32> to vector<128x128xf32>
    %cst_221 = arith.constant dense<0.000000e+00> : vector<8x128xf32>
    %252 = tpu.matmul %249, %251, %cst_221 {dimension_numbers = #tpu.dot_dimension_numbers<[1], [0], [0], [1], [0, 0, 1, 1], [], []>} : vector<8x128xf32>, vector<128x128xf32>, vector<8x128xf32> -> vector<8x128xf32>
    %c15_222 = arith.constant 15 : index
    %c0_223 = arith.constant 0 : index
    %c0_224 = arith.constant 0 : index
    %253 = vector.load %arg4[%c15_222, %c0_223, %c0_224] : memref<20x1x128xf32, #tpu.memory_space<vmem>>, vector<1x1x128xf32>
    %254 = vector.shape_cast %253 : vector<1x1x128xf32> to vector<1x128xf32>
    %255 = vector.broadcast %254 : vector<1x128xf32> to vector<8x128xf32>
    %256 = arith.addf %252, %255 : vector<8x128xf32>
    %c16 = arith.constant 16 : index
    %c0_225 = arith.constant 0 : index
    %c0_226 = arith.constant 0 : index
    %257 = vector.load %arg1[%c16, %c0_225, %c0_226] : memref<20x128x128xf32, #tpu.memory_space<vmem>>, vector<1x128x128xf32>
    %258 = vector.shape_cast %257 : vector<1x128x128xf32> to vector<128x128xf32>
    %cst_227 = arith.constant dense<0.000000e+00> : vector<8x128xf32>
    %259 = tpu.matmul %256, %258, %cst_227 {dimension_numbers = #tpu.dot_dimension_numbers<[1], [0], [0], [1], [0, 0, 1, 1], [], []>} : vector<8x128xf32>, vector<128x128xf32>, vector<8x128xf32> -> vector<8x128xf32>
    %c16_228 = arith.constant 16 : index
    %c0_229 = arith.constant 0 : index
    %c0_230 = arith.constant 0 : index
    %260 = vector.load %arg2[%c16_228, %c0_229, %c0_230] : memref<20x1x128xf32, #tpu.memory_space<vmem>>, vector<1x1x128xf32>
    %261 = vector.shape_cast %260 : vector<1x1x128xf32> to vector<1x128xf32>
    %262 = vector.broadcast %261 : vector<1x128xf32> to vector<8x128xf32>
    %263 = arith.addf %259, %262 : vector<8x128xf32>
    %cst_231 = arith.constant 0.000000e+00 : f32
    %264 = vector.broadcast %cst_231 : f32 to vector<8x128xf32>
    %265 = arith.maximumf %263, %264 : vector<8x128xf32>
    %c16_232 = arith.constant 16 : index
    %c0_233 = arith.constant 0 : index
    %c0_234 = arith.constant 0 : index
    %266 = vector.load %arg3[%c16_232, %c0_233, %c0_234] : memref<20x128x128xf32, #tpu.memory_space<vmem>>, vector<1x128x128xf32>
    %267 = vector.shape_cast %266 : vector<1x128x128xf32> to vector<128x128xf32>
    %cst_235 = arith.constant dense<0.000000e+00> : vector<8x128xf32>
    %268 = tpu.matmul %265, %267, %cst_235 {dimension_numbers = #tpu.dot_dimension_numbers<[1], [0], [0], [1], [0, 0, 1, 1], [], []>} : vector<8x128xf32>, vector<128x128xf32>, vector<8x128xf32> -> vector<8x128xf32>
    %c16_236 = arith.constant 16 : index
    %c0_237 = arith.constant 0 : index
    %c0_238 = arith.constant 0 : index
    %269 = vector.load %arg4[%c16_236, %c0_237, %c0_238] : memref<20x1x128xf32, #tpu.memory_space<vmem>>, vector<1x1x128xf32>
    %270 = vector.shape_cast %269 : vector<1x1x128xf32> to vector<1x128xf32>
    %271 = vector.broadcast %270 : vector<1x128xf32> to vector<8x128xf32>
    %272 = arith.addf %268, %271 : vector<8x128xf32>
    %c17 = arith.constant 17 : index
    %c0_239 = arith.constant 0 : index
    %c0_240 = arith.constant 0 : index
    %273 = vector.load %arg1[%c17, %c0_239, %c0_240] : memref<20x128x128xf32, #tpu.memory_space<vmem>>, vector<1x128x128xf32>
    %274 = vector.shape_cast %273 : vector<1x128x128xf32> to vector<128x128xf32>
    %cst_241 = arith.constant dense<0.000000e+00> : vector<8x128xf32>
    %275 = tpu.matmul %272, %274, %cst_241 {dimension_numbers = #tpu.dot_dimension_numbers<[1], [0], [0], [1], [0, 0, 1, 1], [], []>} : vector<8x128xf32>, vector<128x128xf32>, vector<8x128xf32> -> vector<8x128xf32>
    %c17_242 = arith.constant 17 : index
    %c0_243 = arith.constant 0 : index
    %c0_244 = arith.constant 0 : index
    %276 = vector.load %arg2[%c17_242, %c0_243, %c0_244] : memref<20x1x128xf32, #tpu.memory_space<vmem>>, vector<1x1x128xf32>
    %277 = vector.shape_cast %276 : vector<1x1x128xf32> to vector<1x128xf32>
    %278 = vector.broadcast %277 : vector<1x128xf32> to vector<8x128xf32>
    %279 = arith.addf %275, %278 : vector<8x128xf32>
    %cst_245 = arith.constant 0.000000e+00 : f32
    %280 = vector.broadcast %cst_245 : f32 to vector<8x128xf32>
    %281 = arith.maximumf %279, %280 : vector<8x128xf32>
    %c17_246 = arith.constant 17 : index
    %c0_247 = arith.constant 0 : index
    %c0_248 = arith.constant 0 : index
    %282 = vector.load %arg3[%c17_246, %c0_247, %c0_248] : memref<20x128x128xf32, #tpu.memory_space<vmem>>, vector<1x128x128xf32>
    %283 = vector.shape_cast %282 : vector<1x128x128xf32> to vector<128x128xf32>
    %cst_249 = arith.constant dense<0.000000e+00> : vector<8x128xf32>
    %284 = tpu.matmul %281, %283, %cst_249 {dimension_numbers = #tpu.dot_dimension_numbers<[1], [0], [0], [1], [0, 0, 1, 1], [], []>} : vector<8x128xf32>, vector<128x128xf32>, vector<8x128xf32> -> vector<8x128xf32>
    %c17_250 = arith.constant 17 : index
    %c0_251 = arith.constant 0 : index
    %c0_252 = arith.constant 0 : index
    %285 = vector.load %arg4[%c17_250, %c0_251, %c0_252] : memref<20x1x128xf32, #tpu.memory_space<vmem>>, vector<1x1x128xf32>
    %286 = vector.shape_cast %285 : vector<1x1x128xf32> to vector<1x128xf32>
    %287 = vector.broadcast %286 : vector<1x128xf32> to vector<8x128xf32>
    %288 = arith.addf %284, %287 : vector<8x128xf32>
    %c18 = arith.constant 18 : index
    %c0_253 = arith.constant 0 : index
    %c0_254 = arith.constant 0 : index
    %289 = vector.load %arg1[%c18, %c0_253, %c0_254] : memref<20x128x128xf32, #tpu.memory_space<vmem>>, vector<1x128x128xf32>
    %290 = vector.shape_cast %289 : vector<1x128x128xf32> to vector<128x128xf32>
    %cst_255 = arith.constant dense<0.000000e+00> : vector<8x128xf32>
    %291 = tpu.matmul %288, %290, %cst_255 {dimension_numbers = #tpu.dot_dimension_numbers<[1], [0], [0], [1], [0, 0, 1, 1], [], []>} : vector<8x128xf32>, vector<128x128xf32>, vector<8x128xf32> -> vector<8x128xf32>
    %c18_256 = arith.constant 18 : index
    %c0_257 = arith.constant 0 : index
    %c0_258 = arith.constant 0 : index
    %292 = vector.load %arg2[%c18_256, %c0_257, %c0_258] : memref<20x1x128xf32, #tpu.memory_space<vmem>>, vector<1x1x128xf32>
    %293 = vector.shape_cast %292 : vector<1x1x128xf32> to vector<1x128xf32>
    %294 = vector.broadcast %293 : vector<1x128xf32> to vector<8x128xf32>
    %295 = arith.addf %291, %294 : vector<8x128xf32>
    %cst_259 = arith.constant 0.000000e+00 : f32
    %296 = vector.broadcast %cst_259 : f32 to vector<8x128xf32>
    %297 = arith.maximumf %295, %296 : vector<8x128xf32>
    %c18_260 = arith.constant 18 : index
    %c0_261 = arith.constant 0 : index
    %c0_262 = arith.constant 0 : index
    %298 = vector.load %arg3[%c18_260, %c0_261, %c0_262] : memref<20x128x128xf32, #tpu.memory_space<vmem>>, vector<1x128x128xf32>
    %299 = vector.shape_cast %298 : vector<1x128x128xf32> to vector<128x128xf32>
    %cst_263 = arith.constant dense<0.000000e+00> : vector<8x128xf32>
    %300 = tpu.matmul %297, %299, %cst_263 {dimension_numbers = #tpu.dot_dimension_numbers<[1], [0], [0], [1], [0, 0, 1, 1], [], []>} : vector<8x128xf32>, vector<128x128xf32>, vector<8x128xf32> -> vector<8x128xf32>
    %c18_264 = arith.constant 18 : index
    %c0_265 = arith.constant 0 : index
    %c0_266 = arith.constant 0 : index
    %301 = vector.load %arg4[%c18_264, %c0_265, %c0_266] : memref<20x1x128xf32, #tpu.memory_space<vmem>>, vector<1x1x128xf32>
    %302 = vector.shape_cast %301 : vector<1x1x128xf32> to vector<1x128xf32>
    %303 = vector.broadcast %302 : vector<1x128xf32> to vector<8x128xf32>
    %304 = arith.addf %300, %303 : vector<8x128xf32>
    %c19 = arith.constant 19 : index
    %c0_267 = arith.constant 0 : index
    %c0_268 = arith.constant 0 : index
    %305 = vector.load %arg1[%c19, %c0_267, %c0_268] : memref<20x128x128xf32, #tpu.memory_space<vmem>>, vector<1x128x128xf32>
    %306 = vector.shape_cast %305 : vector<1x128x128xf32> to vector<128x128xf32>
    %cst_269 = arith.constant dense<0.000000e+00> : vector<8x128xf32>
    %307 = tpu.matmul %304, %306, %cst_269 {dimension_numbers = #tpu.dot_dimension_numbers<[1], [0], [0], [1], [0, 0, 1, 1], [], []>} : vector<8x128xf32>, vector<128x128xf32>, vector<8x128xf32> -> vector<8x128xf32>
    %c19_270 = arith.constant 19 : index
    %c0_271 = arith.constant 0 : index
    %c0_272 = arith.constant 0 : index
    %308 = vector.load %arg2[%c19_270, %c0_271, %c0_272] : memref<20x1x128xf32, #tpu.memory_space<vmem>>, vector<1x1x128xf32>
    %309 = vector.shape_cast %308 : vector<1x1x128xf32> to vector<1x128xf32>
    %310 = vector.broadcast %309 : vector<1x128xf32> to vector<8x128xf32>
    %311 = arith.addf %307, %310 : vector<8x128xf32>
    %cst_273 = arith.constant 0.000000e+00 : f32
    %312 = vector.broadcast %cst_273 : f32 to vector<8x128xf32>
    %313 = arith.maximumf %311, %312 : vector<8x128xf32>
    %c19_274 = arith.constant 19 : index
    %c0_275 = arith.constant 0 : index
    %c0_276 = arith.constant 0 : index
    %314 = vector.load %arg3[%c19_274, %c0_275, %c0_276] : memref<20x128x128xf32, #tpu.memory_space<vmem>>, vector<1x128x128xf32>
    %315 = vector.shape_cast %314 : vector<1x128x128xf32> to vector<128x128xf32>
    %cst_277 = arith.constant dense<0.000000e+00> : vector<8x128xf32>
    %316 = tpu.matmul %313, %315, %cst_277 {dimension_numbers = #tpu.dot_dimension_numbers<[1], [0], [0], [1], [0, 0, 1, 1], [], []>} : vector<8x128xf32>, vector<128x128xf32>, vector<8x128xf32> -> vector<8x128xf32>
    %c19_278 = arith.constant 19 : index
    %c0_279 = arith.constant 0 : index
    %c0_280 = arith.constant 0 : index
    %317 = vector.load %arg4[%c19_278, %c0_279, %c0_280] : memref<20x1x128xf32, #tpu.memory_space<vmem>>, vector<1x1x128xf32>
    %318 = vector.shape_cast %317 : vector<1x1x128xf32> to vector<1x128xf32>
    %319 = vector.broadcast %318 : vector<1x128xf32> to vector<8x128xf32>
    %320 = arith.addf %316, %319 : vector<8x128xf32>
    %c0_281 = arith.constant 0 : index
    %c0_282 = arith.constant 0 : index
    %321 = vector.load %arg5[%c0_281, %c0_282] : memref<8x128xf32, #tpu.memory_space<vmem>>, vector<8x128xf32>
    tpu.vector_store %arg5[%c0_281, %c0_282], %320 {strides = array<i32>} : memref<8x128xf32, #tpu.memory_space<vmem>>, vector<8x128xf32>,
    return
  }
}

</mosaic_0001>

<bundles_post_ra>
// kernel: mlp_module_list_forward.1
= control target key start
LH: loop header
LB: loop body
LE: loop exit
PB: predicated region body
PF: predicated region fallthrough
CT: control target
= control target key end

     0   :  { %v6610_v0 = vmov 0.0   ;;  %vm6611_vm0 = vmmov 0   ;;  %s9408_s1 = inlined_call_operand.vmem [shape: f32[20,128,128], index: 1, kind: input, shape index: {}]   ;;  %s9409_s3 = inlined_call_operand.vmem [shape: f32[20,128,128], index: 3, kind: input, shape index: {}]   ;;  %s9410_s0 = inlined_call_operand.vmem [shape: f32[8,128], index: 0, kind: input, shape index: {}]   ;;  %s9411_s2 = inlined_call_operand.vmem [shape: f32[20,1,128], index: 2, kind: input, shape index: {}]   ;;  %s9412_s4 = inlined_call_operand.vmem [shape: f32[20,1,128], index: 4, kind: input, shape index: {}]   ;;  %s9413_s5 = inlined_call_operand.vmem [shape: f32[8,128], index: 5, kind: output, shape index: {}]  }
   0x1   :  { %5208 = vmatprep.subr.mxu0 %v6610_v0  ;;  %v36_v1 = vld [vmem:[%s9408_s1 + $0x78] sm:$0xff]  ;;  %v35_v2 = vld [vmem:[%s9408_s1 + $0x70] sm:$0xff]  ;;  %5240 = vmatprep.mubr.msk.f32.mxu0 %vm6611_vm0, %v6610_v0  ;;  %v34_v3 = vld [vmem:[%s9408_s1 + $0x68] sm:$0xff] }
   0x2   :  { %5209 = vmatpush3.msra.mxu0 %v36_v1  ;;  %5243 = vmatprep.subr.mxu1 %v6610_v0  ;;  %v33_v4 = vld [vmem:[%s9408_s1 + $0x60] sm:$0xff]  ;;  %v130_v5 = vld [vmem:[%s9409_s3 + $0x78] sm:$0xff]  ;;  %v129_v7 = vld [vmem:[%s9409_s3 + $0x70] sm:$0xff] }
   0x3   :  { %5210 = vmatprep.subr.mxu0 %v6610_v0  ;;  %5275 = vmatprep.mubr.msk.f32.mxu1 %vm6611_vm0, %v6610_v0  ;;  %v32_v6 = vld [vmem:[%s9408_s1 + $0x58] sm:$0xff]  ;;  %v128_v8 = vld [vmem:[%s9409_s3 + $0x68] sm:$0xff]  ;;  %v31_v9 = vld [vmem:[%s9408_s1 + $0x50] sm:$0xff] }
   0x4   :  { %5211 = vmatpush3.msra.mxu0 %v35_v2  ;;  %5244 = vmatpush3.msra.mxu1 %v130_v5  ;;  %v127_v10 = vld [vmem:[%s9409_s3 + $0x60] sm:$0xff]  ;;  %v30_v11 = vld [vmem:[%s9408_s1 + $0x48] sm:$0xff]  ;;  %v126_v12 = vld [vmem:[%s9409_s3 + $0x58] sm:$0xff] }
   0x5   :  { %5212 = vmatprep.subr.mxu0 %v6610_v0  ;;  %5245 = vmatprep.subr.mxu1 %v6610_v0  ;;  %v29_v13 = vld [vmem:[%s9408_s1 + $0x40] sm:$0xff]  ;;  %v125_v14 = vld [vmem:[%s9409_s3 + $0x50] sm:$0xff]  ;;  %v28_v15 = vld [vmem:[%s9408_s1 + $0x38] sm:$0xff] }
   0x6   :  { %5213 = vmatpush3.msra.mxu0 %v34_v3  ;;  %5246 = vmatpush3.msra.mxu1 %v129_v7  ;;  %v124_v16 = vld [vmem:[%s9409_s3 + $0x48] sm:$0xff]  ;;  %v27_v17 = vld [vmem:[%s9408_s1 + $0x30] sm:$0xff]  ;;  %v123_v18 = vld [vmem:[%s9409_s3 + $0x40] sm:$0xff] }
   0x7   :  { %5214 = vmatprep.subr.mxu0 %v6610_v0  ;;  %5247 = vmatprep.subr.mxu1 %v6610_v0  ;;  %v26_v19 = vld [vmem:[%s9408_s1 + $0x28] sm:$0xff]  ;;  %v122_v20 = vld [vmem:[%s9409_s3 + $0x38] sm:$0xff]  ;;  %v25_v21 = vld [vmem:[%s9408_s1 + $0x20] sm:$0xff] }
   0x8   :  { %5215 = vmatpush3.msra.mxu0 %v33_v4  ;;  %5248 = vmatpush3.msra.mxu1 %v128_v8  ;;  %v121_v22 = vld [vmem:[%s9409_s3 + $0x30] sm:$0xff]  ;;  %v24_v23 = vld [vmem:[%s9408_s1 + $0x18] sm:$0xff]  ;;  %v120_v24 = vld [vmem:[%s9409_s3 + $0x28] sm:$0xff] }
   0x9   :  { %5216 = vmatprep.subr.mxu0 %v6610_v0  ;;  %5249 = vmatprep.subr.mxu1 %v6610_v0  ;;  %v23_v25 = vld [vmem:[%s9408_s1 + $0x10] sm:$0xff]  ;;  %v119_v26 = vld [vmem:[%s9409_s3 + $0x20] sm:$0xff]  ;;  %v22_v27 = vld [vmem:[%s9408_s1 + $0x8] sm:$0xff] }
   0xa   :  { %5217 = vmatpush3.msra.mxu0 %v32_v6  ;;  %5250 = vmatpush3.msra.mxu1 %v127_v10  ;;  %v118_v28 = vld [vmem:[%s9409_s3 + $0x18] sm:$0xff]  ;;  %v21_v29 = vld [vmem:[%s9408_s1] sm:$0xff]  ;;  %v117_v31 = vld [vmem:[%s9409_s3 + $0x10] sm:$0xff] }
   0xb   :  { %5218 = vmatprep.subr.mxu0 %v6610_v0  ;;  %5251 = vmatprep.subr.mxu1 %v6610_v0  ;;  %v20_v30 = vld [vmem:[%s9410_s0] sm:$0xff]  ;;  %v116_v32 = vld [vmem:[%s9409_s3 + $0x8] sm:$0xff]  ;;  %v3859_v34 = vld [vmem:[%s9408_s1 + $0xf8] sm:$0xff] }
   0xc   :  { %5219 = vmatpush3.msra.mxu0 %v31_v9  ;;  %5252 = vmatpush3.msra.mxu1 %v126_v12  ;;  %v115_v33 = vld [vmem:[%s9409_s3] sm:$0xff]  ;;  %v3858_v35 = vld [vmem:[%s9408_s1 + $0xf0] sm:$0xff]  ;;  %v3857_v36 = vld [vmem:[%s9408_s1 + $0xe8] sm:$0xff] }
   0xd   :  { %5220 = vmatprep.subr.mxu0 %v6610_v0  ;;  %5253 = vmatprep.subr.mxu1 %v6610_v0  ;;  %v3856_v37 = vld [vmem:[%s9408_s1 + $0xe0] sm:$0xff]  ;;  %v3855_v38 = vld [vmem:[%s9408_s1 + $0xd8] sm:$0xff]  ;;  %v3854_v39 = vld [vmem:[%s9408_s1 + $0xd0] sm:$0xff] }
   0xe   :  { %5221 = vmatpush3.msra.mxu0 %v30_v11  ;;  %5254 = vmatpush3.msra.mxu1 %v125_v14  ;;  %v3853_v40 = vld [vmem:[%s9408_s1 + $0xc8] sm:$0xff]  ;;  %v3852_v41 = vld [vmem:[%s9408_s1 + $0xc0] sm:$0xff]  ;;  %v3851_v42 = vld [vmem:[%s9408_s1 + $0xb8] sm:$0xff] }
   0xf   :  { %5222 = vmatprep.subr.mxu0 %v6610_v0  ;;  %5255 = vmatprep.subr.mxu1 %v6610_v0  ;;  %v3850_v43 = vld [vmem:[%s9408_s1 + $0xb0] sm:$0xff]  ;;  %v3849_v44 = vld [vmem:[%s9408_s1 + $0xa8] sm:$0xff]  ;;  %v3848_v45 = vld [vmem:[%s9408_s1 + $0xa0] sm:$0xff] }
  0x10   :  { %5223 = vmatpush3.msra.mxu0 %v29_v13  ;;  %5256 = vmatpush3.msra.mxu1 %v124_v16  ;;  %v3847_v46 = vld [vmem:[%s9408_s1 + $0x98] sm:$0xff]  ;;  %v3846_v47 = vld [vmem:[%s9408_s1 + $0x90] sm:$0xff]  ;;  %v3842_v48 = vld [vmem:[%s9411_s2] ss:$0 sm:$0xff] }
  0x11   :  { %5224 = vmatprep.subr.mxu0 %v6610_v0  ;;  %5257 = vmatprep.subr.mxu1 %v6610_v0  ;;  %v3845_v53 = vld [vmem:[%s9408_s1 + $0x88] sm:$0xff]  ;;  %v3844_v54 = vld [vmem:[%s9408_s1 + $0x80] sm:$0xff]  ;;  %v3877_v55 = vld [vmem:[%s9409_s3 + $0xf8] sm:$0xff] }
  0x12   :  { %5225 = vmatpush3.msra.mxu0 %v28_v15  ;;  %5258 = vmatpush3.msra.mxu1 %v123_v18  ;;  %v3876_v56 = vld [vmem:[%s9409_s3 + $0xf0] sm:$0xff]  ;;  %v3875_v57 = vld [vmem:[%s9409_s3 + $0xe8] sm:$0xff]  ;;  %v3874_v58 = vld [vmem:[%s9409_s3 + $0xe0] sm:$0xff] }
  0x13   :  { %5226 = vmatprep.subr.mxu0 %v6610_v0  ;;  %5259 = vmatprep.subr.mxu1 %v6610_v0  ;;  %v3873_v59 = vld [vmem:[%s9409_s3 + $0xd8] sm:$0xff]  ;;  %v3872_v60 = vld [vmem:[%s9409_s3 + $0xd0] sm:$0xff]  ;;  %v3871_v61 = vld [vmem:[%s9409_s3 + $0xc8] sm:$0xff] }
  0x14   :  { %5227 = vmatpush3.msra.mxu0 %v27_v17  ;;  %5260 = vmatpush3.msra.mxu1 %v122_v20  ;;  %v3870_v62 = vld [vmem:[%s9409_s3 + $0xc0] sm:$0xff]  ;;  %v3869_v63 = vld [vmem:[%s9409_s3 + $0xb8] sm:$0xff]  ;;  %v3868_v1 = vld [vmem:[%s9409_s3 + $0xb0] sm:$0xff] }
  0x15   :  { %5228 = vmatprep.subr.mxu0 %v6610_v0  ;;  %5261 = vmatprep.subr.mxu1 %v6610_v0  ;;  %v3867_v2 = vld [vmem:[%s9409_s3 + $0xa8] sm:$0xff]  ;;  %v3866_v3 = vld [vmem:[%s9409_s3 + $0xa0] sm:$0xff]  ;;  %v3865_v4 = vld [vmem:[%s9409_s3 + $0x98] sm:$0xff] }
  0x16   :  { %5229 = vmatpush3.msra.mxu0 %v26_v19  ;;  %5262 = vmatpush3.msra.mxu1 %v121_v22  ;;  %v3843_v5 = vld [vmem:[%s9412_s4] ss:$0 sm:$0xff]  ;;  %v3864_v9 = vld [vmem:[%s9409_s3 + $0x90] sm:$0xff]  ;;  %v3863_v10 = vld [vmem:[%s9409_s3 + $0x88] sm:$0xff] }
  0x17   :  { %5230 = vmatprep.subr.mxu0 %v6610_v0  ;;  %5263 = vmatprep.subr.mxu1 %v6610_v0  ;;  %v3862_v11 = vld [vmem:[%s9409_s3 + $0x80] sm:$0xff]  ;;  %v3895_v12 = vld [vmem:[%s9408_s1 + $0x178] sm:$0xff]  ;;  %v3894_v13 = vld [vmem:[%s9408_s1 + $0x170] sm:$0xff] }
  0x18   :  { %5231 = vmatpush3.msra.mxu0 %v25_v21  ;;  %5264 = vmatpush3.msra.mxu1 %v120_v24  ;;  %v3893_v14 = vld [vmem:[%s9408_s1 + $0x168] sm:$0xff]  ;;  %v3892_v15 = vld [vmem:[%s9408_s1 + $0x160] sm:$0xff]  ;;  %v3891_v16 = vld [vmem:[%s9408_s1 + $0x158] sm:$0xff] }
  0x19   :  { %5232 = vmatprep.subr.mxu0 %v6610_v0  ;;  %5265 = vmatprep.subr.mxu1 %v6610_v0  ;;  %v3890_v17 = vld [vmem:[%s9408_s1 + $0x150] sm:$0xff]  ;;  %v3889_v18 = vld [vmem:[%s9408_s1 + $0x148] sm:$0xff]  ;;  %v3888_v19 = vld [vmem:[%s9408_s1 + $0x140] sm:$0xff] }
  0x1a   :  { %5233 = vmatpush3.msra.mxu0 %v24_v23  ;;  %5266 = vmatpush3.msra.mxu1 %v119_v26  ;;  %v3887_v20 = vld [vmem:[%s9408_s1 + $0x138] sm:$0xff]  ;;  %v3886_v21 = vld [vmem:[%s9408_s1 + $0x130] sm:$0xff]  ;;  %v3885_v22 = vld [vmem:[%s9408_s1 + $0x128] sm:$0xff] }
  0x1b   :  { %5234 = vmatprep.subr.mxu0 %v6610_v0  ;;  %5267 = vmatprep.subr.mxu1 %v6610_v0  ;;  %v3884_v23 = vld [vmem:[%s9408_s1 + $0x120] sm:$0xff]  ;;  %v3883_v24 = vld [vmem:[%s9408_s1 + $0x118] sm:$0xff] }
  0x1c   :  { %5235 = vmatpush3.msra.mxu0 %v23_v25  ;;  %5268 = vmatpush3.msra.mxu1 %v118_v28  ;;  %v3882_v25 = vld [vmem:[%s9408_s1 + $0x110] sm:$0xff]  ;;  %v3861_v26 = vld [vmem:[%s9411_s2 + $0x1] ss:$0 sm:$0xff] }
  0x1d   :  { %5236 = vmatprep.subr.mxu0 %v6610_v0  ;;  %5269 = vmatprep.subr.mxu1 %v6610_v0 }
  0x1e   :  { %5237 = vmatpush3.msra.mxu0 %v22_v27  ;;  %5270 = vmatpush3.msra.mxu1 %v117_v31  ;;  %v3881_v31 = vld [vmem:[%s9408_s1 + $0x108] sm:$0xff] }
  0x1f   :  { %5238 = vmatprep.subr.mxu0 %v6610_v0  ;;  %5271 = vmatprep.subr.mxu1 %v6610_v0 }
  0x20   :  { %5239 = vmatpush3.msra.mxu0 %v21_v29  ;;  %5272 = vmatpush3.msra.mxu1 %v116_v32  ;;  %v3880_v32 = vld [vmem:[%s9408_s1 + $0x100] sm:$0xff] }
  0x21   :  { %5241 = vmatmul.mubr.f32.vlgmr.msra.gmra.mxu0 %v20_v30  ;;  %5278 = vmatprep.subr.mxu0 %v6610_v0 }
  0x22   :  { %5310 = vmatprep.mubr.msk.f32.mxu0 %vm6611_vm0, %v6610_v0  ;;  %5273 = vmatprep.subr.mxu1 %v6610_v0 }
  0x23   :  { %5274 = vmatpush3.msra.mxu1 %v115_v33  ;;  %5279 = vmatpush3.msra.mxu0 %v3859_v34  ;;  %v3913_v33 = vld [vmem:[%s9409_s3 + $0x178] sm:$0xff]  ;;  %v3912_v34 = vld [vmem:[%s9409_s3 + $0x170] sm:$0xff] }
  0x24   :  { %5313 = vmatprep.subr.mxu1 %v6610_v0  ;;  %5280 = vmatprep.subr.mxu0 %v6610_v0 }
  0x25   :  { %5281 = vmatpush3.msra.mxu0 %v3858_v35  ;;  %v3911_v35 = vld [vmem:[%s9409_s3 + $0x168] sm:$0xff] }
  0x26   :  { %5282 = vmatprep.subr.mxu0 %v6610_v0 }
  0x27   :  { %5283 = vmatpush3.msra.mxu0 %v3857_v36  ;;  %v3910_v36 = vld [vmem:[%s9409_s3 + $0x160] sm:$0xff] }
  0x28   :  { %5284 = vmatprep.subr.mxu0 %v6610_v0 }
  0x29   :  { %5285 = vmatpush3.msra.mxu0 %v3856_v37  ;;  %v3909_v37 = vld [vmem:[%s9409_s3 + $0x158] sm:$0xff] }
  0x2a   :  { %5286 = vmatprep.subr.mxu0 %v6610_v0 }
  0x2b   :  { %5287 = vmatpush3.msra.mxu0 %v3855_v38  ;;  %v3908_v38 = vld [vmem:[%s9409_s3 + $0x150] sm:$0xff] }
  0x2c   :  { %5288 = vmatprep.subr.mxu0 %v6610_v0 }
  0x2d   :  { %5289 = vmatpush3.msra.mxu0 %v3854_v39  ;;  %v3907_v39 = vld [vmem:[%s9409_s3 + $0x148] sm:$0xff] }
  0x2e   :  { %5290 = vmatprep.subr.mxu0 %v6610_v0 }
  0x2f   :  { %5291 = vmatpush3.msra.mxu0 %v3853_v40  ;;  %v3906_v40 = vld [vmem:[%s9409_s3 + $0x140] sm:$0xff] }
  0x30   :  { %5292 = vmatprep.subr.mxu0 %v6610_v0 }
  0x31   :  { %5293 = vmatpush3.msra.mxu0 %v3852_v41  ;;  %v3905_v41 = vld [vmem:[%s9409_s3 + $0x138] sm:$0xff] }
  0x32   :  { %5294 = vmatprep.subr.mxu0 %v6610_v0 }
  0x33   :  { %5295 = vmatpush3.msra.mxu0 %v3851_v42  ;;  %v3904_v42 = vld [vmem:[%s9409_s3 + $0x130] sm:$0xff] }
  0x34   :  { %5296 = vmatprep.subr.mxu0 %v6610_v0 }
  0x35   :  { %5297 = vmatpush3.msra.mxu0 %v3850_v43  ;;  %v3903_v43 = vld [vmem:[%s9409_s3 + $0x128] sm:$0xff] }
  0x36   :  { %5298 = vmatprep.subr.mxu0 %v6610_v0 }
  0x37   :  { %5299 = vmatpush3.msra.mxu0 %v3849_v44  ;;  %v3902_v44 = vld [vmem:[%s9409_s3 + $0x120] sm:$0xff] }
  0x38   :  { %5300 = vmatprep.subr.mxu0 %v6610_v0 }
  0x39   :  { %5301 = vmatpush3.msra.mxu0 %v3848_v45  ;;  %v3901_v45 = vld [vmem:[%s9409_s3 + $0x118] sm:$0xff] }
  0x3a   :  { %5302 = vmatprep.subr.mxu0 %v6610_v0 }
  0x3b   :  { %5303 = vmatpush3.msra.mxu0 %v3847_v46  ;;  %v3879_v46 = vld [vmem:[%s9412_s4 + $0x1] ss:$0 sm:$0xff] }
  0x3c   :  { %5304 = vmatprep.subr.mxu0 %v6610_v0 }
  0x3d   :  { %5305 = vmatpush3.msra.mxu0 %v3846_v47 }
  0x3e   :  { %5306 = vmatprep.subr.mxu0 %v6610_v0 }
  0x3f   :  { %5307 = vmatpush3.msra.mxu0 %v3845_v53  ;;  %v3931_v53 = vld [vmem:[%s9408_s1 + $0x1f8] sm:$0xff] }
  0x40   :  { %5308 = vmatprep.subr.mxu0 %v6610_v0 }
  0x41   :  { %5309 = vmatpush3.msra.mxu0 %v3844_v54  ;;  %v3930_v54 = vld [vmem:[%s9408_s1 + $0x1f0] sm:$0xff] }
  0x42   :  { %5348 = vmatprep.subr.mxu0 %v6610_v0 }
  0xe1   :  { %v110_v49 = vpop.f32.mrf.mxu0 }
  0xe2   :  { %v111_v50 = vadd.f32 %v3842_v48, %v110_v49 }
  0xe3   :  { %v5242_v51 = vpop.f32.mrf.mxu0 }
  0xe4   :  { %v114_v52 = vmax.f32 %v111_v50, 0.0  ;;  %v3900_v50 = vld [vmem:[%s9409_s3 + $0x110] sm:$0xff]  ;;  %v3899_v51 = vld [vmem:[%s9409_s3 + $0x108] sm:$0xff] }
  0xe6   :  { %5276 = vmatmul.mubr.f32.vlgmr.msra.gmra.mxu1 %v114_v52  ;;  %v3898_v52 = vld [vmem:[%s9409_s3 + $0x100] sm:$0xff] }
  0xe7   :  { %5345 = vmatprep.mubr.msk.f32.mxu1 %vm6611_vm0, %v6610_v0  ;;  %5314 = vmatpush3.msra.mxu1 %v3877_v55  ;;  %v3929_v55 = vld [vmem:[%s9408_s1 + $0x1e8] sm:$0xff] }
  0xe8   :  { %5315 = vmatprep.subr.mxu1 %v6610_v0 }
  0xe9   :  { %5316 = vmatpush3.msra.mxu1 %v3876_v56  ;;  %v3928_v56 = vld [vmem:[%s9408_s1 + $0x1e0] sm:$0xff] }
  0xea   :  { %5317 = vmatprep.subr.mxu1 %v6610_v0 }
  0xeb   :  { %5318 = vmatpush3.msra.mxu1 %v3875_v57  ;;  %v3927_v57 = vld [vmem:[%s9408_s1 + $0x1d8] sm:$0xff] }
  0xec   :  { %5319 = vmatprep.subr.mxu1 %v6610_v0 }
  0xed   :  { %5320 = vmatpush3.msra.mxu1 %v3874_v58  ;;  %v3926_v58 = vld [vmem:[%s9408_s1 + $0x1d0] sm:$0xff] }
  0xee   :  { %5321 = vmatprep.subr.mxu1 %v6610_v0 }
  0xef   :  { %5322 = vmatpush3.msra.mxu1 %v3873_v59  ;;  %v3925_v59 = vld [vmem:[%s9408_s1 + $0x1c8] sm:$0xff] }
  0xf0   :  { %5323 = vmatprep.subr.mxu1 %v6610_v0 }
  0xf1   :  { %5324 = vmatpush3.msra.mxu1 %v3872_v60  ;;  %v3924_v60 = vld [vmem:[%s9408_s1 + $0x1c0] sm:$0xff] }
  0xf2   :  { %5325 = vmatprep.subr.mxu1 %v6610_v0 }
  0xf3   :  { %5326 = vmatpush3.msra.mxu1 %v3871_v61  ;;  %v3923_v61 = vld [vmem:[%s9408_s1 + $0x1b8] sm:$0xff] }
  0xf4   :  { %5327 = vmatprep.subr.mxu1 %v6610_v0 }
  0xf5   :  { %5328 = vmatpush3.msra.mxu1 %v3870_v62  ;;  %v3922_v62 = vld [vmem:[%s9408_s1 + $0x1b0] sm:$0xff] }
  0xf6   :  { %5329 = vmatprep.subr.mxu1 %v6610_v0 }
  0xf7   :  { %5330 = vmatpush3.msra.mxu1 %v3869_v63  ;;  %v3921_v63 = vld [vmem:[%s9408_s1 + $0x1a8] sm:$0xff] }
  0xf8   :  { %5331 = vmatprep.subr.mxu1 %v6610_v0 }
  0xf9   :  { %5332 = vmatpush3.msra.mxu1 %v3868_v1  ;;  %v3920_v1 = vld [vmem:[%s9408_s1 + $0x1a0] sm:$0xff] }
  0xfa   :  { %5333 = vmatprep.subr.mxu1 %v6610_v0 }
  0xfb   :  { %5334 = vmatpush3.msra.mxu1 %v3867_v2  ;;  %v3919_v2 = vld [vmem:[%s9408_s1 + $0x198] sm:$0xff] }
  0xfc   :  { %5335 = vmatprep.subr.mxu1 %v6610_v0 }
  0xfd   :  { %5336 = vmatpush3.msra.mxu1 %v3866_v3  ;;  %v3918_v3 = vld [vmem:[%s9408_s1 + $0x190] sm:$0xff] }
  0xfe   :  { %5337 = vmatprep.subr.mxu1 %v6610_v0 }
  0xff   :  { %5338 = vmatpush3.msra.mxu1 %v3865_v4  ;;  %v3897_v4 = vld [vmem:[%s9411_s2 + $0x2] ss:$0 sm:$0xff] }
 0x100   :  { %5339 = vmatprep.subr.mxu1 %v6610_v0 }
 0x101   :  { %5340 = vmatpush3.msra.mxu1 %v3864_v9  ;;  %v3917_v9 = vld [vmem:[%s9408_s1 + $0x188] sm:$0xff] }
 0x102   :  { %5341 = vmatprep.subr.mxu1 %v6610_v0 }
 0x103   :  { %5342 = vmatpush3.msra.mxu1 %v3863_v10  ;;  %v3916_v10 = vld [vmem:[%s9408_s1 + $0x180] sm:$0xff] }
 0x104   :  { %5343 = vmatprep.subr.mxu1 %v6610_v0 }
 0x105   :  { %5344 = vmatpush3.msra.mxu1 %v3862_v11  ;;  %v3949_v11 = vld [vmem:[%s9409_s3 + $0x1f8] sm:$0xff] }
 0x106   :  { %5383 = vmatprep.subr.mxu1 %v6610_v0 }
 0x1a6   :  { %v204_v6 = vpop.f32.mrf.mxu1 }
 0x1a7   :  { %v205_v7 = vadd.f32 %v3843_v5, %v204_v6 }
 0x1a8   :  { %v5277_v8 = vpop.f32.mrf.mxu1 }
 0x1a9   :  { %5311 = vmatmul.mubr.f32.vlgmr.msra.gmra.mxu0 %v205_v7 }
 0x1aa   :  { %5380 = vmatprep.mubr.msk.f32.mxu0 %vm6611_vm0, %v6610_v0  ;;  %5349 = vmatpush3.msra.mxu0 %v3895_v12  ;;  %v3948_v12 = vld [vmem:[%s9409_s3 + $0x1f0] sm:$0xff] }
 0x1ab   :  { %5350 = vmatprep.subr.mxu0 %v6610_v0 }
 0x1ac   :  { %5351 = vmatpush3.msra.mxu0 %v3894_v13  ;;  %v3947_v13 = vld [vmem:[%s9409_s3 + $0x1e8] sm:$0xff] }
 0x1ad   :  { %5352 = vmatprep.subr.mxu0 %v6610_v0 }
 0x1ae   :  { %5353 = vmatpush3.msra.mxu0 %v3893_v14  ;;  %v3946_v14 = vld [vmem:[%s9409_s3 + $0x1e0] sm:$0xff] }
 0x1af   :  { %5354 = vmatprep.subr.mxu0 %v6610_v0 }
 0x1b0   :  { %5355 = vmatpush3.msra.mxu0 %v3892_v15  ;;  %v3945_v15 = vld [vmem:[%s9409_s3 + $0x1d8] sm:$0xff] }
 0x1b1   :  { %5356 = vmatprep.subr.mxu0 %v6610_v0 }
 0x1b2   :  { %5357 = vmatpush3.msra.mxu0 %v3891_v16  ;;  %v3944_v16 = vld [vmem:[%s9409_s3 + $0x1d0] sm:$0xff] }
 0x1b3   :  { %5358 = vmatprep.subr.mxu0 %v6610_v0 }
 0x1b4   :  { %5359 = vmatpush3.msra.mxu0 %v3890_v17  ;;  %v3943_v17 = vld [vmem:[%s9409_s3 + $0x1c8] sm:$0xff] }
 0x1b5   :  { %5360 = vmatprep.subr.mxu0 %v6610_v0 }
 0x1b6   :  { %5361 = vmatpush3.msra.mxu0 %v3889_v18  ;;  %v3942_v18 = vld [vmem:[%s9409_s3 + $0x1c0] sm:$0xff] }
 0x1b7   :  { %5362 = vmatprep.subr.mxu0 %v6610_v0 }
 0x1b8   :  { %5363 = vmatpush3.msra.mxu0 %v3888_v19  ;;  %v3941_v19 = vld [vmem:[%s9409_s3 + $0x1b8] sm:$0xff] }
 0x1b9   :  { %5364 = vmatprep.subr.mxu0 %v6610_v0 }
 0x1ba   :  { %5365 = vmatpush3.msra.mxu0 %v3887_v20  ;;  %v3940_v20 = vld [vmem:[%s9409_s3 + $0x1b0] sm:$0xff] }
 0x1bb   :  { %5366 = vmatprep.subr.mxu0 %v6610_v0 }
 0x1bc   :  { %5367 = vmatpush3.msra.mxu0 %v3886_v21  ;;  %v3939_v21 = vld [vmem:[%s9409_s3 + $0x1a8] sm:$0xff] }
 0x1bd   :  { %5368 = vmatprep.subr.mxu0 %v6610_v0 }
 0x1be   :  { %5369 = vmatpush3.msra.mxu0 %v3885_v22  ;;  %v3938_v22 = vld [vmem:[%s9409_s3 + $0x1a0] sm:$0xff] }
 0x1bf   :  { %5370 = vmatprep.subr.mxu0 %v6610_v0 }
 0x1c0   :  { %5371 = vmatpush3.msra.mxu0 %v3884_v23  ;;  %v3937_v23 = vld [vmem:[%s9409_s3 + $0x198] sm:$0xff] }
 0x1c1   :  { %5372 = vmatprep.subr.mxu0 %v6610_v0 }
 0x1c2   :  { %5373 = vmatpush3.msra.mxu0 %v3883_v24  ;;  %v3915_v24 = vld [vmem:[%s9412_s4 + $0x2] ss:$0 sm:$0xff] }
 0x1c3   :  { %5374 = vmatprep.subr.mxu0 %v6610_v0 }
 0x1c4   :  { %5375 = vmatpush3.msra.mxu0 %v3882_v25 }
 0x1c5   :  { %5376 = vmatprep.subr.mxu0 %v6610_v0 }
 0x1c6   :  { %5377 = vmatpush3.msra.mxu0 %v3881_v31  ;;  %v3967_v31 = vld [vmem:[%s9408_s1 + $0x278] sm:$0xff] }
 0x1c7   :  { %5378 = vmatprep.subr.mxu0 %v6610_v0 }
 0x1c8   :  { %5379 = vmatpush3.msra.mxu0 %v3880_v32  ;;  %v3966_v32 = vld [vmem:[%s9408_s1 + $0x270] sm:$0xff] }
 0x1c9   :  { %5418 = vmatprep.subr.mxu0 %v6610_v0 }
 0x269   :  { %v299_v27 = vpop.f32.mrf.mxu0 }
 0x26a   :  { %v300_v28 = vadd.f32 %v3861_v26, %v299_v27 }
 0x26b   :  { %v5312_v29 = vpop.f32.mrf.mxu0 }
 0x26c   :  { %v303_v30 = vmax.f32 %v300_v28, 0.0  ;;  %v3936_v28 = vld [vmem:[%s9409_s3 + $0x190] sm:$0xff]  ;;  %v3935_v29 = vld [vmem:[%s9409_s3 + $0x188] sm:$0xff] }
 0x26e   :  { %5346 = vmatmul.mubr.f32.vlgmr.msra.gmra.mxu1 %v303_v30  ;;  %v3934_v30 = vld [vmem:[%s9409_s3 + $0x180] sm:$0xff] }
 0x26f   :  { %5415 = vmatprep.mubr.msk.f32.mxu1 %vm6611_vm0, %v6610_v0  ;;  %5384 = vmatpush3.msra.mxu1 %v3913_v33  ;;  %v3965_v33 = vld [vmem:[%s9408_s1 + $0x268] sm:$0xff] }
 0x270   :  { %5385 = vmatprep.subr.mxu1 %v6610_v0 }
 0x271   :  { %5386 = vmatpush3.msra.mxu1 %v3912_v34  ;;  %v3964_v34 = vld [vmem:[%s9408_s1 + $0x260] sm:$0xff] }
 0x272   :  { %5387 = vmatprep.subr.mxu1 %v6610_v0 }
 0x273   :  { %5388 = vmatpush3.msra.mxu1 %v3911_v35  ;;  %v3963_v35 = vld [vmem:[%s9408_s1 + $0x258] sm:$0xff] }
 0x274   :  { %5389 = vmatprep.subr.mxu1 %v6610_v0 }
 0x275   :  { %5390 = vmatpush3.msra.mxu1 %v3910_v36  ;;  %v3962_v36 = vld [vmem:[%s9408_s1 + $0x250] sm:$0xff] }
 0x276   :  { %5391 = vmatprep.subr.mxu1 %v6610_v0 }
 0x277   :  { %5392 = vmatpush3.msra.mxu1 %v3909_v37  ;;  %v3961_v37 = vld [vmem:[%s9408_s1 + $0x248] sm:$0xff] }
 0x278   :  { %5393 = vmatprep.subr.mxu1 %v6610_v0 }
 0x279   :  { %5394 = vmatpush3.msra.mxu1 %v3908_v38  ;;  %v3960_v38 = vld [vmem:[%s9408_s1 + $0x240] sm:$0xff] }
 0x27a   :  { %5395 = vmatprep.subr.mxu1 %v6610_v0 }
 0x27b   :  { %5396 = vmatpush3.msra.mxu1 %v3907_v39  ;;  %v3959_v39 = vld [vmem:[%s9408_s1 + $0x238] sm:$0xff] }
 0x27c   :  { %5397 = vmatprep.subr.mxu1 %v6610_v0 }
 0x27d   :  { %5398 = vmatpush3.msra.mxu1 %v3906_v40  ;;  %v3958_v40 = vld [vmem:[%s9408_s1 + $0x230] sm:$0xff] }
 0x27e   :  { %5399 = vmatprep.subr.mxu1 %v6610_v0 }
 0x27f   :  { %5400 = vmatpush3.msra.mxu1 %v3905_v41  ;;  %v3957_v41 = vld [vmem:[%s9408_s1 + $0x228] sm:$0xff] }
 0x280   :  { %5401 = vmatprep.subr.mxu1 %v6610_v0 }
 0x281   :  { %5402 = vmatpush3.msra.mxu1 %v3904_v42  ;;  %v3956_v42 = vld [vmem:[%s9408_s1 + $0x220] sm:$0xff] }
 0x282   :  { %5403 = vmatprep.subr.mxu1 %v6610_v0 }
 0x283   :  { %5404 = vmatpush3.msra.mxu1 %v3903_v43  ;;  %v3955_v43 = vld [vmem:[%s9408_s1 + $0x218] sm:$0xff] }
 0x284   :  { %5405 = vmatprep.subr.mxu1 %v6610_v0 }
 0x285   :  { %5406 = vmatpush3.msra.mxu1 %v3902_v44  ;;  %v3954_v44 = vld [vmem:[%s9408_s1 + $0x210] sm:$0xff] }
 0x286   :  { %5407 = vmatprep.subr.mxu1 %v6610_v0 }
 0x287   :  { %5408 = vmatpush3.msra.mxu1 %v3901_v45  ;;  %v3933_v45 = vld [vmem:[%s9411_s2 + $0x3] ss:$0 sm:$0xff] }
 0x288   :  { %5409 = vmatprep.subr.mxu1 %v6610_v0 }
 0x289   :  { %5410 = vmatpush3.msra.mxu1 %v3900_v50  ;;  %v3953_v50 = vld [vmem:[%s9408_s1 + $0x208] sm:$0xff] }
 0x28a   :  { %5411 = vmatprep.subr.mxu1 %v6610_v0 }
 0x28b   :  { %5412 = vmatpush3.msra.mxu1 %v3899_v51  ;;  %v3952_v51 = vld [vmem:[%s9408_s1 + $0x200] sm:$0xff] }
 0x28c   :  { %5413 = vmatprep.subr.mxu1 %v6610_v0 }
 0x28d   :  { %5414 = vmatpush3.msra.mxu1 %v3898_v52  ;;  %v3985_v52 = vld [vmem:[%s9409_s3 + $0x278] sm:$0xff] }
 0x28e   :  { %5453 = vmatprep.subr.mxu1 %v6610_v0 }
 0x32e   :  { %v395_v47 = vpop.f32.mrf.mxu1 }
 0x32f   :  { %v396_v48 = vadd.f32 %v3879_v46, %v395_v47 }
 0x330   :  { %v5347_v49 = vpop.f32.mrf.mxu1 }
 0x331   :  { %5381 = vmatmul.mubr.f32.vlgmr.msra.gmra.mxu0 %v396_v48 }
 0x332   :  { %5450 = vmatprep.mubr.msk.f32.mxu0 %vm6611_vm0, %v6610_v0  ;;  %5419 = vmatpush3.msra.mxu0 %v3931_v53  ;;  %v3984_v53 = vld [vmem:[%s9409_s3 + $0x270] sm:$0xff] }
 0x333   :  { %5420 = vmatprep.subr.mxu0 %v6610_v0 }
 0x334   :  { %5421 = vmatpush3.msra.mxu0 %v3930_v54  ;;  %v3983_v54 = vld [vmem:[%s9409_s3 + $0x268] sm:$0xff] }
 0x335   :  { %5422 = vmatprep.subr.mxu0 %v6610_v0 }
 0x336   :  { %5423 = vmatpush3.msra.mxu0 %v3929_v55  ;;  %v3982_v55 = vld [vmem:[%s9409_s3 + $0x260] sm:$0xff] }
 0x337   :  { %5424 = vmatprep.subr.mxu0 %v6610_v0 }
 0x338   :  { %5425 = vmatpush3.msra.mxu0 %v3928_v56  ;;  %v3981_v56 = vld [vmem:[%s9409_s3 + $0x258] sm:$0xff] }
 0x339   :  { %5426 = vmatprep.subr.mxu0 %v6610_v0 }
 0x33a   :  { %5427 = vmatpush3.msra.mxu0 %v3927_v57  ;;  %v3980_v57 = vld [vmem:[%s9409_s3 + $0x250] sm:$0xff] }
 0x33b   :  { %5428 = vmatprep.subr.mxu0 %v6610_v0 }
 0x33c   :  { %5429 = vmatpush3.msra.mxu0 %v3926_v58  ;;  %v3979_v58 = vld [vmem:[%s9409_s3 + $0x248] sm:$0xff] }
 0x33d   :  { %5430 = vmatprep.subr.mxu0 %v6610_v0 }
 0x33e   :  { %5431 = vmatpush3.msra.mxu0 %v3925_v59  ;;  %v3978_v59 = vld [vmem:[%s9409_s3 + $0x240] sm:$0xff] }
 0x33f   :  { %5432 = vmatprep.subr.mxu0 %v6610_v0 }
 0x340   :  { %5433 = vmatpush3.msra.mxu0 %v3924_v60  ;;  %v3977_v60 = vld [vmem:[%s9409_s3 + $0x238] sm:$0xff] }
 0x341   :  { %5434 = vmatprep.subr.mxu0 %v6610_v0 }
 0x342   :  { %5435 = vmatpush3.msra.mxu0 %v3923_v61  ;;  %v3976_v61 = vld [vmem:[%s9409_s3 + $0x230] sm:$0xff] }
 0x343   :  { %5436 = vmatprep.subr.mxu0 %v6610_v0 }
 0x344   :  { %5437 = vmatpush3.msra.mxu0 %v3922_v62  ;;  %v3975_v62 = vld [vmem:[%s9409_s3 + $0x228] sm:$0xff] }
 0x345   :  { %5438 = vmatprep.subr.mxu0 %v6610_v0 }
 0x346   :  { %5439 = vmatpush3.msra.mxu0 %v3921_v63  ;;  %v3974_v63 = vld [vmem:[%s9409_s3 + $0x220] sm:$0xff] }
 0x347   :  { %5440 = vmatprep.subr.mxu0 %v6610_v0 }
 0x348   :  { %5441 = vmatpush3.msra.mxu0 %v3920_v1  ;;  %v3973_v1 = vld [vmem:[%s9409_s3 + $0x218] sm:$0xff] }
 0x349   :  { %5442 = vmatprep.subr.mxu0 %v6610_v0 }
 0x34a   :  { %5443 = vmatpush3.msra.mxu0 %v3919_v2  ;;  %v3951_v2 = vld [vmem:[%s9412_s4 + $0x3] ss:$0 sm:$0xff] }
 0x34b   :  { %5444 = vmatprep.subr.mxu0 %v6610_v0 }
 0x34c   :  { %5445 = vmatpush3.msra.mxu0 %v3918_v3 }
 0x34d   :  { %5446 = vmatprep.subr.mxu0 %v6610_v0 }
 0x34e   :  { %5447 = vmatpush3.msra.mxu0 %v3917_v9  ;;  %v4003_v9 = vld [vmem:[%s9408_s1 + $0x2f8] sm:$0xff] }
 0x34f   :  { %5448 = vmatprep.subr.mxu0 %v6610_v0 }
 0x350   :  { %5449 = vmatpush3.msra.mxu0 %v3916_v10  ;;  %v4002_v10 = vld [vmem:[%s9408_s1 + $0x2f0] sm:$0xff] }
 0x351   :  { %5488 = vmatprep.subr.mxu0 %v6610_v0 }
 0x3f1   :  { %v490_v5 = vpop.f32.mrf.mxu0 }
 0x3f2   :  { %v491_v6 = vadd.f32 %v3897_v4, %v490_v5 }
 0x3f3   :  { %v5382_v7 = vpop.f32.mrf.mxu0 }
 0x3f4   :  { %v494_v8 = vmax.f32 %v491_v6, 0.0  ;;  %v3972_v6 = vld [vmem:[%s9409_s3 + $0x210] sm:$0xff]  ;;  %v3971_v7 = vld [vmem:[%s9409_s3 + $0x208] sm:$0xff] }
 0x3f6   :  { %5416 = vmatmul.mubr.f32.vlgmr.msra.gmra.mxu1 %v494_v8  ;;  %v3970_v8 = vld [vmem:[%s9409_s3 + $0x200] sm:$0xff] }
 0x3f7   :  { %5485 = vmatprep.mubr.msk.f32.mxu1 %vm6611_vm0, %v6610_v0  ;;  %5454 = vmatpush3.msra.mxu1 %v3949_v11  ;;  %v4001_v11 = vld [vmem:[%s9408_s1 + $0x2e8] sm:$0xff] }
 0x3f8   :  { %5455 = vmatprep.subr.mxu1 %v6610_v0 }
 0x3f9   :  { %5456 = vmatpush3.msra.mxu1 %v3948_v12  ;;  %v4000_v12 = vld [vmem:[%s9408_s1 + $0x2e0] sm:$0xff] }
 0x3fa   :  { %5457 = vmatprep.subr.mxu1 %v6610_v0 }
 0x3fb   :  { %5458 = vmatpush3.msra.mxu1 %v3947_v13  ;;  %v3999_v13 = vld [vmem:[%s9408_s1 + $0x2d8] sm:$0xff] }
 0x3fc   :  { %5459 = vmatprep.subr.mxu1 %v6610_v0 }
 0x3fd   :  { %5460 = vmatpush3.msra.mxu1 %v3946_v14  ;;  %v3998_v14 = vld [vmem:[%s9408_s1 + $0x2d0] sm:$0xff] }
 0x3fe   :  { %5461 = vmatprep.subr.mxu1 %v6610_v0 }
 0x3ff   :  { %5462 = vmatpush3.msra.mxu1 %v3945_v15  ;;  %v3997_v15 = vld [vmem:[%s9408_s1 + $0x2c8] sm:$0xff] }
 0x400   :  { %5463 = vmatprep.subr.mxu1 %v6610_v0 }
 0x401   :  { %5464 = vmatpush3.msra.mxu1 %v3944_v16  ;;  %v3996_v16 = vld [vmem:[%s9408_s1 + $0x2c0] sm:$0xff] }
 0x402   :  { %5465 = vmatprep.subr.mxu1 %v6610_v0 }
 0x403   :  { %5466 = vmatpush3.msra.mxu1 %v3943_v17  ;;  %v3995_v17 = vld [vmem:[%s9408_s1 + $0x2b8] sm:$0xff] }
 0x404   :  { %5467 = vmatprep.subr.mxu1 %v6610_v0 }
 0x405   :  { %5468 = vmatpush3.msra.mxu1 %v3942_v18  ;;  %v3994_v18 = vld [vmem:[%s9408_s1 + $0x2b0] sm:$0xff] }
 0x406   :  { %5469 = vmatprep.subr.mxu1 %v6610_v0 }
 0x407   :  { %5470 = vmatpush3.msra.mxu1 %v3941_v19  ;;  %v3993_v19 = vld [vmem:[%s9408_s1 + $0x2a8] sm:$0xff] }
 0x408   :  { %5471 = vmatprep.subr.mxu1 %v6610_v0 }
 0x409   :  { %5472 = vmatpush3.msra.mxu1 %v3940_v20  ;;  %v3992_v20 = vld [vmem:[%s9408_s1 + $0x2a0] sm:$0xff] }
 0x40a   :  { %5473 = vmatprep.subr.mxu1 %v6610_v0 }
 0x40b   :  { %5474 = vmatpush3.msra.mxu1 %v3939_v21  ;;  %v3991_v21 = vld [vmem:[%s9408_s1 + $0x298] sm:$0xff] }
 0x40c   :  { %5475 = vmatprep.subr.mxu1 %v6610_v0 }
 0x40d   :  { %5476 = vmatpush3.msra.mxu1 %v3938_v22  ;;  %v3990_v22 = vld [vmem:[%s9408_s1 + $0x290] sm:$0xff] }
 0x40e   :  { %5477 = vmatprep.subr.mxu1 %v6610_v0 }
 0x40f   :  { %5478 = vmatpush3.msra.mxu1 %v3937_v23  ;;  %v3969_v23 = vld [vmem:[%s9411_s2 + $0x4] ss:$0 sm:$0xff] }
 0x410   :  { %5479 = vmatprep.subr.mxu1 %v6610_v0 }
 0x411   :  { %5480 = vmatpush3.msra.mxu1 %v3936_v28  ;;  %v3989_v28 = vld [vmem:[%s9408_s1 + $0x288] sm:$0xff] }
 0x412   :  { %5481 = vmatprep.subr.mxu1 %v6610_v0 }
 0x413   :  { %5482 = vmatpush3.msra.mxu1 %v3935_v29  ;;  %v3988_v29 = vld [vmem:[%s9408_s1 + $0x280] sm:$0xff] }
 0x414   :  { %5483 = vmatprep.subr.mxu1 %v6610_v0 }
 0x415   :  { %5484 = vmatpush3.msra.mxu1 %v3934_v30  ;;  %v4021_v30 = vld [vmem:[%s9409_s3 + $0x2f8] sm:$0xff] }
 0x416   :  { %5523 = vmatprep.subr.mxu1 %v6610_v0 }
 0x4b6   :  { %v586_v25 = vpop.f32.mrf.mxu1 }
 0x4b7   :  { %v587_v26 = vadd.f32 %v3915_v24, %v586_v25 }
 0x4b8   :  { %v5417_v27 = vpop.f32.mrf.mxu1 }
 0x4b9   :  { %5451 = vmatmul.mubr.f32.vlgmr.msra.gmra.mxu0 %v587_v26 }
 0x4ba   :  { %5520 = vmatprep.mubr.msk.f32.mxu0 %vm6611_vm0, %v6610_v0  ;;  %5489 = vmatpush3.msra.mxu0 %v3967_v31  ;;  %v4020_v31 = vld [vmem:[%s9409_s3 + $0x2f0] sm:$0xff] }
 0x4bb   :  { %5490 = vmatprep.subr.mxu0 %v6610_v0 }
 0x4bc   :  { %5491 = vmatpush3.msra.mxu0 %v3966_v32  ;;  %v4019_v32 = vld [vmem:[%s9409_s3 + $0x2e8] sm:$0xff] }
 0x4bd   :  { %5492 = vmatprep.subr.mxu0 %v6610_v0 }
 0x4be   :  { %5493 = vmatpush3.msra.mxu0 %v3965_v33  ;;  %v4018_v33 = vld [vmem:[%s9409_s3 + $0x2e0] sm:$0xff] }
 0x4bf   :  { %5494 = vmatprep.subr.mxu0 %v6610_v0 }
 0x4c0   :  { %5495 = vmatpush3.msra.mxu0 %v3964_v34  ;;  %v4017_v34 = vld [vmem:[%s9409_s3 + $0x2d8] sm:$0xff] }
 0x4c1   :  { %5496 = vmatprep.subr.mxu0 %v6610_v0 }
 0x4c2   :  { %5497 = vmatpush3.msra.mxu0 %v3963_v35  ;;  %v4016_v35 = vld [vmem:[%s9409_s3 + $0x2d0] sm:$0xff] }
 0x4c3   :  { %5498 = vmatprep.subr.mxu0 %v6610_v0 }
 0x4c4   :  { %5499 = vmatpush3.msra.mxu0 %v3962_v36  ;;  %v4015_v36 = vld [vmem:[%s9409_s3 + $0x2c8] sm:$0xff] }
 0x4c5   :  { %5500 = vmatprep.subr.mxu0 %v6610_v0 }
 0x4c6   :  { %5501 = vmatpush3.msra.mxu0 %v3961_v37  ;;  %v4014_v37 = vld [vmem:[%s9409_s3 + $0x2c0] sm:$0xff] }
 0x4c7   :  { %5502 = vmatprep.subr.mxu0 %v6610_v0 }
 0x4c8   :  { %5503 = vmatpush3.msra.mxu0 %v3960_v38  ;;  %v4013_v38 = vld [vmem:[%s9409_s3 + $0x2b8] sm:$0xff] }
 0x4c9   :  { %5504 = vmatprep.subr.mxu0 %v6610_v0 }
 0x4ca   :  { %5505 = vmatpush3.msra.mxu0 %v3959_v39  ;;  %v4012_v39 = vld [vmem:[%s9409_s3 + $0x2b0] sm:$0xff] }
 0x4cb   :  { %5506 = vmatprep.subr.mxu0 %v6610_v0 }
 0x4cc   :  { %5507 = vmatpush3.msra.mxu0 %v3958_v40  ;;  %v4011_v40 = vld [vmem:[%s9409_s3 + $0x2a8] sm:$0xff] }
 0x4cd   :  { %5508 = vmatprep.subr.mxu0 %v6610_v0 }
 0x4ce   :  { %5509 = vmatpush3.msra.mxu0 %v3957_v41  ;;  %v4010_v41 = vld [vmem:[%s9409_s3 + $0x2a0] sm:$0xff] }
 0x4cf   :  { %5510 = vmatprep.subr.mxu0 %v6610_v0 }
 0x4d0   :  { %5511 = vmatpush3.msra.mxu0 %v3956_v42  ;;  %v4009_v42 = vld [vmem:[%s9409_s3 + $0x298] sm:$0xff] }
 0x4d1   :  { %5512 = vmatprep.subr.mxu0 %v6610_v0 }
 0x4d2   :  { %5513 = vmatpush3.msra.mxu0 %v3955_v43  ;;  %v3987_v43 = vld [vmem:[%s9412_s4 + $0x4] ss:$0 sm:$0xff] }
 0x4d3   :  { %5514 = vmatprep.subr.mxu0 %v6610_v0 }
 0x4d4   :  { %5515 = vmatpush3.msra.mxu0 %v3954_v44 }
 0x4d5   :  { %5516 = vmatprep.subr.mxu0 %v6610_v0 }
 0x4d6   :  { %5517 = vmatpush3.msra.mxu0 %v3953_v50  ;;  %v4039_v50 = vld [vmem:[%s9408_s1 + $0x378] sm:$0xff] }
 0x4d7   :  { %5518 = vmatprep.subr.mxu0 %v6610_v0 }
 0x4d8   :  { %5519 = vmatpush3.msra.mxu0 %v3952_v51  ;;  %v4038_v51 = vld [vmem:[%s9408_s1 + $0x370] sm:$0xff] }
 0x4d9   :  { %5558 = vmatprep.subr.mxu0 %v6610_v0 }
 0x579   :  { %v681_v46 = vpop.f32.mrf.mxu0 }
 0x57a   :  { %v682_v47 = vadd.f32 %v3933_v45, %v681_v46 }
 0x57b   :  { %v5452_v48 = vpop.f32.mrf.mxu0 }
 0x57c   :  { %v685_v49 = vmax.f32 %v682_v47, 0.0  ;;  %v4008_v47 = vld [vmem:[%s9409_s3 + $0x290] sm:$0xff]  ;;  %v4007_v48 = vld [vmem:[%s9409_s3 + $0x288] sm:$0xff] }
 0x57e   :  { %5486 = vmatmul.mubr.f32.vlgmr.msra.gmra.mxu1 %v685_v49  ;;  %v4006_v49 = vld [vmem:[%s9409_s3 + $0x280] sm:$0xff] }
 0x57f   :  { %5555 = vmatprep.mubr.msk.f32.mxu1 %vm6611_vm0, %v6610_v0  ;;  %5524 = vmatpush3.msra.mxu1 %v3985_v52  ;;  %v4037_v52 = vld [vmem:[%s9408_s1 + $0x368] sm:$0xff] }
 0x580   :  { %5525 = vmatprep.subr.mxu1 %v6610_v0 }
 0x581   :  { %5526 = vmatpush3.msra.mxu1 %v3984_v53  ;;  %v4036_v53 = vld [vmem:[%s9408_s1 + $0x360] sm:$0xff] }
 0x582   :  { %5527 = vmatprep.subr.mxu1 %v6610_v0 }
 0x583   :  { %5528 = vmatpush3.msra.mxu1 %v3983_v54  ;;  %v4035_v54 = vld [vmem:[%s9408_s1 + $0x358] sm:$0xff] }
 0x584   :  { %5529 = vmatprep.subr.mxu1 %v6610_v0 }
 0x585   :  { %5530 = vmatpush3.msra.mxu1 %v3982_v55  ;;  %v4034_v55 = vld [vmem:[%s9408_s1 + $0x350] sm:$0xff] }
 0x586   :  { %5531 = vmatprep.subr.mxu1 %v6610_v0 }
 0x587   :  { %5532 = vmatpush3.msra.mxu1 %v3981_v56  ;;  %v4033_v56 = vld [vmem:[%s9408_s1 + $0x348] sm:$0xff] }
 0x588   :  { %5533 = vmatprep.subr.mxu1 %v6610_v0 }
 0x589   :  { %5534 = vmatpush3.msra.mxu1 %v3980_v57  ;;  %v4032_v57 = vld [vmem:[%s9408_s1 + $0x340] sm:$0xff] }
 0x58a   :  { %5535 = vmatprep.subr.mxu1 %v6610_v0 }
 0x58b   :  { %5536 = vmatpush3.msra.mxu1 %v3979_v58  ;;  %v4031_v58 = vld [vmem:[%s9408_s1 + $0x338] sm:$0xff] }
 0x58c   :  { %5537 = vmatprep.subr.mxu1 %v6610_v0 }
 0x58d   :  { %5538 = vmatpush3.msra.mxu1 %v3978_v59  ;;  %v4030_v59 = vld [vmem:[%s9408_s1 + $0x330] sm:$0xff] }
 0x58e   :  { %5539 = vmatprep.subr.mxu1 %v6610_v0 }
 0x58f   :  { %5540 = vmatpush3.msra.mxu1 %v3977_v60  ;;  %v4029_v60 = vld [vmem:[%s9408_s1 + $0x328] sm:$0xff] }
 0x590   :  { %5541 = vmatprep.subr.mxu1 %v6610_v0 }
 0x591   :  { %5542 = vmatpush3.msra.mxu1 %v3976_v61  ;;  %v4028_v61 = vld [vmem:[%s9408_s1 + $0x320] sm:$0xff] }
 0x592   :  { %5543 = vmatprep.subr.mxu1 %v6610_v0 }
 0x593   :  { %5544 = vmatpush3.msra.mxu1 %v3975_v62  ;;  %v4027_v62 = vld [vmem:[%s9408_s1 + $0x318] sm:$0xff] }
 0x594   :  { %5545 = vmatprep.subr.mxu1 %v6610_v0 }
 0x595   :  { %5546 = vmatpush3.msra.mxu1 %v3974_v63  ;;  %v4026_v63 = vld [vmem:[%s9408_s1 + $0x310] sm:$0xff] }
 0x596   :  { %5547 = vmatprep.subr.mxu1 %v6610_v0 }
 0x597   :  { %5548 = vmatpush3.msra.mxu1 %v3973_v1  ;;  %v4005_v1 = vld [vmem:[%s9411_s2 + $0x5] ss:$0 sm:$0xff] }
 0x598   :  { %5549 = vmatprep.subr.mxu1 %v6610_v0 }
 0x599   :  { %5550 = vmatpush3.msra.mxu1 %v3972_v6  ;;  %v4025_v6 = vld [vmem:[%s9408_s1 + $0x308] sm:$0xff] }
 0x59a   :  { %5551 = vmatprep.subr.mxu1 %v6610_v0 }
 0x59b   :  { %5552 = vmatpush3.msra.mxu1 %v3971_v7  ;;  %v4024_v7 = vld [vmem:[%s9408_s1 + $0x300] sm:$0xff] }
 0x59c   :  { %5553 = vmatprep.subr.mxu1 %v6610_v0 }
 0x59d   :  { %5554 = vmatpush3.msra.mxu1 %v3970_v8  ;;  %v4057_v8 = vld [vmem:[%s9409_s3 + $0x378] sm:$0xff] }
 0x59e   :  { %5593 = vmatprep.subr.mxu1 %v6610_v0 }
 0x63e   :  { %v777_v3 = vpop.f32.mrf.mxu1 }
 0x63f   :  { %v778_v4 = vadd.f32 %v3951_v2, %v777_v3 }
 0x640   :  { %v5487_v5 = vpop.f32.mrf.mxu1 }
 0x641   :  { %5521 = vmatmul.mubr.f32.vlgmr.msra.gmra.mxu0 %v778_v4 }
 0x642   :  { %5590 = vmatprep.mubr.msk.f32.mxu0 %vm6611_vm0, %v6610_v0  ;;  %5559 = vmatpush3.msra.mxu0 %v4003_v9  ;;  %v4056_v9 = vld [vmem:[%s9409_s3 + $0x370] sm:$0xff] }
 0x643   :  { %5560 = vmatprep.subr.mxu0 %v6610_v0 }
 0x644   :  { %5561 = vmatpush3.msra.mxu0 %v4002_v10  ;;  %v4055_v10 = vld [vmem:[%s9409_s3 + $0x368] sm:$0xff] }
 0x645   :  { %5562 = vmatprep.subr.mxu0 %v6610_v0 }
 0x646   :  { %5563 = vmatpush3.msra.mxu0 %v4001_v11  ;;  %v4054_v11 = vld [vmem:[%s9409_s3 + $0x360] sm:$0xff] }
 0x647   :  { %5564 = vmatprep.subr.mxu0 %v6610_v0 }
 0x648   :  { %5565 = vmatpush3.msra.mxu0 %v4000_v12  ;;  %v4053_v12 = vld [vmem:[%s9409_s3 + $0x358] sm:$0xff] }
 0x649   :  { %5566 = vmatprep.subr.mxu0 %v6610_v0 }
 0x64a   :  { %5567 = vmatpush3.msra.mxu0 %v3999_v13  ;;  %v4052_v13 = vld [vmem:[%s9409_s3 + $0x350] sm:$0xff] }
 0x64b   :  { %5568 = vmatprep.subr.mxu0 %v6610_v0 }
 0x64c   :  { %5569 = vmatpush3.msra.mxu0 %v3998_v14  ;;  %v4051_v14 = vld [vmem:[%s9409_s3 + $0x348] sm:$0xff] }
 0x64d   :  { %5570 = vmatprep.subr.mxu0 %v6610_v0 }
 0x64e   :  { %5571 = vmatpush3.msra.mxu0 %v3997_v15  ;;  %v4050_v15 = vld [vmem:[%s9409_s3 + $0x340] sm:$0xff] }
 0x64f   :  { %5572 = vmatprep.subr.mxu0 %v6610_v0 }
 0x650   :  { %5573 = vmatpush3.msra.mxu0 %v3996_v16  ;;  %v4049_v16 = vld [vmem:[%s9409_s3 + $0x338] sm:$0xff] }
 0x651   :  { %5574 = vmatprep.subr.mxu0 %v6610_v0 }
 0x652   :  { %5575 = vmatpush3.msra.mxu0 %v3995_v17  ;;  %v4048_v17 = vld [vmem:[%s9409_s3 + $0x330] sm:$0xff] }
 0x653   :  { %5576 = vmatprep.subr.mxu0 %v6610_v0 }
 0x654   :  { %5577 = vmatpush3.msra.mxu0 %v3994_v18  ;;  %v4047_v18 = vld [vmem:[%s9409_s3 + $0x328] sm:$0xff] }
 0x655   :  { %5578 = vmatprep.subr.mxu0 %v6610_v0 }
 0x656   :  { %5579 = vmatpush3.msra.mxu0 %v3993_v19  ;;  %v4046_v19 = vld [vmem:[%s9409_s3 + $0x320] sm:$0xff] }
 0x657   :  { %5580 = vmatprep.subr.mxu0 %v6610_v0 }
 0x658   :  { %5581 = vmatpush3.msra.mxu0 %v3992_v20  ;;  %v4045_v20 = vld [vmem:[%s9409_s3 + $0x318] sm:$0xff] }
 0x659   :  { %5582 = vmatprep.subr.mxu0 %v6610_v0 }
 0x65a   :  { %5583 = vmatpush3.msra.mxu0 %v3991_v21  ;;  %v4023_v21 = vld [vmem:[%s9412_s4 + $0x5] ss:$0 sm:$0xff] }
 0x65b   :  { %5584 = vmatprep.subr.mxu0 %v6610_v0 }
 0x65c   :  { %5585 = vmatpush3.msra.mxu0 %v3990_v22 }
 0x65d   :  { %5586 = vmatprep.subr.mxu0 %v6610_v0 }
 0x65e   :  { %5587 = vmatpush3.msra.mxu0 %v3989_v28  ;;  %v4075_v28 = vld [vmem:[%s9408_s1 + $0x3f8] sm:$0xff] }
 0x65f   :  { %5588 = vmatprep.subr.mxu0 %v6610_v0 }
 0x660   :  { %5589 = vmatpush3.msra.mxu0 %v3988_v29  ;;  %v4074_v29 = vld [vmem:[%s9408_s1 + $0x3f0] sm:$0xff] }
 0x661   :  { %5628 = vmatprep.subr.mxu0 %v6610_v0 }
 0x701   :  { %v872_v24 = vpop.f32.mrf.mxu0 }
 0x702   :  { %v873_v25 = vadd.f32 %v3969_v23, %v872_v24 }
 0x703   :  { %v5522_v26 = vpop.f32.mrf.mxu0 }
 0x704   :  { %v876_v27 = vmax.f32 %v873_v25, 0.0  ;;  %v4044_v25 = vld [vmem:[%s9409_s3 + $0x310] sm:$0xff]  ;;  %v4043_v26 = vld [vmem:[%s9409_s3 + $0x308] sm:$0xff] }
 0x706   :  { %5556 = vmatmul.mubr.f32.vlgmr.msra.gmra.mxu1 %v876_v27  ;;  %v4042_v27 = vld [vmem:[%s9409_s3 + $0x300] sm:$0xff] }
 0x707   :  { %5625 = vmatprep.mubr.msk.f32.mxu1 %vm6611_vm0, %v6610_v0  ;;  %5594 = vmatpush3.msra.mxu1 %v4021_v30  ;;  %v4073_v30 = vld [vmem:[%s9408_s1 + $0x3e8] sm:$0xff] }
 0x708   :  { %5595 = vmatprep.subr.mxu1 %v6610_v0 }
 0x709   :  { %5596 = vmatpush3.msra.mxu1 %v4020_v31  ;;  %v4072_v31 = vld [vmem:[%s9408_s1 + $0x3e0] sm:$0xff] }
 0x70a   :  { %5597 = vmatprep.subr.mxu1 %v6610_v0 }
 0x70b   :  { %5598 = vmatpush3.msra.mxu1 %v4019_v32  ;;  %v4071_v32 = vld [vmem:[%s9408_s1 + $0x3d8] sm:$0xff] }
 0x70c   :  { %5599 = vmatprep.subr.mxu1 %v6610_v0 }
 0x70d   :  { %5600 = vmatpush3.msra.mxu1 %v4018_v33  ;;  %v4070_v33 = vld [vmem:[%s9408_s1 + $0x3d0] sm:$0xff] }
 0x70e   :  { %5601 = vmatprep.subr.mxu1 %v6610_v0 }
 0x70f   :  { %5602 = vmatpush3.msra.mxu1 %v4017_v34  ;;  %v4069_v34 = vld [vmem:[%s9408_s1 + $0x3c8] sm:$0xff] }
 0x710   :  { %5603 = vmatprep.subr.mxu1 %v6610_v0 }
 0x711   :  { %5604 = vmatpush3.msra.mxu1 %v4016_v35  ;;  %v4068_v35 = vld [vmem:[%s9408_s1 + $0x3c0] sm:$0xff] }
 0x712   :  { %5605 = vmatprep.subr.mxu1 %v6610_v0 }
 0x713   :  { %5606 = vmatpush3.msra.mxu1 %v4015_v36  ;;  %v4067_v36 = vld [vmem:[%s9408_s1 + $0x3b8] sm:$0xff] }
 0x714   :  { %5607 = vmatprep.subr.mxu1 %v6610_v0 }
 0x715   :  { %5608 = vmatpush3.msra.mxu1 %v4014_v37  ;;  %v4066_v37 = vld [vmem:[%s9408_s1 + $0x3b0] sm:$0xff] }
 0x716   :  { %5609 = vmatprep.subr.mxu1 %v6610_v0 }
 0x717   :  { %5610 = vmatpush3.msra.mxu1 %v4013_v38  ;;  %v4065_v38 = vld [vmem:[%s9408_s1 + $0x3a8] sm:$0xff] }
 0x718   :  { %5611 = vmatprep.subr.mxu1 %v6610_v0 }
 0x719   :  { %5612 = vmatpush3.msra.mxu1 %v4012_v39  ;;  %v4064_v39 = vld [vmem:[%s9408_s1 + $0x3a0] sm:$0xff] }
 0x71a   :  { %5613 = vmatprep.subr.mxu1 %v6610_v0 }
 0x71b   :  { %5614 = vmatpush3.msra.mxu1 %v4011_v40  ;;  %v4063_v40 = vld [vmem:[%s9408_s1 + $0x398] sm:$0xff] }
 0x71c   :  { %5615 = vmatprep.subr.mxu1 %v6610_v0 }
 0x71d   :  { %5616 = vmatpush3.msra.mxu1 %v4010_v41  ;;  %v4062_v41 = vld [vmem:[%s9408_s1 + $0x390] sm:$0xff] }
 0x71e   :  { %5617 = vmatprep.subr.mxu1 %v6610_v0 }
 0x71f   :  { %5618 = vmatpush3.msra.mxu1 %v4009_v42  ;;  %v4041_v42 = vld [vmem:[%s9411_s2 + $0x6] ss:$0 sm:$0xff] }
 0x720   :  { %5619 = vmatprep.subr.mxu1 %v6610_v0 }
 0x721   :  { %5620 = vmatpush3.msra.mxu1 %v4008_v47  ;;  %v4061_v47 = vld [vmem:[%s9408_s1 + $0x388] sm:$0xff] }
 0x722   :  { %5621 = vmatprep.subr.mxu1 %v6610_v0 }
 0x723   :  { %5622 = vmatpush3.msra.mxu1 %v4007_v48  ;;  %v4060_v48 = vld [vmem:[%s9408_s1 + $0x380] sm:$0xff] }
 0x724   :  { %5623 = vmatprep.subr.mxu1 %v6610_v0 }
 0x725   :  { %5624 = vmatpush3.msra.mxu1 %v4006_v49  ;;  %v4093_v49 = vld [vmem:[%s9409_s3 + $0x3f8] sm:$0xff] }
 0x726   :  { %5663 = vmatprep.subr.mxu1 %v6610_v0 }
 0x7c6   :  { %v968_v44 = vpop.f32.mrf.mxu1 }
 0x7c7   :  { %v969_v45 = vadd.f32 %v3987_v43, %v968_v44 }
 0x7c8   :  { %v5557_v46 = vpop.f32.mrf.mxu1 }
 0x7c9   :  { %5591 = vmatmul.mubr.f32.vlgmr.msra.gmra.mxu0 %v969_v45 }
 0x7ca   :  { %5660 = vmatprep.mubr.msk.f32.mxu0 %vm6611_vm0, %v6610_v0  ;;  %5629 = vmatpush3.msra.mxu0 %v4039_v50  ;;  %v4092_v50 = vld [vmem:[%s9409_s3 + $0x3f0] sm:$0xff] }
 0x7cb   :  { %5630 = vmatprep.subr.mxu0 %v6610_v0 }
 0x7cc   :  { %5631 = vmatpush3.msra.mxu0 %v4038_v51  ;;  %v4091_v51 = vld [vmem:[%s9409_s3 + $0x3e8] sm:$0xff] }
 0x7cd   :  { %5632 = vmatprep.subr.mxu0 %v6610_v0 }
 0x7ce   :  { %5633 = vmatpush3.msra.mxu0 %v4037_v52  ;;  %v4090_v52 = vld [vmem:[%s9409_s3 + $0x3e0] sm:$0xff] }
 0x7cf   :  { %5634 = vmatprep.subr.mxu0 %v6610_v0 }
 0x7d0   :  { %5635 = vmatpush3.msra.mxu0 %v4036_v53  ;;  %v4089_v53 = vld [vmem:[%s9409_s3 + $0x3d8] sm:$0xff] }
 0x7d1   :  { %5636 = vmatprep.subr.mxu0 %v6610_v0 }
 0x7d2   :  { %5637 = vmatpush3.msra.mxu0 %v4035_v54  ;;  %v4088_v54 = vld [vmem:[%s9409_s3 + $0x3d0] sm:$0xff] }
 0x7d3   :  { %5638 = vmatprep.subr.mxu0 %v6610_v0 }
 0x7d4   :  { %5639 = vmatpush3.msra.mxu0 %v4034_v55  ;;  %v4087_v55 = vld [vmem:[%s9409_s3 + $0x3c8] sm:$0xff] }
 0x7d5   :  { %5640 = vmatprep.subr.mxu0 %v6610_v0 }
 0x7d6   :  { %5641 = vmatpush3.msra.mxu0 %v4033_v56  ;;  %v4086_v56 = vld [vmem:[%s9409_s3 + $0x3c0] sm:$0xff] }
 0x7d7   :  { %5642 = vmatprep.subr.mxu0 %v6610_v0 }
 0x7d8   :  { %5643 = vmatpush3.msra.mxu0 %v4032_v57  ;;  %v4085_v57 = vld [vmem:[%s9409_s3 + $0x3b8] sm:$0xff] }
 0x7d9   :  { %5644 = vmatprep.subr.mxu0 %v6610_v0 }
 0x7da   :  { %5645 = vmatpush3.msra.mxu0 %v4031_v58  ;;  %v4084_v58 = vld [vmem:[%s9409_s3 + $0x3b0] sm:$0xff] }
 0x7db   :  { %5646 = vmatprep.subr.mxu0 %v6610_v0 }
 0x7dc   :  { %5647 = vmatpush3.msra.mxu0 %v4030_v59  ;;  %v4083_v59 = vld [vmem:[%s9409_s3 + $0x3a8] sm:$0xff] }
 0x7dd   :  { %5648 = vmatprep.subr.mxu0 %v6610_v0 }
 0x7de   :  { %5649 = vmatpush3.msra.mxu0 %v4029_v60  ;;  %v4082_v60 = vld [vmem:[%s9409_s3 + $0x3a0] sm:$0xff] }
 0x7df   :  { %5650 = vmatprep.subr.mxu0 %v6610_v0 }
 0x7e0   :  { %5651 = vmatpush3.msra.mxu0 %v4028_v61  ;;  %v4081_v61 = vld [vmem:[%s9409_s3 + $0x398] sm:$0xff] }
 0x7e1   :  { %5652 = vmatprep.subr.mxu0 %v6610_v0 }
 0x7e2   :  { %5653 = vmatpush3.msra.mxu0 %v4027_v62  ;;  %v4059_v62 = vld [vmem:[%s9412_s4 + $0x6] ss:$0 sm:$0xff] }
 0x7e3   :  { %5654 = vmatprep.subr.mxu0 %v6610_v0 }
 0x7e4   :  { %5655 = vmatpush3.msra.mxu0 %v4026_v63 }
 0x7e5   :  { %5656 = vmatprep.subr.mxu0 %v6610_v0 }
 0x7e6   :  { %5657 = vmatpush3.msra.mxu0 %v4025_v6  ;;  %v4111_v6 = vld [vmem:[%s9408_s1 + $0x478] sm:$0xff] }
 0x7e7   :  { %5658 = vmatprep.subr.mxu0 %v6610_v0 }
 0x7e8   :  { %5659 = vmatpush3.msra.mxu0 %v4024_v7  ;;  %v4110_v7 = vld [vmem:[%s9408_s1 + $0x470] sm:$0xff] }
 0x7e9   :  { %5698 = vmatprep.subr.mxu0 %v6610_v0 }
 0x889   :  { %v1063_v2 = vpop.f32.mrf.mxu0 }
 0x88a   :  { %v1064_v3 = vadd.f32 %v4005_v1, %v1063_v2 }
 0x88b   :  { %v5592_v4 = vpop.f32.mrf.mxu0 }
 0x88c   :  { %v1067_v5 = vmax.f32 %v1064_v3, 0.0  ;;  %v4080_v3 = vld [vmem:[%s9409_s3 + $0x390] sm:$0xff]  ;;  %v4079_v4 = vld [vmem:[%s9409_s3 + $0x388] sm:$0xff] }
 0x88e   :  { %5626 = vmatmul.mubr.f32.vlgmr.msra.gmra.mxu1 %v1067_v5  ;;  %v4078_v5 = vld [vmem:[%s9409_s3 + $0x380] sm:$0xff] }
 0x88f   :  { %5695 = vmatprep.mubr.msk.f32.mxu1 %vm6611_vm0, %v6610_v0  ;;  %5664 = vmatpush3.msra.mxu1 %v4057_v8  ;;  %v4109_v8 = vld [vmem:[%s9408_s1 + $0x468] sm:$0xff] }
 0x890   :  { %5665 = vmatprep.subr.mxu1 %v6610_v0 }
 0x891   :  { %5666 = vmatpush3.msra.mxu1 %v4056_v9  ;;  %v4108_v9 = vld [vmem:[%s9408_s1 + $0x460] sm:$0xff] }
 0x892   :  { %5667 = vmatprep.subr.mxu1 %v6610_v0 }
 0x893   :  { %5668 = vmatpush3.msra.mxu1 %v4055_v10  ;;  %v4107_v10 = vld [vmem:[%s9408_s1 + $0x458] sm:$0xff] }
 0x894   :  { %5669 = vmatprep.subr.mxu1 %v6610_v0 }
 0x895   :  { %5670 = vmatpush3.msra.mxu1 %v4054_v11  ;;  %v4106_v11 = vld [vmem:[%s9408_s1 + $0x450] sm:$0xff] }
 0x896   :  { %5671 = vmatprep.subr.mxu1 %v6610_v0 }
 0x897   :  { %5672 = vmatpush3.msra.mxu1 %v4053_v12  ;;  %v4105_v12 = vld [vmem:[%s9408_s1 + $0x448] sm:$0xff] }
 0x898   :  { %5673 = vmatprep.subr.mxu1 %v6610_v0 }
 0x899   :  { %5674 = vmatpush3.msra.mxu1 %v4052_v13  ;;  %v4104_v13 = vld [vmem:[%s9408_s1 + $0x440] sm:$0xff] }
 0x89a   :  { %5675 = vmatprep.subr.mxu1 %v6610_v0 }
 0x89b   :  { %5676 = vmatpush3.msra.mxu1 %v4051_v14  ;;  %v4103_v14 = vld [vmem:[%s9408_s1 + $0x438] sm:$0xff] }
 0x89c   :  { %5677 = vmatprep.subr.mxu1 %v6610_v0 }
 0x89d   :  { %5678 = vmatpush3.msra.mxu1 %v4050_v15  ;;  %v4102_v15 = vld [vmem:[%s9408_s1 + $0x430] sm:$0xff] }
 0x89e   :  { %5679 = vmatprep.subr.mxu1 %v6610_v0 }
 0x89f   :  { %5680 = vmatpush3.msra.mxu1 %v4049_v16  ;;  %v4101_v16 = vld [vmem:[%s9408_s1 + $0x428] sm:$0xff] }
 0x8a0   :  { %5681 = vmatprep.subr.mxu1 %v6610_v0 }
 0x8a1   :  { %5682 = vmatpush3.msra.mxu1 %v4048_v17  ;;  %v4100_v17 = vld [vmem:[%s9408_s1 + $0x420] sm:$0xff] }
 0x8a2   :  { %5683 = vmatprep.subr.mxu1 %v6610_v0 }
 0x8a3   :  { %5684 = vmatpush3.msra.mxu1 %v4047_v18  ;;  %v4099_v18 = vld [vmem:[%s9408_s1 + $0x418] sm:$0xff] }
 0x8a4   :  { %5685 = vmatprep.subr.mxu1 %v6610_v0 }
 0x8a5   :  { %5686 = vmatpush3.msra.mxu1 %v4046_v19  ;;  %v4098_v19 = vld [vmem:[%s9408_s1 + $0x410] sm:$0xff] }
 0x8a6   :  { %5687 = vmatprep.subr.mxu1 %v6610_v0 }
 0x8a7   :  { %5688 = vmatpush3.msra.mxu1 %v4045_v20  ;;  %v4077_v20 = vld [vmem:[%s9411_s2 + $0x7] ss:$0 sm:$0xff] }
 0x8a8   :  { %5689 = vmatprep.subr.mxu1 %v6610_v0 }
 0x8a9   :  { %5690 = vmatpush3.msra.mxu1 %v4044_v25  ;;  %v4097_v25 = vld [vmem:[%s9408_s1 + $0x408] sm:$0xff] }
 0x8aa   :  { %5691 = vmatprep.subr.mxu1 %v6610_v0 }
 0x8ab   :  { %5692 = vmatpush3.msra.mxu1 %v4043_v26  ;;  %v4096_v26 = vld [vmem:[%s9408_s1 + $0x400] sm:$0xff] }
 0x8ac   :  { %5693 = vmatprep.subr.mxu1 %v6610_v0 }
 0x8ad   :  { %5694 = vmatpush3.msra.mxu1 %v4042_v27  ;;  %v4129_v27 = vld [vmem:[%s9409_s3 + $0x478] sm:$0xff] }
 0x8ae   :  { %5733 = vmatprep.subr.mxu1 %v6610_v0 }
 0x94e   :  { %v1159_v22 = vpop.f32.mrf.mxu1 }
 0x94f   :  { %v1160_v23 = vadd.f32 %v4023_v21, %v1159_v22 }
 0x950   :  { %v5627_v24 = vpop.f32.mrf.mxu1 }
 0x951   :  { %5661 = vmatmul.mubr.f32.vlgmr.msra.gmra.mxu0 %v1160_v23 }
 0x952   :  { %5730 = vmatprep.mubr.msk.f32.mxu0 %vm6611_vm0, %v6610_v0  ;;  %5699 = vmatpush3.msra.mxu0 %v4075_v28  ;;  %v4128_v28 = vld [vmem:[%s9409_s3 + $0x470] sm:$0xff] }
 0x953   :  { %5700 = vmatprep.subr.mxu0 %v6610_v0 }
 0x954   :  { %5701 = vmatpush3.msra.mxu0 %v4074_v29  ;;  %v4127_v29 = vld [vmem:[%s9409_s3 + $0x468] sm:$0xff] }
 0x955   :  { %5702 = vmatprep.subr.mxu0 %v6610_v0 }
 0x956   :  { %5703 = vmatpush3.msra.mxu0 %v4073_v30  ;;  %v4126_v30 = vld [vmem:[%s9409_s3 + $0x460] sm:$0xff] }
 0x957   :  { %5704 = vmatprep.subr.mxu0 %v6610_v0 }
 0x958   :  { %5705 = vmatpush3.msra.mxu0 %v4072_v31  ;;  %v4125_v31 = vld [vmem:[%s9409_s3 + $0x458] sm:$0xff] }
 0x959   :  { %5706 = vmatprep.subr.mxu0 %v6610_v0 }
 0x95a   :  { %5707 = vmatpush3.msra.mxu0 %v4071_v32  ;;  %v4124_v32 = vld [vmem:[%s9409_s3 + $0x450] sm:$0xff] }
 0x95b   :  { %5708 = vmatprep.subr.mxu0 %v6610_v0 }
 0x95c   :  { %5709 = vmatpush3.msra.mxu0 %v4070_v33  ;;  %v4123_v33 = vld [vmem:[%s9409_s3 + $0x448] sm:$0xff] }
 0x95d   :  { %5710 = vmatprep.subr.mxu0 %v6610_v0 }
 0x95e   :  { %5711 = vmatpush3.msra.mxu0 %v4069_v34  ;;  %v4122_v34 = vld [vmem:[%s9409_s3 + $0x440] sm:$0xff] }
 0x95f   :  { %5712 = vmatprep.subr.mxu0 %v6610_v0 }
 0x960   :  { %5713 = vmatpush3.msra.mxu0 %v4068_v35  ;;  %v4121_v35 = vld [vmem:[%s9409_s3 + $0x438] sm:$0xff] }
 0x961   :  { %5714 = vmatprep.subr.mxu0 %v6610_v0 }
 0x962   :  { %5715 = vmatpush3.msra.mxu0 %v4067_v36  ;;  %v4120_v36 = vld [vmem:[%s9409_s3 + $0x430] sm:$0xff] }
 0x963   :  { %5716 = vmatprep.subr.mxu0 %v6610_v0 }
 0x964   :  { %5717 = vmatpush3.msra.mxu0 %v4066_v37  ;;  %v4119_v37 = vld [vmem:[%s9409_s3 + $0x428] sm:$0xff] }
 0x965   :  { %5718 = vmatprep.subr.mxu0 %v6610_v0 }
 0x966   :  { %5719 = vmatpush3.msra.mxu0 %v4065_v38  ;;  %v4118_v38 = vld [vmem:[%s9409_s3 + $0x420] sm:$0xff] }
 0x967   :  { %5720 = vmatprep.subr.mxu0 %v6610_v0 }
 0x968   :  { %5721 = vmatpush3.msra.mxu0 %v4064_v39  ;;  %v4117_v39 = vld [vmem:[%s9409_s3 + $0x418] sm:$0xff] }
 0x969   :  { %5722 = vmatprep.subr.mxu0 %v6610_v0 }
 0x96a   :  { %5723 = vmatpush3.msra.mxu0 %v4063_v40  ;;  %v4095_v40 = vld [vmem:[%s9412_s4 + $0x7] ss:$0 sm:$0xff] }
 0x96b   :  { %5724 = vmatprep.subr.mxu0 %v6610_v0 }
 0x96c   :  { %5725 = vmatpush3.msra.mxu0 %v4062_v41 }
 0x96d   :  { %5726 = vmatprep.subr.mxu0 %v6610_v0 }
 0x96e   :  { %5727 = vmatpush3.msra.mxu0 %v4061_v47  ;;  %v4147_v47 = vld [vmem:[%s9408_s1 + $0x4f8] sm:$0xff] }
 0x96f   :  { %5728 = vmatprep.subr.mxu0 %v6610_v0 }
 0x970   :  { %5729 = vmatpush3.msra.mxu0 %v4060_v48  ;;  %v4146_v48 = vld [vmem:[%s9408_s1 + $0x4f0] sm:$0xff] }
 0x971   :  { %5768 = vmatprep.subr.mxu0 %v6610_v0 }
 0xa11   :  { %v1254_v43 = vpop.f32.mrf.mxu0 }
 0xa12   :  { %v1255_v44 = vadd.f32 %v4041_v42, %v1254_v43 }
 0xa13   :  { %v5662_v45 = vpop.f32.mrf.mxu0 }
 0xa14   :  { %v1258_v46 = vmax.f32 %v1255_v44, 0.0  ;;  %v4116_v44 = vld [vmem:[%s9409_s3 + $0x410] sm:$0xff]  ;;  %v4115_v45 = vld [vmem:[%s9409_s3 + $0x408] sm:$0xff] }
 0xa16   :  { %5696 = vmatmul.mubr.f32.vlgmr.msra.gmra.mxu1 %v1258_v46  ;;  %v4114_v46 = vld [vmem:[%s9409_s3 + $0x400] sm:$0xff] }
 0xa17   :  { %5765 = vmatprep.mubr.msk.f32.mxu1 %vm6611_vm0, %v6610_v0  ;;  %5734 = vmatpush3.msra.mxu1 %v4093_v49  ;;  %v4145_v49 = vld [vmem:[%s9408_s1 + $0x4e8] sm:$0xff] }
 0xa18   :  { %5735 = vmatprep.subr.mxu1 %v6610_v0 }
 0xa19   :  { %5736 = vmatpush3.msra.mxu1 %v4092_v50  ;;  %v4144_v50 = vld [vmem:[%s9408_s1 + $0x4e0] sm:$0xff] }
 0xa1a   :  { %5737 = vmatprep.subr.mxu1 %v6610_v0 }
 0xa1b   :  { %5738 = vmatpush3.msra.mxu1 %v4091_v51  ;;  %v4143_v51 = vld [vmem:[%s9408_s1 + $0x4d8] sm:$0xff] }
 0xa1c   :  { %5739 = vmatprep.subr.mxu1 %v6610_v0 }
 0xa1d   :  { %5740 = vmatpush3.msra.mxu1 %v4090_v52  ;;  %v4142_v52 = vld [vmem:[%s9408_s1 + $0x4d0] sm:$0xff] }
 0xa1e   :  { %5741 = vmatprep.subr.mxu1 %v6610_v0 }
 0xa1f   :  { %5742 = vmatpush3.msra.mxu1 %v4089_v53  ;;  %v4141_v53 = vld [vmem:[%s9408_s1 + $0x4c8] sm:$0xff] }
 0xa20   :  { %5743 = vmatprep.subr.mxu1 %v6610_v0 }
 0xa21   :  { %5744 = vmatpush3.msra.mxu1 %v4088_v54  ;;  %v4140_v54 = vld [vmem:[%s9408_s1 + $0x4c0] sm:$0xff] }
 0xa22   :  { %5745 = vmatprep.subr.mxu1 %v6610_v0 }
 0xa23   :  { %5746 = vmatpush3.msra.mxu1 %v4087_v55  ;;  %v4139_v55 = vld [vmem:[%s9408_s1 + $0x4b8] sm:$0xff] }
 0xa24   :  { %5747 = vmatprep.subr.mxu1 %v6610_v0 }
 0xa25   :  { %5748 = vmatpush3.msra.mxu1 %v4086_v56  ;;  %v4138_v56 = vld [vmem:[%s9408_s1 + $0x4b0] sm:$0xff] }
 0xa26   :  { %5749 = vmatprep.subr.mxu1 %v6610_v0 }
 0xa27   :  { %5750 = vmatpush3.msra.mxu1 %v4085_v57  ;;  %v4137_v57 = vld [vmem:[%s9408_s1 + $0x4a8] sm:$0xff] }
 0xa28   :  { %5751 = vmatprep.subr.mxu1 %v6610_v0 }
 0xa29   :  { %5752 = vmatpush3.msra.mxu1 %v4084_v58  ;;  %v4136_v58 = vld [vmem:[%s9408_s1 + $0x4a0] sm:$0xff] }
 0xa2a   :  { %5753 = vmatprep.subr.mxu1 %v6610_v0 }
 0xa2b   :  { %5754 = vmatpush3.msra.mxu1 %v4083_v59  ;;  %v4135_v59 = vld [vmem:[%s9408_s1 + $0x498] sm:$0xff] }
 0xa2c   :  { %5755 = vmatprep.subr.mxu1 %v6610_v0 }
 0xa2d   :  { %5756 = vmatpush3.msra.mxu1 %v4082_v60  ;;  %v4134_v60 = vld [vmem:[%s9408_s1 + $0x490] sm:$0xff] }
 0xa2e   :  { %5757 = vmatprep.subr.mxu1 %v6610_v0 }
 0xa2f   :  { %5758 = vmatpush3.msra.mxu1 %v4081_v61  ;;  %v4113_v61 = vld [vmem:[%s9411_s2 + $0x8] ss:$0 sm:$0xff] }
 0xa30   :  { %5759 = vmatprep.subr.mxu1 %v6610_v0 }
 0xa31   :  { %5760 = vmatpush3.msra.mxu1 %v4080_v3  ;;  %v4133_v3 = vld [vmem:[%s9408_s1 + $0x488] sm:$0xff] }
 0xa32   :  { %5761 = vmatprep.subr.mxu1 %v6610_v0 }
 0xa33   :  { %5762 = vmatpush3.msra.mxu1 %v4079_v4  ;;  %v4132_v4 = vld [vmem:[%s9408_s1 + $0x480] sm:$0xff] }
 0xa34   :  { %5763 = vmatprep.subr.mxu1 %v6610_v0 }
 0xa35   :  { %5764 = vmatpush3.msra.mxu1 %v4078_v5  ;;  %v4165_v5 = vld [vmem:[%s9409_s3 + $0x4f8] sm:$0xff] }
 0xa36   :  { %5803 = vmatprep.subr.mxu1 %v6610_v0 }
 0xad6   :  { %v1350_v63 = vpop.f32.mrf.mxu1 }
 0xad7   :  { %v1351_v1 = vadd.f32 %v4059_v62, %v1350_v63 }
 0xad8   :  { %v5697_v2 = vpop.f32.mrf.mxu1 }
 0xad9   :  { %5731 = vmatmul.mubr.f32.vlgmr.msra.gmra.mxu0 %v1351_v1 }
 0xada   :  { %5800 = vmatprep.mubr.msk.f32.mxu0 %vm6611_vm0, %v6610_v0  ;;  %5769 = vmatpush3.msra.mxu0 %v4111_v6  ;;  %v4164_v6 = vld [vmem:[%s9409_s3 + $0x4f0] sm:$0xff] }
 0xadb   :  { %5770 = vmatprep.subr.mxu0 %v6610_v0 }
 0xadc   :  { %5771 = vmatpush3.msra.mxu0 %v4110_v7  ;;  %v4163_v7 = vld [vmem:[%s9409_s3 + $0x4e8] sm:$0xff] }
 0xadd   :  { %5772 = vmatprep.subr.mxu0 %v6610_v0 }
 0xade   :  { %5773 = vmatpush3.msra.mxu0 %v4109_v8  ;;  %v4162_v8 = vld [vmem:[%s9409_s3 + $0x4e0] sm:$0xff] }
 0xadf   :  { %5774 = vmatprep.subr.mxu0 %v6610_v0 }
 0xae0   :  { %5775 = vmatpush3.msra.mxu0 %v4108_v9  ;;  %v4161_v9 = vld [vmem:[%s9409_s3 + $0x4d8] sm:$0xff] }
 0xae1   :  { %5776 = vmatprep.subr.mxu0 %v6610_v0 }
 0xae2   :  { %5777 = vmatpush3.msra.mxu0 %v4107_v10  ;;  %v4160_v10 = vld [vmem:[%s9409_s3 + $0x4d0] sm:$0xff] }
 0xae3   :  { %5778 = vmatprep.subr.mxu0 %v6610_v0 }
 0xae4   :  { %5779 = vmatpush3.msra.mxu0 %v4106_v11  ;;  %v4159_v11 = vld [vmem:[%s9409_s3 + $0x4c8] sm:$0xff] }
 0xae5   :  { %5780 = vmatprep.subr.mxu0 %v6610_v0 }
 0xae6   :  { %5781 = vmatpush3.msra.mxu0 %v4105_v12  ;;  %v4158_v12 = vld [vmem:[%s9409_s3 + $0x4c0] sm:$0xff] }
 0xae7   :  { %5782 = vmatprep.subr.mxu0 %v6610_v0 }
 0xae8   :  { %5783 = vmatpush3.msra.mxu0 %v4104_v13  ;;  %v4157_v13 = vld [vmem:[%s9409_s3 + $0x4b8] sm:$0xff] }
 0xae9   :  { %5784 = vmatprep.subr.mxu0 %v6610_v0 }
 0xaea   :  { %5785 = vmatpush3.msra.mxu0 %v4103_v14  ;;  %v4156_v14 = vld [vmem:[%s9409_s3 + $0x4b0] sm:$0xff] }
 0xaeb   :  { %5786 = vmatprep.subr.mxu0 %v6610_v0 }
 0xaec   :  { %5787 = vmatpush3.msra.mxu0 %v4102_v15  ;;  %v4155_v15 = vld [vmem:[%s9409_s3 + $0x4a8] sm:$0xff] }
 0xaed   :  { %5788 = vmatprep.subr.mxu0 %v6610_v0 }
 0xaee   :  { %5789 = vmatpush3.msra.mxu0 %v4101_v16  ;;  %v4154_v16 = vld [vmem:[%s9409_s3 + $0x4a0] sm:$0xff] }
 0xaef   :  { %5790 = vmatprep.subr.mxu0 %v6610_v0 }
 0xaf0   :  { %5791 = vmatpush3.msra.mxu0 %v4100_v17  ;;  %v4153_v17 = vld [vmem:[%s9409_s3 + $0x498] sm:$0xff] }
 0xaf1   :  { %5792 = vmatprep.subr.mxu0 %v6610_v0 }
 0xaf2   :  { %5793 = vmatpush3.msra.mxu0 %v4099_v18  ;;  %v4131_v18 = vld [vmem:[%s9412_s4 + $0x8] ss:$0 sm:$0xff] }
 0xaf3   :  { %5794 = vmatprep.subr.mxu0 %v6610_v0 }
 0xaf4   :  { %5795 = vmatpush3.msra.mxu0 %v4098_v19 }
 0xaf5   :  { %5796 = vmatprep.subr.mxu0 %v6610_v0 }
 0xaf6   :  { %5797 = vmatpush3.msra.mxu0 %v4097_v25  ;;  %v4183_v25 = vld [vmem:[%s9408_s1 + $0x578] sm:$0xff] }
 0xaf7   :  { %5798 = vmatprep.subr.mxu0 %v6610_v0 }
 0xaf8   :  { %5799 = vmatpush3.msra.mxu0 %v4096_v26  ;;  %v4182_v26 = vld [vmem:[%s9408_s1 + $0x570] sm:$0xff] }
 0xaf9   :  { %5838 = vmatprep.subr.mxu0 %v6610_v0 }
 0xb99   :  { %v1445_v21 = vpop.f32.mrf.mxu0 }
 0xb9a   :  { %v1446_v22 = vadd.f32 %v4077_v20, %v1445_v21 }
 0xb9b   :  { %v5732_v23 = vpop.f32.mrf.mxu0 }
 0xb9c   :  { %v1449_v24 = vmax.f32 %v1446_v22, 0.0  ;;  %v4152_v22 = vld [vmem:[%s9409_s3 + $0x490] sm:$0xff]  ;;  %v4151_v23 = vld [vmem:[%s9409_s3 + $0x488] sm:$0xff] }
 0xb9e   :  { %5766 = vmatmul.mubr.f32.vlgmr.msra.gmra.mxu1 %v1449_v24  ;;  %v4150_v24 = vld [vmem:[%s9409_s3 + $0x480] sm:$0xff] }
 0xb9f   :  { %5835 = vmatprep.mubr.msk.f32.mxu1 %vm6611_vm0, %v6610_v0  ;;  %5804 = vmatpush3.msra.mxu1 %v4129_v27  ;;  %v4181_v27 = vld [vmem:[%s9408_s1 + $0x568] sm:$0xff] }
 0xba0   :  { %5805 = vmatprep.subr.mxu1 %v6610_v0 }
 0xba1   :  { %5806 = vmatpush3.msra.mxu1 %v4128_v28  ;;  %v4180_v28 = vld [vmem:[%s9408_s1 + $0x560] sm:$0xff] }
 0xba2   :  { %5807 = vmatprep.subr.mxu1 %v6610_v0 }
 0xba3   :  { %5808 = vmatpush3.msra.mxu1 %v4127_v29  ;;  %v4179_v29 = vld [vmem:[%s9408_s1 + $0x558] sm:$0xff] }
 0xba4   :  { %5809 = vmatprep.subr.mxu1 %v6610_v0 }
 0xba5   :  { %5810 = vmatpush3.msra.mxu1 %v4126_v30  ;;  %v4178_v30 = vld [vmem:[%s9408_s1 + $0x550] sm:$0xff] }
 0xba6   :  { %5811 = vmatprep.subr.mxu1 %v6610_v0 }
 0xba7   :  { %5812 = vmatpush3.msra.mxu1 %v4125_v31  ;;  %v4177_v31 = vld [vmem:[%s9408_s1 + $0x548] sm:$0xff] }
 0xba8   :  { %5813 = vmatprep.subr.mxu1 %v6610_v0 }
 0xba9   :  { %5814 = vmatpush3.msra.mxu1 %v4124_v32  ;;  %v4176_v32 = vld [vmem:[%s9408_s1 + $0x540] sm:$0xff] }
 0xbaa   :  { %5815 = vmatprep.subr.mxu1 %v6610_v0 }
 0xbab   :  { %5816 = vmatpush3.msra.mxu1 %v4123_v33  ;;  %v4175_v33 = vld [vmem:[%s9408_s1 + $0x538] sm:$0xff] }
 0xbac   :  { %5817 = vmatprep.subr.mxu1 %v6610_v0 }
 0xbad   :  { %5818 = vmatpush3.msra.mxu1 %v4122_v34  ;;  %v4174_v34 = vld [vmem:[%s9408_s1 + $0x530] sm:$0xff] }
 0xbae   :  { %5819 = vmatprep.subr.mxu1 %v6610_v0 }
 0xbaf   :  { %5820 = vmatpush3.msra.mxu1 %v4121_v35  ;;  %v4173_v35 = vld [vmem:[%s9408_s1 + $0x528] sm:$0xff] }
 0xbb0   :  { %5821 = vmatprep.subr.mxu1 %v6610_v0 }
 0xbb1   :  { %5822 = vmatpush3.msra.mxu1 %v4120_v36  ;;  %v4172_v36 = vld [vmem:[%s9408_s1 + $0x520] sm:$0xff] }
 0xbb2   :  { %5823 = vmatprep.subr.mxu1 %v6610_v0 }
 0xbb3   :  { %5824 = vmatpush3.msra.mxu1 %v4119_v37  ;;  %v4171_v37 = vld [vmem:[%s9408_s1 + $0x518] sm:$0xff] }
 0xbb4   :  { %5825 = vmatprep.subr.mxu1 %v6610_v0 }
 0xbb5   :  { %5826 = vmatpush3.msra.mxu1 %v4118_v38  ;;  %v4170_v38 = vld [vmem:[%s9408_s1 + $0x510] sm:$0xff] }
 0xbb6   :  { %5827 = vmatprep.subr.mxu1 %v6610_v0 }
 0xbb7   :  { %5828 = vmatpush3.msra.mxu1 %v4117_v39  ;;  %v4149_v39 = vld [vmem:[%s9411_s2 + $0x9] ss:$0 sm:$0xff] }
 0xbb8   :  { %5829 = vmatprep.subr.mxu1 %v6610_v0 }
 0xbb9   :  { %5830 = vmatpush3.msra.mxu1 %v4116_v44  ;;  %v4169_v44 = vld [vmem:[%s9408_s1 + $0x508] sm:$0xff] }
 0xbba   :  { %5831 = vmatprep.subr.mxu1 %v6610_v0 }
 0xbbb   :  { %5832 = vmatpush3.msra.mxu1 %v4115_v45  ;;  %v4168_v45 = vld [vmem:[%s9408_s1 + $0x500] sm:$0xff] }
 0xbbc   :  { %5833 = vmatprep.subr.mxu1 %v6610_v0 }
 0xbbd   :  { %5834 = vmatpush3.msra.mxu1 %v4114_v46  ;;  %v4201_v46 = vld [vmem:[%s9409_s3 + $0x578] sm:$0xff] }
 0xbbe   :  { %5873 = vmatprep.subr.mxu1 %v6610_v0 }
 0xc5e   :  { %v1541_v41 = vpop.f32.mrf.mxu1 }
 0xc5f   :  { %v1542_v42 = vadd.f32 %v4095_v40, %v1541_v41 }
 0xc60   :  { %v5767_v43 = vpop.f32.mrf.mxu1 }
 0xc61   :  { %5801 = vmatmul.mubr.f32.vlgmr.msra.gmra.mxu0 %v1542_v42 }
 0xc62   :  { %5870 = vmatprep.mubr.msk.f32.mxu0 %vm6611_vm0, %v6610_v0  ;;  %5839 = vmatpush3.msra.mxu0 %v4147_v47  ;;  %v4200_v47 = vld [vmem:[%s9409_s3 + $0x570] sm:$0xff] }
 0xc63   :  { %5840 = vmatprep.subr.mxu0 %v6610_v0 }
 0xc64   :  { %5841 = vmatpush3.msra.mxu0 %v4146_v48  ;;  %v4199_v48 = vld [vmem:[%s9409_s3 + $0x568] sm:$0xff] }
 0xc65   :  { %5842 = vmatprep.subr.mxu0 %v6610_v0 }
 0xc66   :  { %5843 = vmatpush3.msra.mxu0 %v4145_v49  ;;  %v4198_v49 = vld [vmem:[%s9409_s3 + $0x560] sm:$0xff] }
 0xc67   :  { %5844 = vmatprep.subr.mxu0 %v6610_v0 }
 0xc68   :  { %5845 = vmatpush3.msra.mxu0 %v4144_v50  ;;  %v4197_v50 = vld [vmem:[%s9409_s3 + $0x558] sm:$0xff] }
 0xc69   :  { %5846 = vmatprep.subr.mxu0 %v6610_v0 }
 0xc6a   :  { %5847 = vmatpush3.msra.mxu0 %v4143_v51  ;;  %v4196_v51 = vld [vmem:[%s9409_s3 + $0x550] sm:$0xff] }
 0xc6b   :  { %5848 = vmatprep.subr.mxu0 %v6610_v0 }
 0xc6c   :  { %5849 = vmatpush3.msra.mxu0 %v4142_v52  ;;  %v4195_v52 = vld [vmem:[%s9409_s3 + $0x548] sm:$0xff] }
 0xc6d   :  { %5850 = vmatprep.subr.mxu0 %v6610_v0 }
 0xc6e   :  { %5851 = vmatpush3.msra.mxu0 %v4141_v53  ;;  %v4194_v53 = vld [vmem:[%s9409_s3 + $0x540] sm:$0xff] }
 0xc6f   :  { %5852 = vmatprep.subr.mxu0 %v6610_v0 }
 0xc70   :  { %5853 = vmatpush3.msra.mxu0 %v4140_v54  ;;  %v4193_v54 = vld [vmem:[%s9409_s3 + $0x538] sm:$0xff] }
 0xc71   :  { %5854 = vmatprep.subr.mxu0 %v6610_v0 }
 0xc72   :  { %5855 = vmatpush3.msra.mxu0 %v4139_v55  ;;  %v4192_v55 = vld [vmem:[%s9409_s3 + $0x530] sm:$0xff] }
 0xc73   :  { %5856 = vmatprep.subr.mxu0 %v6610_v0 }
 0xc74   :  { %5857 = vmatpush3.msra.mxu0 %v4138_v56  ;;  %v4191_v56 = vld [vmem:[%s9409_s3 + $0x528] sm:$0xff] }
 0xc75   :  { %5858 = vmatprep.subr.mxu0 %v6610_v0 }
 0xc76   :  { %5859 = vmatpush3.msra.mxu0 %v4137_v57  ;;  %v4190_v57 = vld [vmem:[%s9409_s3 + $0x520] sm:$0xff] }
 0xc77   :  { %5860 = vmatprep.subr.mxu0 %v6610_v0 }
 0xc78   :  { %5861 = vmatpush3.msra.mxu0 %v4136_v58  ;;  %v4189_v58 = vld [vmem:[%s9409_s3 + $0x518] sm:$0xff] }
 0xc79   :  { %5862 = vmatprep.subr.mxu0 %v6610_v0 }
 0xc7a   :  { %5863 = vmatpush3.msra.mxu0 %v4135_v59  ;;  %v4167_v59 = vld [vmem:[%s9412_s4 + $0x9] ss:$0 sm:$0xff] }
 0xc7b   :  { %5864 = vmatprep.subr.mxu0 %v6610_v0 }
 0xc7c   :  { %5865 = vmatpush3.msra.mxu0 %v4134_v60 }
 0xc7d   :  { %5866 = vmatprep.subr.mxu0 %v6610_v0 }
 0xc7e   :  { %5867 = vmatpush3.msra.mxu0 %v4133_v3  ;;  %v4219_v3 = vld [vmem:[%s9408_s1 + $0x5f8] sm:$0xff] }
 0xc7f   :  { %5868 = vmatprep.subr.mxu0 %v6610_v0 }
 0xc80   :  { %5869 = vmatpush3.msra.mxu0 %v4132_v4  ;;  %v4218_v4 = vld [vmem:[%s9408_s1 + $0x5f0] sm:$0xff] }
 0xc81   :  { %5908 = vmatprep.subr.mxu0 %v6610_v0 }
 0xd21   :  { %v1636_v62 = vpop.f32.mrf.mxu0 }
 0xd22   :  { %v1637_v63 = vadd.f32 %v4113_v61, %v1636_v62 }
 0xd23   :  { %v5802_v1 = vpop.f32.mrf.mxu0 }
 0xd24   :  { %v1640_v2 = vmax.f32 %v1637_v63, 0.0  ;;  %v4188_v63 = vld [vmem:[%s9409_s3 + $0x510] sm:$0xff]  ;;  %v4187_v1 = vld [vmem:[%s9409_s3 + $0x508] sm:$0xff] }
 0xd26   :  { %5836 = vmatmul.mubr.f32.vlgmr.msra.gmra.mxu1 %v1640_v2  ;;  %v4186_v2 = vld [vmem:[%s9409_s3 + $0x500] sm:$0xff] }
 0xd27   :  { %5905 = vmatprep.mubr.msk.f32.mxu1 %vm6611_vm0, %v6610_v0  ;;  %5874 = vmatpush3.msra.mxu1 %v4165_v5  ;;  %v4217_v5 = vld [vmem:[%s9408_s1 + $0x5e8] sm:$0xff] }
 0xd28   :  { %5875 = vmatprep.subr.mxu1 %v6610_v0 }
 0xd29   :  { %5876 = vmatpush3.msra.mxu1 %v4164_v6  ;;  %v4216_v6 = vld [vmem:[%s9408_s1 + $0x5e0] sm:$0xff] }
 0xd2a   :  { %5877 = vmatprep.subr.mxu1 %v6610_v0 }
 0xd2b   :  { %5878 = vmatpush3.msra.mxu1 %v4163_v7  ;;  %v4215_v7 = vld [vmem:[%s9408_s1 + $0x5d8] sm:$0xff] }
 0xd2c   :  { %5879 = vmatprep.subr.mxu1 %v6610_v0 }
 0xd2d   :  { %5880 = vmatpush3.msra.mxu1 %v4162_v8  ;;  %v4214_v8 = vld [vmem:[%s9408_s1 + $0x5d0] sm:$0xff] }
 0xd2e   :  { %5881 = vmatprep.subr.mxu1 %v6610_v0 }
 0xd2f   :  { %5882 = vmatpush3.msra.mxu1 %v4161_v9  ;;  %v4213_v9 = vld [vmem:[%s9408_s1 + $0x5c8] sm:$0xff] }
 0xd30   :  { %5883 = vmatprep.subr.mxu1 %v6610_v0 }
 0xd31   :  { %5884 = vmatpush3.msra.mxu1 %v4160_v10  ;;  %v4212_v10 = vld [vmem:[%s9408_s1 + $0x5c0] sm:$0xff] }
 0xd32   :  { %5885 = vmatprep.subr.mxu1 %v6610_v0 }
 0xd33   :  { %5886 = vmatpush3.msra.mxu1 %v4159_v11  ;;  %v4211_v11 = vld [vmem:[%s9408_s1 + $0x5b8] sm:$0xff] }
 0xd34   :  { %5887 = vmatprep.subr.mxu1 %v6610_v0 }
 0xd35   :  { %5888 = vmatpush3.msra.mxu1 %v4158_v12  ;;  %v4210_v12 = vld [vmem:[%s9408_s1 + $0x5b0] sm:$0xff] }
 0xd36   :  { %5889 = vmatprep.subr.mxu1 %v6610_v0 }
 0xd37   :  { %5890 = vmatpush3.msra.mxu1 %v4157_v13  ;;  %v4209_v13 = vld [vmem:[%s9408_s1 + $0x5a8] sm:$0xff] }
 0xd38   :  { %5891 = vmatprep.subr.mxu1 %v6610_v0 }
 0xd39   :  { %5892 = vmatpush3.msra.mxu1 %v4156_v14  ;;  %v4208_v14 = vld [vmem:[%s9408_s1 + $0x5a0] sm:$0xff] }
 0xd3a   :  { %5893 = vmatprep.subr.mxu1 %v6610_v0 }
 0xd3b   :  { %5894 = vmatpush3.msra.mxu1 %v4155_v15  ;;  %v4207_v15 = vld [vmem:[%s9408_s1 + $0x598] sm:$0xff] }
 0xd3c   :  { %5895 = vmatprep.subr.mxu1 %v6610_v0 }
 0xd3d   :  { %5896 = vmatpush3.msra.mxu1 %v4154_v16  ;;  %v4206_v16 = vld [vmem:[%s9408_s1 + $0x590] sm:$0xff] }
 0xd3e   :  { %5897 = vmatprep.subr.mxu1 %v6610_v0 }
 0xd3f   :  { %5898 = vmatpush3.msra.mxu1 %v4153_v17  ;;  %v4185_v17 = vld [vmem:[%s9411_s2 + $0xa] ss:$0 sm:$0xff] }
 0xd40   :  { %5899 = vmatprep.subr.mxu1 %v6610_v0 }
 0xd41   :  { %5900 = vmatpush3.msra.mxu1 %v4152_v22  ;;  %v4205_v22 = vld [vmem:[%s9408_s1 + $0x588] sm:$0xff] }
 0xd42   :  { %5901 = vmatprep.subr.mxu1 %v6610_v0 }
 0xd43   :  { %5902 = vmatpush3.msra.mxu1 %v4151_v23  ;;  %v4204_v23 = vld [vmem:[%s9408_s1 + $0x580] sm:$0xff] }
 0xd44   :  { %5903 = vmatprep.subr.mxu1 %v6610_v0 }
 0xd45   :  { %5904 = vmatpush3.msra.mxu1 %v4150_v24  ;;  %v4237_v24 = vld [vmem:[%s9409_s3 + $0x5f8] sm:$0xff] }
 0xd46   :  { %5943 = vmatprep.subr.mxu1 %v6610_v0 }
 0xde6   :  { %v1732_v19 = vpop.f32.mrf.mxu1 }
 0xde7   :  { %v1733_v20 = vadd.f32 %v4131_v18, %v1732_v19 }
 0xde8   :  { %v5837_v21 = vpop.f32.mrf.mxu1 }
 0xde9   :  { %5871 = vmatmul.mubr.f32.vlgmr.msra.gmra.mxu0 %v1733_v20 }
 0xdea   :  { %5940 = vmatprep.mubr.msk.f32.mxu0 %vm6611_vm0, %v6610_v0  ;;  %5909 = vmatpush3.msra.mxu0 %v4183_v25  ;;  %v4236_v25 = vld [vmem:[%s9409_s3 + $0x5f0] sm:$0xff] }
 0xdeb   :  { %5910 = vmatprep.subr.mxu0 %v6610_v0 }
 0xdec   :  { %5911 = vmatpush3.msra.mxu0 %v4182_v26  ;;  %v4235_v26 = vld [vmem:[%s9409_s3 + $0x5e8] sm:$0xff] }
 0xded   :  { %5912 = vmatprep.subr.mxu0 %v6610_v0 }
 0xdee   :  { %5913 = vmatpush3.msra.mxu0 %v4181_v27  ;;  %v4234_v27 = vld [vmem:[%s9409_s3 + $0x5e0] sm:$0xff] }
 0xdef   :  { %5914 = vmatprep.subr.mxu0 %v6610_v0 }
 0xdf0   :  { %5915 = vmatpush3.msra.mxu0 %v4180_v28  ;;  %v4233_v28 = vld [vmem:[%s9409_s3 + $0x5d8] sm:$0xff] }
 0xdf1   :  { %5916 = vmatprep.subr.mxu0 %v6610_v0 }
 0xdf2   :  { %5917 = vmatpush3.msra.mxu0 %v4179_v29  ;;  %v4232_v29 = vld [vmem:[%s9409_s3 + $0x5d0] sm:$0xff] }
 0xdf3   :  { %5918 = vmatprep.subr.mxu0 %v6610_v0 }
 0xdf4   :  { %5919 = vmatpush3.msra.mxu0 %v4178_v30  ;;  %v4231_v30 = vld [vmem:[%s9409_s3 + $0x5c8] sm:$0xff] }
 0xdf5   :  { %5920 = vmatprep.subr.mxu0 %v6610_v0 }
 0xdf6   :  { %5921 = vmatpush3.msra.mxu0 %v4177_v31  ;;  %v4230_v31 = vld [vmem:[%s9409_s3 + $0x5c0] sm:$0xff] }
 0xdf7   :  { %5922 = vmatprep.subr.mxu0 %v6610_v0 }
 0xdf8   :  { %5923 = vmatpush3.msra.mxu0 %v4176_v32  ;;  %v4229_v32 = vld [vmem:[%s9409_s3 + $0x5b8] sm:$0xff] }
 0xdf9   :  { %5924 = vmatprep.subr.mxu0 %v6610_v0 }
 0xdfa   :  { %5925 = vmatpush3.msra.mxu0 %v4175_v33  ;;  %v4228_v33 = vld [vmem:[%s9409_s3 + $0x5b0] sm:$0xff] }
 0xdfb   :  { %5926 = vmatprep.subr.mxu0 %v6610_v0 }
 0xdfc   :  { %5927 = vmatpush3.msra.mxu0 %v4174_v34  ;;  %v4227_v34 = vld [vmem:[%s9409_s3 + $0x5a8] sm:$0xff] }
 0xdfd   :  { %5928 = vmatprep.subr.mxu0 %v6610_v0 }
 0xdfe   :  { %5929 = vmatpush3.msra.mxu0 %v4173_v35  ;;  %v4226_v35 = vld [vmem:[%s9409_s3 + $0x5a0] sm:$0xff] }
 0xdff   :  { %5930 = vmatprep.subr.mxu0 %v6610_v0 }
 0xe00   :  { %5931 = vmatpush3.msra.mxu0 %v4172_v36  ;;  %v4225_v36 = vld [vmem:[%s9409_s3 + $0x598] sm:$0xff] }
 0xe01   :  { %5932 = vmatprep.subr.mxu0 %v6610_v0 }
 0xe02   :  { %5933 = vmatpush3.msra.mxu0 %v4171_v37  ;;  %v4203_v37 = vld [vmem:[%s9412_s4 + $0xa] ss:$0 sm:$0xff] }
 0xe03   :  { %5934 = vmatprep.subr.mxu0 %v6610_v0 }
 0xe04   :  { %5935 = vmatpush3.msra.mxu0 %v4170_v38 }
 0xe05   :  { %5936 = vmatprep.subr.mxu0 %v6610_v0 }
 0xe06   :  { %5937 = vmatpush3.msra.mxu0 %v4169_v44  ;;  %v4255_v44 = vld [vmem:[%s9408_s1 + $0x678] sm:$0xff] }
 0xe07   :  { %5938 = vmatprep.subr.mxu0 %v6610_v0 }
 0xe08   :  { %5939 = vmatpush3.msra.mxu0 %v4168_v45  ;;  %v4254_v45 = vld [vmem:[%s9408_s1 + $0x670] sm:$0xff] }
 0xe09   :  { %5978 = vmatprep.subr.mxu0 %v6610_v0 }
 0xea9   :  { %v1827_v40 = vpop.f32.mrf.mxu0 }
 0xeaa   :  { %v1828_v41 = vadd.f32 %v4149_v39, %v1827_v40 }
 0xeab   :  { %v5872_v42 = vpop.f32.mrf.mxu0 }
 0xeac   :  { %v1831_v43 = vmax.f32 %v1828_v41, 0.0  ;;  %v4224_v41 = vld [vmem:[%s9409_s3 + $0x590] sm:$0xff]  ;;  %v4223_v42 = vld [vmem:[%s9409_s3 + $0x588] sm:$0xff] }
 0xeae   :  { %5906 = vmatmul.mubr.f32.vlgmr.msra.gmra.mxu1 %v1831_v43  ;;  %v4222_v43 = vld [vmem:[%s9409_s3 + $0x580] sm:$0xff] }
 0xeaf   :  { %5975 = vmatprep.mubr.msk.f32.mxu1 %vm6611_vm0, %v6610_v0  ;;  %5944 = vmatpush3.msra.mxu1 %v4201_v46  ;;  %v4253_v46 = vld [vmem:[%s9408_s1 + $0x668] sm:$0xff] }
 0xeb0   :  { %5945 = vmatprep.subr.mxu1 %v6610_v0 }
 0xeb1   :  { %5946 = vmatpush3.msra.mxu1 %v4200_v47  ;;  %v4252_v47 = vld [vmem:[%s9408_s1 + $0x660] sm:$0xff] }
 0xeb2   :  { %5947 = vmatprep.subr.mxu1 %v6610_v0 }
 0xeb3   :  { %5948 = vmatpush3.msra.mxu1 %v4199_v48  ;;  %v4251_v48 = vld [vmem:[%s9408_s1 + $0x658] sm:$0xff] }
 0xeb4   :  { %5949 = vmatprep.subr.mxu1 %v6610_v0 }
 0xeb5   :  { %5950 = vmatpush3.msra.mxu1 %v4198_v49  ;;  %v4250_v49 = vld [vmem:[%s9408_s1 + $0x650] sm:$0xff] }
 0xeb6   :  { %5951 = vmatprep.subr.mxu1 %v6610_v0 }
 0xeb7   :  { %5952 = vmatpush3.msra.mxu1 %v4197_v50  ;;  %v4249_v50 = vld [vmem:[%s9408_s1 + $0x648] sm:$0xff] }
 0xeb8   :  { %5953 = vmatprep.subr.mxu1 %v6610_v0 }
 0xeb9   :  { %5954 = vmatpush3.msra.mxu1 %v4196_v51  ;;  %v4248_v51 = vld [vmem:[%s9408_s1 + $0x640] sm:$0xff] }
 0xeba   :  { %5955 = vmatprep.subr.mxu1 %v6610_v0 }
 0xebb   :  { %5956 = vmatpush3.msra.mxu1 %v4195_v52  ;;  %v4247_v52 = vld [vmem:[%s9408_s1 + $0x638] sm:$0xff] }
 0xebc   :  { %5957 = vmatprep.subr.mxu1 %v6610_v0 }
 0xebd   :  { %5958 = vmatpush3.msra.mxu1 %v4194_v53  ;;  %v4246_v53 = vld [vmem:[%s9408_s1 + $0x630] sm:$0xff] }
 0xebe   :  { %5959 = vmatprep.subr.mxu1 %v6610_v0 }
 0xebf   :  { %5960 = vmatpush3.msra.mxu1 %v4193_v54  ;;  %v4245_v54 = vld [vmem:[%s9408_s1 + $0x628] sm:$0xff] }
 0xec0   :  { %5961 = vmatprep.subr.mxu1 %v6610_v0 }
 0xec1   :  { %5962 = vmatpush3.msra.mxu1 %v4192_v55  ;;  %v4244_v55 = vld [vmem:[%s9408_s1 + $0x620] sm:$0xff] }
 0xec2   :  { %5963 = vmatprep.subr.mxu1 %v6610_v0 }
 0xec3   :  { %5964 = vmatpush3.msra.mxu1 %v4191_v56  ;;  %v4243_v56 = vld [vmem:[%s9408_s1 + $0x618] sm:$0xff] }
 0xec4   :  { %5965 = vmatprep.subr.mxu1 %v6610_v0 }
 0xec5   :  { %5966 = vmatpush3.msra.mxu1 %v4190_v57  ;;  %v4242_v57 = vld [vmem:[%s9408_s1 + $0x610] sm:$0xff] }
 0xec6   :  { %5967 = vmatprep.subr.mxu1 %v6610_v0 }
 0xec7   :  { %5968 = vmatpush3.msra.mxu1 %v4189_v58  ;;  %v4221_v58 = vld [vmem:[%s9411_s2 + $0xb] ss:$0 sm:$0xff] }
 0xec8   :  { %5969 = vmatprep.subr.mxu1 %v6610_v0 }
 0xec9   :  { %5970 = vmatpush3.msra.mxu1 %v4188_v63  ;;  %v4241_v63 = vld [vmem:[%s9408_s1 + $0x608] sm:$0xff] }
 0xeca   :  { %5971 = vmatprep.subr.mxu1 %v6610_v0 }
 0xecb   :  { %5972 = vmatpush3.msra.mxu1 %v4187_v1  ;;  %v4240_v1 = vld [vmem:[%s9408_s1 + $0x600] sm:$0xff] }
 0xecc   :  { %5973 = vmatprep.subr.mxu1 %v6610_v0 }
 0xecd   :  { %5974 = vmatpush3.msra.mxu1 %v4186_v2  ;;  %v4273_v2 = vld [vmem:[%s9409_s3 + $0x678] sm:$0xff] }
 0xece   :  { %6013 = vmatprep.subr.mxu1 %v6610_v0 }
 0xf6e   :  { %v1923_v60 = vpop.f32.mrf.mxu1 }
 0xf6f   :  { %v1924_v61 = vadd.f32 %v4167_v59, %v1923_v60 }
 0xf70   :  { %v5907_v62 = vpop.f32.mrf.mxu1 }
 0xf71   :  { %5941 = vmatmul.mubr.f32.vlgmr.msra.gmra.mxu0 %v1924_v61 }
 0xf72   :  { %6010 = vmatprep.mubr.msk.f32.mxu0 %vm6611_vm0, %v6610_v0  ;;  %5979 = vmatpush3.msra.mxu0 %v4219_v3  ;;  %v4272_v3 = vld [vmem:[%s9409_s3 + $0x670] sm:$0xff] }
 0xf73   :  { %5980 = vmatprep.subr.mxu0 %v6610_v0 }
 0xf74   :  { %5981 = vmatpush3.msra.mxu0 %v4218_v4  ;;  %v4271_v4 = vld [vmem:[%s9409_s3 + $0x668] sm:$0xff] }
 0xf75   :  { %5982 = vmatprep.subr.mxu0 %v6610_v0 }
 0xf76   :  { %5983 = vmatpush3.msra.mxu0 %v4217_v5  ;;  %v4270_v5 = vld [vmem:[%s9409_s3 + $0x660] sm:$0xff] }
 0xf77   :  { %5984 = vmatprep.subr.mxu0 %v6610_v0 }
 0xf78   :  { %5985 = vmatpush3.msra.mxu0 %v4216_v6  ;;  %v4269_v6 = vld [vmem:[%s9409_s3 + $0x658] sm:$0xff] }
 0xf79   :  { %5986 = vmatprep.subr.mxu0 %v6610_v0 }
 0xf7a   :  { %5987 = vmatpush3.msra.mxu0 %v4215_v7  ;;  %v4268_v7 = vld [vmem:[%s9409_s3 + $0x650] sm:$0xff] }
 0xf7b   :  { %5988 = vmatprep.subr.mxu0 %v6610_v0 }
 0xf7c   :  { %5989 = vmatpush3.msra.mxu0 %v4214_v8  ;;  %v4267_v8 = vld [vmem:[%s9409_s3 + $0x648] sm:$0xff] }
 0xf7d   :  { %5990 = vmatprep.subr.mxu0 %v6610_v0 }
 0xf7e   :  { %5991 = vmatpush3.msra.mxu0 %v4213_v9  ;;  %v4266_v9 = vld [vmem:[%s9409_s3 + $0x640] sm:$0xff] }
 0xf7f   :  { %5992 = vmatprep.subr.mxu0 %v6610_v0 }
 0xf80   :  { %5993 = vmatpush3.msra.mxu0 %v4212_v10  ;;  %v4265_v10 = vld [vmem:[%s9409_s3 + $0x638] sm:$0xff] }
 0xf81   :  { %5994 = vmatprep.subr.mxu0 %v6610_v0 }
 0xf82   :  { %5995 = vmatpush3.msra.mxu0 %v4211_v11  ;;  %v4264_v11 = vld [vmem:[%s9409_s3 + $0x630] sm:$0xff] }
 0xf83   :  { %5996 = vmatprep.subr.mxu0 %v6610_v0 }
 0xf84   :  { %5997 = vmatpush3.msra.mxu0 %v4210_v12  ;;  %v4263_v12 = vld [vmem:[%s9409_s3 + $0x628] sm:$0xff] }
 0xf85   :  { %5998 = vmatprep.subr.mxu0 %v6610_v0 }
 0xf86   :  { %5999 = vmatpush3.msra.mxu0 %v4209_v13  ;;  %v4262_v13 = vld [vmem:[%s9409_s3 + $0x620] sm:$0xff] }
 0xf87   :  { %6000 = vmatprep.subr.mxu0 %v6610_v0 }
 0xf88   :  { %6001 = vmatpush3.msra.mxu0 %v4208_v14  ;;  %v4261_v14 = vld [vmem:[%s9409_s3 + $0x618] sm:$0xff] }
 0xf89   :  { %6002 = vmatprep.subr.mxu0 %v6610_v0 }
 0xf8a   :  { %6003 = vmatpush3.msra.mxu0 %v4207_v15  ;;  %v4239_v15 = vld [vmem:[%s9412_s4 + $0xb] ss:$0 sm:$0xff] }
 0xf8b   :  { %6004 = vmatprep.subr.mxu0 %v6610_v0 }
 0xf8c   :  { %6005 = vmatpush3.msra.mxu0 %v4206_v16 }
 0xf8d   :  { %6006 = vmatprep.subr.mxu0 %v6610_v0 }
 0xf8e   :  { %6007 = vmatpush3.msra.mxu0 %v4205_v22  ;;  %v4291_v22 = vld [vmem:[%s9408_s1 + $0x6f8] sm:$0xff] }
 0xf8f   :  { %6008 = vmatprep.subr.mxu0 %v6610_v0 }
 0xf90   :  { %6009 = vmatpush3.msra.mxu0 %v4204_v23  ;;  %v4290_v23 = vld [vmem:[%s9408_s1 + $0x6f0] sm:$0xff] }
 0xf91   :  { %6048 = vmatprep.subr.mxu0 %v6610_v0 }
0x1031   :  { %v2018_v18 = vpop.f32.mrf.mxu0 }
0x1032   :  { %v2019_v19 = vadd.f32 %v4185_v17, %v2018_v18 }
0x1033   :  { %v5942_v20 = vpop.f32.mrf.mxu0 }
0x1034   :  { %v2022_v21 = vmax.f32 %v2019_v19, 0.0  ;;  %v4260_v19 = vld [vmem:[%s9409_s3 + $0x610] sm:$0xff]  ;;  %v4259_v20 = vld [vmem:[%s9409_s3 + $0x608] sm:$0xff] }
0x1036   :  { %5976 = vmatmul.mubr.f32.vlgmr.msra.gmra.mxu1 %v2022_v21  ;;  %v4258_v21 = vld [vmem:[%s9409_s3 + $0x600] sm:$0xff] }
0x1037   :  { %6045 = vmatprep.mubr.msk.f32.mxu1 %vm6611_vm0, %v6610_v0  ;;  %6014 = vmatpush3.msra.mxu1 %v4237_v24  ;;  %v4289_v24 = vld [vmem:[%s9408_s1 + $0x6e8] sm:$0xff] }
0x1038   :  { %6015 = vmatprep.subr.mxu1 %v6610_v0 }
0x1039   :  { %6016 = vmatpush3.msra.mxu1 %v4236_v25  ;;  %v4288_v25 = vld [vmem:[%s9408_s1 + $0x6e0] sm:$0xff] }
0x103a   :  { %6017 = vmatprep.subr.mxu1 %v6610_v0 }
0x103b   :  { %6018 = vmatpush3.msra.mxu1 %v4235_v26  ;;  %v4287_v26 = vld [vmem:[%s9408_s1 + $0x6d8] sm:$0xff] }
0x103c   :  { %6019 = vmatprep.subr.mxu1 %v6610_v0 }
0x103d   :  { %6020 = vmatpush3.msra.mxu1 %v4234_v27  ;;  %v4286_v27 = vld [vmem:[%s9408_s1 + $0x6d0] sm:$0xff] }
0x103e   :  { %6021 = vmatprep.subr.mxu1 %v6610_v0 }
0x103f   :  { %6022 = vmatpush3.msra.mxu1 %v4233_v28  ;;  %v4285_v28 = vld [vmem:[%s9408_s1 + $0x6c8] sm:$0xff] }
0x1040   :  { %6023 = vmatprep.subr.mxu1 %v6610_v0 }
0x1041   :  { %6024 = vmatpush3.msra.mxu1 %v4232_v29  ;;  %v4284_v29 = vld [vmem:[%s9408_s1 + $0x6c0] sm:$0xff] }
0x1042   :  { %6025 = vmatprep.subr.mxu1 %v6610_v0 }
0x1043   :  { %6026 = vmatpush3.msra.mxu1 %v4231_v30  ;;  %v4283_v30 = vld [vmem:[%s9408_s1 + $0x6b8] sm:$0xff] }
0x1044   :  { %6027 = vmatprep.subr.mxu1 %v6610_v0 }
0x1045   :  { %6028 = vmatpush3.msra.mxu1 %v4230_v31  ;;  %v4282_v31 = vld [vmem:[%s9408_s1 + $0x6b0] sm:$0xff] }
0x1046   :  { %6029 = vmatprep.subr.mxu1 %v6610_v0 }
0x1047   :  { %6030 = vmatpush3.msra.mxu1 %v4229_v32  ;;  %v4281_v32 = vld [vmem:[%s9408_s1 + $0x6a8] sm:$0xff] }
0x1048   :  { %6031 = vmatprep.subr.mxu1 %v6610_v0 }
0x1049   :  { %6032 = vmatpush3.msra.mxu1 %v4228_v33  ;;  %v4280_v33 = vld [vmem:[%s9408_s1 + $0x6a0] sm:$0xff] }
0x104a   :  { %6033 = vmatprep.subr.mxu1 %v6610_v0 }
0x104b   :  { %6034 = vmatpush3.msra.mxu1 %v4227_v34  ;;  %v4279_v34 = vld [vmem:[%s9408_s1 + $0x698] sm:$0xff] }
0x104c   :  { %6035 = vmatprep.subr.mxu1 %v6610_v0 }
0x104d   :  { %6036 = vmatpush3.msra.mxu1 %v4226_v35  ;;  %v4278_v35 = vld [vmem:[%s9408_s1 + $0x690] sm:$0xff] }
0x104e   :  { %6037 = vmatprep.subr.mxu1 %v6610_v0 }
0x104f   :  { %6038 = vmatpush3.msra.mxu1 %v4225_v36  ;;  %v4257_v36 = vld [vmem:[%s9411_s2 + $0xc] ss:$0 sm:$0xff] }
0x1050   :  { %6039 = vmatprep.subr.mxu1 %v6610_v0 }
0x1051   :  { %6040 = vmatpush3.msra.mxu1 %v4224_v41  ;;  %v4277_v41 = vld [vmem:[%s9408_s1 + $0x688] sm:$0xff] }
0x1052   :  { %6041 = vmatprep.subr.mxu1 %v6610_v0 }
0x1053   :  { %6042 = vmatpush3.msra.mxu1 %v4223_v42  ;;  %v4276_v42 = vld [vmem:[%s9408_s1 + $0x680] sm:$0xff] }
0x1054   :  { %6043 = vmatprep.subr.mxu1 %v6610_v0 }
0x1055   :  { %6044 = vmatpush3.msra.mxu1 %v4222_v43  ;;  %v4309_v43 = vld [vmem:[%s9409_s3 + $0x6f8] sm:$0xff] }
0x1056   :  { %6083 = vmatprep.subr.mxu1 %v6610_v0 }
0x10f6   :  { %v2114_v38 = vpop.f32.mrf.mxu1 }
0x10f7   :  { %v2115_v39 = vadd.f32 %v4203_v37, %v2114_v38 }
0x10f8   :  { %v5977_v40 = vpop.f32.mrf.mxu1 }
0x10f9   :  { %6011 = vmatmul.mubr.f32.vlgmr.msra.gmra.mxu0 %v2115_v39 }
0x10fa   :  { %6080 = vmatprep.mubr.msk.f32.mxu0 %vm6611_vm0, %v6610_v0  ;;  %6049 = vmatpush3.msra.mxu0 %v4255_v44  ;;  %v4308_v44 = vld [vmem:[%s9409_s3 + $0x6f0] sm:$0xff] }
0x10fb   :  { %6050 = vmatprep.subr.mxu0 %v6610_v0 }
0x10fc   :  { %6051 = vmatpush3.msra.mxu0 %v4254_v45  ;;  %v4307_v45 = vld [vmem:[%s9409_s3 + $0x6e8] sm:$0xff] }
0x10fd   :  { %6052 = vmatprep.subr.mxu0 %v6610_v0 }
0x10fe   :  { %6053 = vmatpush3.msra.mxu0 %v4253_v46  ;;  %v4306_v46 = vld [vmem:[%s9409_s3 + $0x6e0] sm:$0xff] }
0x10ff   :  { %6054 = vmatprep.subr.mxu0 %v6610_v0 }
0x1100   :  { %6055 = vmatpush3.msra.mxu0 %v4252_v47  ;;  %v4305_v47 = vld [vmem:[%s9409_s3 + $0x6d8] sm:$0xff] }
0x1101   :  { %6056 = vmatprep.subr.mxu0 %v6610_v0 }
0x1102   :  { %6057 = vmatpush3.msra.mxu0 %v4251_v48  ;;  %v4304_v48 = vld [vmem:[%s9409_s3 + $0x6d0] sm:$0xff] }
0x1103   :  { %6058 = vmatprep.subr.mxu0 %v6610_v0 }
0x1104   :  { %6059 = vmatpush3.msra.mxu0 %v4250_v49  ;;  %v4303_v49 = vld [vmem:[%s9409_s3 + $0x6c8] sm:$0xff] }
0x1105   :  { %6060 = vmatprep.subr.mxu0 %v6610_v0 }
0x1106   :  { %6061 = vmatpush3.msra.mxu0 %v4249_v50  ;;  %v4302_v50 = vld [vmem:[%s9409_s3 + $0x6c0] sm:$0xff] }
0x1107   :  { %6062 = vmatprep.subr.mxu0 %v6610_v0 }
0x1108   :  { %6063 = vmatpush3.msra.mxu0 %v4248_v51  ;;  %v4301_v51 = vld [vmem:[%s9409_s3 + $0x6b8] sm:$0xff] }
0x1109   :  { %6064 = vmatprep.subr.mxu0 %v6610_v0 }
0x110a   :  { %6065 = vmatpush3.msra.mxu0 %v4247_v52  ;;  %v4300_v52 = vld [vmem:[%s9409_s3 + $0x6b0] sm:$0xff] }
0x110b   :  { %6066 = vmatprep.subr.mxu0 %v6610_v0 }
0x110c   :  { %6067 = vmatpush3.msra.mxu0 %v4246_v53  ;;  %v4299_v53 = vld [vmem:[%s9409_s3 + $0x6a8] sm:$0xff] }
0x110d   :  { %6068 = vmatprep.subr.mxu0 %v6610_v0 }
0x110e   :  { %6069 = vmatpush3.msra.mxu0 %v4245_v54  ;;  %v4298_v54 = vld [vmem:[%s9409_s3 + $0x6a0] sm:$0xff] }
0x110f   :  { %6070 = vmatprep.subr.mxu0 %v6610_v0 }
0x1110   :  { %6071 = vmatpush3.msra.mxu0 %v4244_v55  ;;  %v4297_v55 = vld [vmem:[%s9409_s3 + $0x698] sm:$0xff] }
0x1111   :  { %6072 = vmatprep.subr.mxu0 %v6610_v0 }
0x1112   :  { %6073 = vmatpush3.msra.mxu0 %v4243_v56  ;;  %v4275_v56 = vld [vmem:[%s9412_s4 + $0xc] ss:$0 sm:$0xff] }
0x1113   :  { %6074 = vmatprep.subr.mxu0 %v6610_v0 }
0x1114   :  { %6075 = vmatpush3.msra.mxu0 %v4242_v57 }
0x1115   :  { %6076 = vmatprep.subr.mxu0 %v6610_v0 }
0x1116   :  { %6077 = vmatpush3.msra.mxu0 %v4241_v63  ;;  %v4327_v63 = vld [vmem:[%s9408_s1 + $0x778] sm:$0xff] }
0x1117   :  { %6078 = vmatprep.subr.mxu0 %v6610_v0 }
0x1118   :  { %6079 = vmatpush3.msra.mxu0 %v4240_v1  ;;  %v4326_v1 = vld [vmem:[%s9408_s1 + $0x770] sm:$0xff] }
0x1119   :  { %6118 = vmatprep.subr.mxu0 %v6610_v0 }
0x11b9   :  { %v2209_v59 = vpop.f32.mrf.mxu0 }
0x11ba   :  { %v2210_v60 = vadd.f32 %v4221_v58, %v2209_v59 }
0x11bb   :  { %v6012_v61 = vpop.f32.mrf.mxu0 }
0x11bc   :  { %v2213_v62 = vmax.f32 %v2210_v60, 0.0  ;;  %v4296_v60 = vld [vmem:[%s9409_s3 + $0x690] sm:$0xff]  ;;  %v4295_v61 = vld [vmem:[%s9409_s3 + $0x688] sm:$0xff] }
0x11be   :  { %6046 = vmatmul.mubr.f32.vlgmr.msra.gmra.mxu1 %v2213_v62  ;;  %v4294_v62 = vld [vmem:[%s9409_s3 + $0x680] sm:$0xff] }
0x11bf   :  { %6115 = vmatprep.mubr.msk.f32.mxu1 %vm6611_vm0, %v6610_v0  ;;  %6084 = vmatpush3.msra.mxu1 %v4273_v2  ;;  %v4325_v2 = vld [vmem:[%s9408_s1 + $0x768] sm:$0xff] }
0x11c0   :  { %6085 = vmatprep.subr.mxu1 %v6610_v0 }
0x11c1   :  { %6086 = vmatpush3.msra.mxu1 %v4272_v3  ;;  %v4324_v3 = vld [vmem:[%s9408_s1 + $0x760] sm:$0xff] }
0x11c2   :  { %6087 = vmatprep.subr.mxu1 %v6610_v0 }
0x11c3   :  { %6088 = vmatpush3.msra.mxu1 %v4271_v4  ;;  %v4323_v4 = vld [vmem:[%s9408_s1 + $0x758] sm:$0xff] }
0x11c4   :  { %6089 = vmatprep.subr.mxu1 %v6610_v0 }
0x11c5   :  { %6090 = vmatpush3.msra.mxu1 %v4270_v5  ;;  %v4322_v5 = vld [vmem:[%s9408_s1 + $0x750] sm:$0xff] }
0x11c6   :  { %6091 = vmatprep.subr.mxu1 %v6610_v0 }
0x11c7   :  { %6092 = vmatpush3.msra.mxu1 %v4269_v6  ;;  %v4321_v6 = vld [vmem:[%s9408_s1 + $0x748] sm:$0xff] }
0x11c8   :  { %6093 = vmatprep.subr.mxu1 %v6610_v0 }
0x11c9   :  { %6094 = vmatpush3.msra.mxu1 %v4268_v7  ;;  %v4320_v7 = vld [vmem:[%s9408_s1 + $0x740] sm:$0xff] }
0x11ca   :  { %6095 = vmatprep.subr.mxu1 %v6610_v0 }
0x11cb   :  { %6096 = vmatpush3.msra.mxu1 %v4267_v8  ;;  %v4319_v8 = vld [vmem:[%s9408_s1 + $0x738] sm:$0xff] }
0x11cc   :  { %6097 = vmatprep.subr.mxu1 %v6610_v0 }
0x11cd   :  { %6098 = vmatpush3.msra.mxu1 %v4266_v9  ;;  %v4318_v9 = vld [vmem:[%s9408_s1 + $0x730] sm:$0xff] }
0x11ce   :  { %6099 = vmatprep.subr.mxu1 %v6610_v0 }
0x11cf   :  { %6100 = vmatpush3.msra.mxu1 %v4265_v10  ;;  %v4317_v10 = vld [vmem:[%s9408_s1 + $0x728] sm:$0xff] }
0x11d0   :  { %6101 = vmatprep.subr.mxu1 %v6610_v0 }
0x11d1   :  { %6102 = vmatpush3.msra.mxu1 %v4264_v11  ;;  %v4316_v11 = vld [vmem:[%s9408_s1 + $0x720] sm:$0xff] }
0x11d2   :  { %6103 = vmatprep.subr.mxu1 %v6610_v0 }
0x11d3   :  { %6104 = vmatpush3.msra.mxu1 %v4263_v12  ;;  %v4315_v12 = vld [vmem:[%s9408_s1 + $0x718] sm:$0xff] }
0x11d4   :  { %6105 = vmatprep.subr.mxu1 %v6610_v0 }
0x11d5   :  { %6106 = vmatpush3.msra.mxu1 %v4262_v13  ;;  %v4314_v13 = vld [vmem:[%s9408_s1 + $0x710] sm:$0xff] }
0x11d6   :  { %6107 = vmatprep.subr.mxu1 %v6610_v0 }
0x11d7   :  { %6108 = vmatpush3.msra.mxu1 %v4261_v14  ;;  %v4293_v14 = vld [vmem:[%s9411_s2 + $0xd] ss:$0 sm:$0xff] }
0x11d8   :  { %6109 = vmatprep.subr.mxu1 %v6610_v0 }
0x11d9   :  { %6110 = vmatpush3.msra.mxu1 %v4260_v19  ;;  %v4313_v19 = vld [vmem:[%s9408_s1 + $0x708] sm:$0xff] }
0x11da   :  { %6111 = vmatprep.subr.mxu1 %v6610_v0 }
0x11db   :  { %6112 = vmatpush3.msra.mxu1 %v4259_v20  ;;  %v4312_v20 = vld [vmem:[%s9408_s1 + $0x700] sm:$0xff] }
0x11dc   :  { %6113 = vmatprep.subr.mxu1 %v6610_v0 }
0x11dd   :  { %6114 = vmatpush3.msra.mxu1 %v4258_v21  ;;  %v4345_v21 = vld [vmem:[%s9409_s3 + $0x778] sm:$0xff] }
0x11de   :  { %6153 = vmatprep.subr.mxu1 %v6610_v0 }
0x127e   :  { %v2305_v16 = vpop.f32.mrf.mxu1 }
0x127f   :  { %v2306_v17 = vadd.f32 %v4239_v15, %v2305_v16 }
0x1280   :  { %v6047_v18 = vpop.f32.mrf.mxu1 }
0x1281   :  { %6081 = vmatmul.mubr.f32.vlgmr.msra.gmra.mxu0 %v2306_v17 }
0x1282   :  { %6150 = vmatprep.mubr.msk.f32.mxu0 %vm6611_vm0, %v6610_v0  ;;  %6119 = vmatpush3.msra.mxu0 %v4291_v22  ;;  %v4344_v22 = vld [vmem:[%s9409_s3 + $0x770] sm:$0xff] }
0x1283   :  { %6120 = vmatprep.subr.mxu0 %v6610_v0 }
0x1284   :  { %6121 = vmatpush3.msra.mxu0 %v4290_v23  ;;  %v4343_v23 = vld [vmem:[%s9409_s3 + $0x768] sm:$0xff] }
0x1285   :  { %6122 = vmatprep.subr.mxu0 %v6610_v0 }
0x1286   :  { %6123 = vmatpush3.msra.mxu0 %v4289_v24  ;;  %v4342_v24 = vld [vmem:[%s9409_s3 + $0x760] sm:$0xff] }
0x1287   :  { %6124 = vmatprep.subr.mxu0 %v6610_v0 }
0x1288   :  { %6125 = vmatpush3.msra.mxu0 %v4288_v25  ;;  %v4341_v25 = vld [vmem:[%s9409_s3 + $0x758] sm:$0xff] }
0x1289   :  { %6126 = vmatprep.subr.mxu0 %v6610_v0 }
0x128a   :  { %6127 = vmatpush3.msra.mxu0 %v4287_v26  ;;  %v4340_v26 = vld [vmem:[%s9409_s3 + $0x750] sm:$0xff] }
0x128b   :  { %6128 = vmatprep.subr.mxu0 %v6610_v0 }
0x128c   :  { %6129 = vmatpush3.msra.mxu0 %v4286_v27  ;;  %v4339_v27 = vld [vmem:[%s9409_s3 + $0x748] sm:$0xff] }
0x128d   :  { %6130 = vmatprep.subr.mxu0 %v6610_v0 }
0x128e   :  { %6131 = vmatpush3.msra.mxu0 %v4285_v28  ;;  %v4338_v28 = vld [vmem:[%s9409_s3 + $0x740] sm:$0xff] }
0x128f   :  { %6132 = vmatprep.subr.mxu0 %v6610_v0 }
0x1290   :  { %6133 = vmatpush3.msra.mxu0 %v4284_v29  ;;  %v4337_v29 = vld [vmem:[%s9409_s3 + $0x738] sm:$0xff] }
0x1291   :  { %6134 = vmatprep.subr.mxu0 %v6610_v0 }
0x1292   :  { %6135 = vmatpush3.msra.mxu0 %v4283_v30  ;;  %v4336_v30 = vld [vmem:[%s9409_s3 + $0x730] sm:$0xff] }
0x1293   :  { %6136 = vmatprep.subr.mxu0 %v6610_v0 }
0x1294   :  { %6137 = vmatpush3.msra.mxu0 %v4282_v31  ;;  %v4335_v31 = vld [vmem:[%s9409_s3 + $0x728] sm:$0xff] }
0x1295   :  { %6138 = vmatprep.subr.mxu0 %v6610_v0 }
0x1296   :  { %6139 = vmatpush3.msra.mxu0 %v4281_v32  ;;  %v4334_v32 = vld [vmem:[%s9409_s3 + $0x720] sm:$0xff] }
0x1297   :  { %6140 = vmatprep.subr.mxu0 %v6610_v0 }
0x1298   :  { %6141 = vmatpush3.msra.mxu0 %v4280_v33  ;;  %v4333_v33 = vld [vmem:[%s9409_s3 + $0x718] sm:$0xff] }
0x1299   :  { %6142 = vmatprep.subr.mxu0 %v6610_v0 }
0x129a   :  { %6143 = vmatpush3.msra.mxu0 %v4279_v34  ;;  %v4311_v34 = vld [vmem:[%s9412_s4 + $0xd] ss:$0 sm:$0xff] }
0x129b   :  { %6144 = vmatprep.subr.mxu0 %v6610_v0 }
0x129c   :  { %6145 = vmatpush3.msra.mxu0 %v4278_v35 }
0x129d   :  { %6146 = vmatprep.subr.mxu0 %v6610_v0 }
0x129e   :  { %6147 = vmatpush3.msra.mxu0 %v4277_v41  ;;  %v4363_v41 = vld [vmem:[%s9408_s1 + $0x7f8] sm:$0xff] }
0x129f   :  { %6148 = vmatprep.subr.mxu0 %v6610_v0 }
0x12a0   :  { %6149 = vmatpush3.msra.mxu0 %v4276_v42  ;;  %v4362_v42 = vld [vmem:[%s9408_s1 + $0x7f0] sm:$0xff] }
0x12a1   :  { %6188 = vmatprep.subr.mxu0 %v6610_v0 }
0x1341   :  { %v2400_v37 = vpop.f32.mrf.mxu0 }
0x1342   :  { %v2401_v38 = vadd.f32 %v4257_v36, %v2400_v37 }
0x1343   :  { %v6082_v39 = vpop.f32.mrf.mxu0 }
0x1344   :  { %v2404_v40 = vmax.f32 %v2401_v38, 0.0  ;;  %v4332_v38 = vld [vmem:[%s9409_s3 + $0x710] sm:$0xff]  ;;  %v4331_v39 = vld [vmem:[%s9409_s3 + $0x708] sm:$0xff] }
0x1346   :  { %6116 = vmatmul.mubr.f32.vlgmr.msra.gmra.mxu1 %v2404_v40  ;;  %v4330_v40 = vld [vmem:[%s9409_s3 + $0x700] sm:$0xff] }
0x1347   :  { %6185 = vmatprep.mubr.msk.f32.mxu1 %vm6611_vm0, %v6610_v0  ;;  %6154 = vmatpush3.msra.mxu1 %v4309_v43  ;;  %v4361_v43 = vld [vmem:[%s9408_s1 + $0x7e8] sm:$0xff] }
0x1348   :  { %6155 = vmatprep.subr.mxu1 %v6610_v0 }
0x1349   :  { %6156 = vmatpush3.msra.mxu1 %v4308_v44  ;;  %v4360_v44 = vld [vmem:[%s9408_s1 + $0x7e0] sm:$0xff] }
0x134a   :  { %6157 = vmatprep.subr.mxu1 %v6610_v0 }
0x134b   :  { %6158 = vmatpush3.msra.mxu1 %v4307_v45  ;;  %v4359_v45 = vld [vmem:[%s9408_s1 + $0x7d8] sm:$0xff] }
0x134c   :  { %6159 = vmatprep.subr.mxu1 %v6610_v0 }
0x134d   :  { %6160 = vmatpush3.msra.mxu1 %v4306_v46  ;;  %v4358_v46 = vld [vmem:[%s9408_s1 + $0x7d0] sm:$0xff] }
0x134e   :  { %6161 = vmatprep.subr.mxu1 %v6610_v0 }
0x134f   :  { %6162 = vmatpush3.msra.mxu1 %v4305_v47  ;;  %v4357_v47 = vld [vmem:[%s9408_s1 + $0x7c8] sm:$0xff] }
0x1350   :  { %6163 = vmatprep.subr.mxu1 %v6610_v0 }
0x1351   :  { %6164 = vmatpush3.msra.mxu1 %v4304_v48  ;;  %v4356_v48 = vld [vmem:[%s9408_s1 + $0x7c0] sm:$0xff] }
0x1352   :  { %6165 = vmatprep.subr.mxu1 %v6610_v0 }
0x1353   :  { %6166 = vmatpush3.msra.mxu1 %v4303_v49  ;;  %v4355_v49 = vld [vmem:[%s9408_s1 + $0x7b8] sm:$0xff] }
0x1354   :  { %6167 = vmatprep.subr.mxu1 %v6610_v0 }
0x1355   :  { %6168 = vmatpush3.msra.mxu1 %v4302_v50  ;;  %v4354_v50 = vld [vmem:[%s9408_s1 + $0x7b0] sm:$0xff] }
0x1356   :  { %6169 = vmatprep.subr.mxu1 %v6610_v0 }
0x1357   :  { %6170 = vmatpush3.msra.mxu1 %v4301_v51  ;;  %v4353_v51 = vld [vmem:[%s9408_s1 + $0x7a8] sm:$0xff] }
0x1358   :  { %6171 = vmatprep.subr.mxu1 %v6610_v0 }
0x1359   :  { %6172 = vmatpush3.msra.mxu1 %v4300_v52  ;;  %v4352_v52 = vld [vmem:[%s9408_s1 + $0x7a0] sm:$0xff] }
0x135a   :  { %6173 = vmatprep.subr.mxu1 %v6610_v0 }
0x135b   :  { %6174 = vmatpush3.msra.mxu1 %v4299_v53  ;;  %v4351_v53 = vld [vmem:[%s9408_s1 + $0x798] sm:$0xff] }
0x135c   :  { %6175 = vmatprep.subr.mxu1 %v6610_v0 }
0x135d   :  { %6176 = vmatpush3.msra.mxu1 %v4298_v54  ;;  %v4350_v54 = vld [vmem:[%s9408_s1 + $0x790] sm:$0xff] }
0x135e   :  { %6177 = vmatprep.subr.mxu1 %v6610_v0 }
0x135f   :  { %6178 = vmatpush3.msra.mxu1 %v4297_v55  ;;  %v4329_v55 = vld [vmem:[%s9411_s2 + $0xe] ss:$0 sm:$0xff] }
0x1360   :  { %6179 = vmatprep.subr.mxu1 %v6610_v0 }
0x1361   :  { %6180 = vmatpush3.msra.mxu1 %v4296_v60  ;;  %v4349_v60 = vld [vmem:[%s9408_s1 + $0x788] sm:$0xff] }
0x1362   :  { %6181 = vmatprep.subr.mxu1 %v6610_v0 }
0x1363   :  { %6182 = vmatpush3.msra.mxu1 %v4295_v61  ;;  %v4348_v61 = vld [vmem:[%s9408_s1 + $0x780] sm:$0xff] }
0x1364   :  { %6183 = vmatprep.subr.mxu1 %v6610_v0 }
0x1365   :  { %6184 = vmatpush3.msra.mxu1 %v4294_v62  ;;  %v4381_v62 = vld [vmem:[%s9409_s3 + $0x7f8] sm:$0xff] }
0x1366   :  { %6223 = vmatprep.subr.mxu1 %v6610_v0 }
0x1406   :  { %v2496_v57 = vpop.f32.mrf.mxu1 }
0x1407   :  { %v2497_v58 = vadd.f32 %v4275_v56, %v2496_v57 }
0x1408   :  { %v6117_v59 = vpop.f32.mrf.mxu1 }
0x1409   :  { %6151 = vmatmul.mubr.f32.vlgmr.msra.gmra.mxu0 %v2497_v58 }
0x140a   :  { %6220 = vmatprep.mubr.msk.f32.mxu0 %vm6611_vm0, %v6610_v0  ;;  %6189 = vmatpush3.msra.mxu0 %v4327_v63  ;;  %v4380_v63 = vld [vmem:[%s9409_s3 + $0x7f0] sm:$0xff] }
0x140b   :  { %6190 = vmatprep.subr.mxu0 %v6610_v0 }
0x140c   :  { %6191 = vmatpush3.msra.mxu0 %v4326_v1  ;;  %v4379_v1 = vld [vmem:[%s9409_s3 + $0x7e8] sm:$0xff] }
0x140d   :  { %6192 = vmatprep.subr.mxu0 %v6610_v0 }
0x140e   :  { %6193 = vmatpush3.msra.mxu0 %v4325_v2  ;;  %v4378_v2 = vld [vmem:[%s9409_s3 + $0x7e0] sm:$0xff] }
0x140f   :  { %6194 = vmatprep.subr.mxu0 %v6610_v0 }
0x1410   :  { %6195 = vmatpush3.msra.mxu0 %v4324_v3  ;;  %v4377_v3 = vld [vmem:[%s9409_s3 + $0x7d8] sm:$0xff] }
0x1411   :  { %6196 = vmatprep.subr.mxu0 %v6610_v0 }
0x1412   :  { %6197 = vmatpush3.msra.mxu0 %v4323_v4  ;;  %v4376_v4 = vld [vmem:[%s9409_s3 + $0x7d0] sm:$0xff] }
0x1413   :  { %6198 = vmatprep.subr.mxu0 %v6610_v0 }
0x1414   :  { %6199 = vmatpush3.msra.mxu0 %v4322_v5  ;;  %v4375_v5 = vld [vmem:[%s9409_s3 + $0x7c8] sm:$0xff] }
0x1415   :  { %6200 = vmatprep.subr.mxu0 %v6610_v0 }
0x1416   :  { %6201 = vmatpush3.msra.mxu0 %v4321_v6  ;;  %v4374_v6 = vld [vmem:[%s9409_s3 + $0x7c0] sm:$0xff] }
0x1417   :  { %6202 = vmatprep.subr.mxu0 %v6610_v0 }
0x1418   :  { %6203 = vmatpush3.msra.mxu0 %v4320_v7  ;;  %v4373_v7 = vld [vmem:[%s9409_s3 + $0x7b8] sm:$0xff] }
0x1419   :  { %6204 = vmatprep.subr.mxu0 %v6610_v0 }
0x141a   :  { %6205 = vmatpush3.msra.mxu0 %v4319_v8  ;;  %v4372_v8 = vld [vmem:[%s9409_s3 + $0x7b0] sm:$0xff] }
0x141b   :  { %6206 = vmatprep.subr.mxu0 %v6610_v0 }
0x141c   :  { %6207 = vmatpush3.msra.mxu0 %v4318_v9  ;;  %v4371_v9 = vld [vmem:[%s9409_s3 + $0x7a8] sm:$0xff] }
0x141d   :  { %6208 = vmatprep.subr.mxu0 %v6610_v0 }
0x141e   :  { %6209 = vmatpush3.msra.mxu0 %v4317_v10  ;;  %v4370_v10 = vld [vmem:[%s9409_s3 + $0x7a0] sm:$0xff] }
0x141f   :  { %6210 = vmatprep.subr.mxu0 %v6610_v0 }
0x1420   :  { %6211 = vmatpush3.msra.mxu0 %v4316_v11  ;;  %v4369_v11 = vld [vmem:[%s9409_s3 + $0x798] sm:$0xff] }
0x1421   :  { %6212 = vmatprep.subr.mxu0 %v6610_v0 }
0x1422   :  { %6213 = vmatpush3.msra.mxu0 %v4315_v12  ;;  %v4347_v12 = vld [vmem:[%s9412_s4 + $0xe] ss:$0 sm:$0xff] }
0x1423   :  { %6214 = vmatprep.subr.mxu0 %v6610_v0 }
0x1424   :  { %6215 = vmatpush3.msra.mxu0 %v4314_v13 }
0x1425   :  { %6216 = vmatprep.subr.mxu0 %v6610_v0 }
0x1426   :  { %6217 = vmatpush3.msra.mxu0 %v4313_v19  ;;  %v4399_v19 = vld [vmem:[%s9408_s1 + $0x878] sm:$0xff] }
0x1427   :  { %6218 = vmatprep.subr.mxu0 %v6610_v0 }
0x1428   :  { %6219 = vmatpush3.msra.mxu0 %v4312_v20  ;;  %v4398_v20 = vld [vmem:[%s9408_s1 + $0x870] sm:$0xff] }
0x1429   :  { %6258 = vmatprep.subr.mxu0 %v6610_v0 }
0x14c9   :  { %v2591_v15 = vpop.f32.mrf.mxu0 }
0x14ca   :  { %v2592_v16 = vadd.f32 %v4293_v14, %v2591_v15 }
0x14cb   :  { %v6152_v17 = vpop.f32.mrf.mxu0 }
0x14cc   :  { %v2595_v18 = vmax.f32 %v2592_v16, 0.0  ;;  %v4368_v16 = vld [vmem:[%s9409_s3 + $0x790] sm:$0xff]  ;;  %v4367_v17 = vld [vmem:[%s9409_s3 + $0x788] sm:$0xff] }
0x14ce   :  { %6186 = vmatmul.mubr.f32.vlgmr.msra.gmra.mxu1 %v2595_v18  ;;  %v4366_v18 = vld [vmem:[%s9409_s3 + $0x780] sm:$0xff] }
0x14cf   :  { %6255 = vmatprep.mubr.msk.f32.mxu1 %vm6611_vm0, %v6610_v0  ;;  %6224 = vmatpush3.msra.mxu1 %v4345_v21  ;;  %v4397_v21 = vld [vmem:[%s9408_s1 + $0x868] sm:$0xff] }
0x14d0   :  { %6225 = vmatprep.subr.mxu1 %v6610_v0 }
0x14d1   :  { %6226 = vmatpush3.msra.mxu1 %v4344_v22  ;;  %v4396_v22 = vld [vmem:[%s9408_s1 + $0x860] sm:$0xff] }
0x14d2   :  { %6227 = vmatprep.subr.mxu1 %v6610_v0 }
0x14d3   :  { %6228 = vmatpush3.msra.mxu1 %v4343_v23  ;;  %v4395_v23 = vld [vmem:[%s9408_s1 + $0x858] sm:$0xff] }
0x14d4   :  { %6229 = vmatprep.subr.mxu1 %v6610_v0 }
0x14d5   :  { %6230 = vmatpush3.msra.mxu1 %v4342_v24  ;;  %v4394_v24 = vld [vmem:[%s9408_s1 + $0x850] sm:$0xff] }
0x14d6   :  { %6231 = vmatprep.subr.mxu1 %v6610_v0 }
0x14d7   :  { %6232 = vmatpush3.msra.mxu1 %v4341_v25  ;;  %v4393_v25 = vld [vmem:[%s9408_s1 + $0x848] sm:$0xff] }
0x14d8   :  { %6233 = vmatprep.subr.mxu1 %v6610_v0 }
0x14d9   :  { %6234 = vmatpush3.msra.mxu1 %v4340_v26  ;;  %v4392_v26 = vld [vmem:[%s9408_s1 + $0x840] sm:$0xff] }
0x14da   :  { %6235 = vmatprep.subr.mxu1 %v6610_v0 }
0x14db   :  { %6236 = vmatpush3.msra.mxu1 %v4339_v27  ;;  %v4391_v27 = vld [vmem:[%s9408_s1 + $0x838] sm:$0xff] }
0x14dc   :  { %6237 = vmatprep.subr.mxu1 %v6610_v0 }
0x14dd   :  { %6238 = vmatpush3.msra.mxu1 %v4338_v28  ;;  %v4390_v28 = vld [vmem:[%s9408_s1 + $0x830] sm:$0xff] }
0x14de   :  { %6239 = vmatprep.subr.mxu1 %v6610_v0 }
0x14df   :  { %6240 = vmatpush3.msra.mxu1 %v4337_v29  ;;  %v4389_v29 = vld [vmem:[%s9408_s1 + $0x828] sm:$0xff] }
0x14e0   :  { %6241 = vmatprep.subr.mxu1 %v6610_v0 }
0x14e1   :  { %6242 = vmatpush3.msra.mxu1 %v4336_v30  ;;  %v4388_v30 = vld [vmem:[%s9408_s1 + $0x820] sm:$0xff] }
0x14e2   :  { %6243 = vmatprep.subr.mxu1 %v6610_v0 }
0x14e3   :  { %6244 = vmatpush3.msra.mxu1 %v4335_v31  ;;  %v4387_v31 = vld [vmem:[%s9408_s1 + $0x818] sm:$0xff] }
0x14e4   :  { %6245 = vmatprep.subr.mxu1 %v6610_v0 }
0x14e5   :  { %6246 = vmatpush3.msra.mxu1 %v4334_v32  ;;  %v4386_v32 = vld [vmem:[%s9408_s1 + $0x810] sm:$0xff] }
0x14e6   :  { %6247 = vmatprep.subr.mxu1 %v6610_v0 }
0x14e7   :  { %6248 = vmatpush3.msra.mxu1 %v4333_v33  ;;  %v4365_v33 = vld [vmem:[%s9411_s2 + $0xf] ss:$0 sm:$0xff] }
0x14e8   :  { %6249 = vmatprep.subr.mxu1 %v6610_v0 }
0x14e9   :  { %6250 = vmatpush3.msra.mxu1 %v4332_v38  ;;  %v4385_v38 = vld [vmem:[%s9408_s1 + $0x808] sm:$0xff] }
0x14ea   :  { %6251 = vmatprep.subr.mxu1 %v6610_v0 }
0x14eb   :  { %6252 = vmatpush3.msra.mxu1 %v4331_v39  ;;  %v4384_v39 = vld [vmem:[%s9408_s1 + $0x800] sm:$0xff] }
0x14ec   :  { %6253 = vmatprep.subr.mxu1 %v6610_v0 }
0x14ed   :  { %6254 = vmatpush3.msra.mxu1 %v4330_v40  ;;  %v4417_v40 = vld [vmem:[%s9409_s3 + $0x878] sm:$0xff] }
0x14ee   :  { %6293 = vmatprep.subr.mxu1 %v6610_v0 }
0x158e   :  { %v2687_v35 = vpop.f32.mrf.mxu1 }
0x158f   :  { %v2688_v36 = vadd.f32 %v4311_v34, %v2687_v35 }
0x1590   :  { %v6187_v37 = vpop.f32.mrf.mxu1 }
0x1591   :  { %6221 = vmatmul.mubr.f32.vlgmr.msra.gmra.mxu0 %v2688_v36 }
0x1592   :  { %6290 = vmatprep.mubr.msk.f32.mxu0 %vm6611_vm0, %v6610_v0  ;;  %6259 = vmatpush3.msra.mxu0 %v4363_v41  ;;  %v4416_v41 = vld [vmem:[%s9409_s3 + $0x870] sm:$0xff] }
0x1593   :  { %6260 = vmatprep.subr.mxu0 %v6610_v0 }
0x1594   :  { %6261 = vmatpush3.msra.mxu0 %v4362_v42  ;;  %v4415_v42 = vld [vmem:[%s9409_s3 + $0x868] sm:$0xff] }
0x1595   :  { %6262 = vmatprep.subr.mxu0 %v6610_v0 }
0x1596   :  { %6263 = vmatpush3.msra.mxu0 %v4361_v43  ;;  %v4414_v43 = vld [vmem:[%s9409_s3 + $0x860] sm:$0xff] }
0x1597   :  { %6264 = vmatprep.subr.mxu0 %v6610_v0 }
0x1598   :  { %6265 = vmatpush3.msra.mxu0 %v4360_v44  ;;  %v4413_v44 = vld [vmem:[%s9409_s3 + $0x858] sm:$0xff] }
0x1599   :  { %6266 = vmatprep.subr.mxu0 %v6610_v0 }
0x159a   :  { %6267 = vmatpush3.msra.mxu0 %v4359_v45  ;;  %v4412_v45 = vld [vmem:[%s9409_s3 + $0x850] sm:$0xff] }
0x159b   :  { %6268 = vmatprep.subr.mxu0 %v6610_v0 }
0x159c   :  { %6269 = vmatpush3.msra.mxu0 %v4358_v46  ;;  %v4411_v46 = vld [vmem:[%s9409_s3 + $0x848] sm:$0xff] }
0x159d   :  { %6270 = vmatprep.subr.mxu0 %v6610_v0 }
0x159e   :  { %6271 = vmatpush3.msra.mxu0 %v4357_v47  ;;  %v4410_v47 = vld [vmem:[%s9409_s3 + $0x840] sm:$0xff] }
0x159f   :  { %6272 = vmatprep.subr.mxu0 %v6610_v0 }
0x15a0   :  { %6273 = vmatpush3.msra.mxu0 %v4356_v48  ;;  %v4409_v48 = vld [vmem:[%s9409_s3 + $0x838] sm:$0xff] }
0x15a1   :  { %6274 = vmatprep.subr.mxu0 %v6610_v0 }
0x15a2   :  { %6275 = vmatpush3.msra.mxu0 %v4355_v49  ;;  %v4408_v49 = vld [vmem:[%s9409_s3 + $0x830] sm:$0xff] }
0x15a3   :  { %6276 = vmatprep.subr.mxu0 %v6610_v0 }
0x15a4   :  { %6277 = vmatpush3.msra.mxu0 %v4354_v50  ;;  %v4407_v50 = vld [vmem:[%s9409_s3 + $0x828] sm:$0xff] }
0x15a5   :  { %6278 = vmatprep.subr.mxu0 %v6610_v0 }
0x15a6   :  { %6279 = vmatpush3.msra.mxu0 %v4353_v51  ;;  %v4406_v51 = vld [vmem:[%s9409_s3 + $0x820] sm:$0xff] }
0x15a7   :  { %6280 = vmatprep.subr.mxu0 %v6610_v0 }
0x15a8   :  { %6281 = vmatpush3.msra.mxu0 %v4352_v52  ;;  %v4405_v52 = vld [vmem:[%s9409_s3 + $0x818] sm:$0xff] }
0x15a9   :  { %6282 = vmatprep.subr.mxu0 %v6610_v0 }
0x15aa   :  { %6283 = vmatpush3.msra.mxu0 %v4351_v53  ;;  %v4383_v53 = vld [vmem:[%s9412_s4 + $0xf] ss:$0 sm:$0xff] }
0x15ab   :  { %6284 = vmatprep.subr.mxu0 %v6610_v0 }
0x15ac   :  { %6285 = vmatpush3.msra.mxu0 %v4350_v54 }
0x15ad   :  { %6286 = vmatprep.subr.mxu0 %v6610_v0 }
0x15ae   :  { %6287 = vmatpush3.msra.mxu0 %v4349_v60  ;;  %v4435_v60 = vld [vmem:[%s9408_s1 + $0x8f8] sm:$0xff] }
0x15af   :  { %6288 = vmatprep.subr.mxu0 %v6610_v0 }
0x15b0   :  { %6289 = vmatpush3.msra.mxu0 %v4348_v61  ;;  %v4434_v61 = vld [vmem:[%s9408_s1 + $0x8f0] sm:$0xff] }
0x15b1   :  { %6328 = vmatprep.subr.mxu0 %v6610_v0 }
0x1651   :  { %v2782_v56 = vpop.f32.mrf.mxu0 }
0x1652   :  { %v2783_v57 = vadd.f32 %v4329_v55, %v2782_v56 }
0x1653   :  { %v6222_v58 = vpop.f32.mrf.mxu0 }
0x1654   :  { %v2786_v59 = vmax.f32 %v2783_v57, 0.0  ;;  %v4404_v57 = vld [vmem:[%s9409_s3 + $0x810] sm:$0xff]  ;;  %v4403_v58 = vld [vmem:[%s9409_s3 + $0x808] sm:$0xff] }
0x1656   :  { %6256 = vmatmul.mubr.f32.vlgmr.msra.gmra.mxu1 %v2786_v59  ;;  %v4402_v59 = vld [vmem:[%s9409_s3 + $0x800] sm:$0xff] }
0x1657   :  { %6325 = vmatprep.mubr.msk.f32.mxu1 %vm6611_vm0, %v6610_v0  ;;  %6294 = vmatpush3.msra.mxu1 %v4381_v62  ;;  %v4433_v62 = vld [vmem:[%s9408_s1 + $0x8e8] sm:$0xff] }
0x1658   :  { %6295 = vmatprep.subr.mxu1 %v6610_v0 }
0x1659   :  { %6296 = vmatpush3.msra.mxu1 %v4380_v63  ;;  %v4432_v63 = vld [vmem:[%s9408_s1 + $0x8e0] sm:$0xff] }
0x165a   :  { %6297 = vmatprep.subr.mxu1 %v6610_v0 }
0x165b   :  { %6298 = vmatpush3.msra.mxu1 %v4379_v1  ;;  %v4431_v1 = vld [vmem:[%s9408_s1 + $0x8d8] sm:$0xff] }
0x165c   :  { %6299 = vmatprep.subr.mxu1 %v6610_v0 }
0x165d   :  { %6300 = vmatpush3.msra.mxu1 %v4378_v2  ;;  %v4430_v2 = vld [vmem:[%s9408_s1 + $0x8d0] sm:$0xff] }
0x165e   :  { %6301 = vmatprep.subr.mxu1 %v6610_v0 }
0x165f   :  { %6302 = vmatpush3.msra.mxu1 %v4377_v3  ;;  %v4429_v3 = vld [vmem:[%s9408_s1 + $0x8c8] sm:$0xff] }
0x1660   :  { %6303 = vmatprep.subr.mxu1 %v6610_v0 }
0x1661   :  { %6304 = vmatpush3.msra.mxu1 %v4376_v4  ;;  %v4428_v4 = vld [vmem:[%s9408_s1 + $0x8c0] sm:$0xff] }
0x1662   :  { %6305 = vmatprep.subr.mxu1 %v6610_v0 }
0x1663   :  { %6306 = vmatpush3.msra.mxu1 %v4375_v5  ;;  %v4427_v5 = vld [vmem:[%s9408_s1 + $0x8b8] sm:$0xff] }
0x1664   :  { %6307 = vmatprep.subr.mxu1 %v6610_v0 }
0x1665   :  { %6308 = vmatpush3.msra.mxu1 %v4374_v6  ;;  %v4426_v6 = vld [vmem:[%s9408_s1 + $0x8b0] sm:$0xff] }
0x1666   :  { %6309 = vmatprep.subr.mxu1 %v6610_v0 }
0x1667   :  { %6310 = vmatpush3.msra.mxu1 %v4373_v7  ;;  %v4425_v7 = vld [vmem:[%s9408_s1 + $0x8a8] sm:$0xff] }
0x1668   :  { %6311 = vmatprep.subr.mxu1 %v6610_v0 }
0x1669   :  { %6312 = vmatpush3.msra.mxu1 %v4372_v8  ;;  %v4424_v8 = vld [vmem:[%s9408_s1 + $0x8a0] sm:$0xff] }
0x166a   :  { %6313 = vmatprep.subr.mxu1 %v6610_v0 }
0x166b   :  { %6314 = vmatpush3.msra.mxu1 %v4371_v9  ;;  %v4423_v9 = vld [vmem:[%s9408_s1 + $0x898] sm:$0xff] }
0x166c   :  { %6315 = vmatprep.subr.mxu1 %v6610_v0 }
0x166d   :  { %6316 = vmatpush3.msra.mxu1 %v4370_v10  ;;  %v4422_v10 = vld [vmem:[%s9408_s1 + $0x890] sm:$0xff] }
0x166e   :  { %6317 = vmatprep.subr.mxu1 %v6610_v0 }
0x166f   :  { %6318 = vmatpush3.msra.mxu1 %v4369_v11  ;;  %v4401_v11 = vld [vmem:[%s9411_s2 + $0x10] ss:$0 sm:$0xff] }
0x1670   :  { %6319 = vmatprep.subr.mxu1 %v6610_v0 }
0x1671   :  { %6320 = vmatpush3.msra.mxu1 %v4368_v16  ;;  %v4421_v16 = vld [vmem:[%s9408_s1 + $0x888] sm:$0xff] }
0x1672   :  { %6321 = vmatprep.subr.mxu1 %v6610_v0 }
0x1673   :  { %6322 = vmatpush3.msra.mxu1 %v4367_v17  ;;  %v4420_v17 = vld [vmem:[%s9408_s1 + $0x880] sm:$0xff] }
0x1674   :  { %6323 = vmatprep.subr.mxu1 %v6610_v0 }
0x1675   :  { %6324 = vmatpush3.msra.mxu1 %v4366_v18  ;;  %v4453_v18 = vld [vmem:[%s9409_s3 + $0x8f8] sm:$0xff] }
0x1676   :  { %6363 = vmatprep.subr.mxu1 %v6610_v0 }
0x1716   :  { %v2878_v13 = vpop.f32.mrf.mxu1 }
0x1717   :  { %v2879_v14 = vadd.f32 %v4347_v12, %v2878_v13 }
0x1718   :  { %v6257_v15 = vpop.f32.mrf.mxu1 }
0x1719   :  { %6291 = vmatmul.mubr.f32.vlgmr.msra.gmra.mxu0 %v2879_v14 }
0x171a   :  { %6360 = vmatprep.mubr.msk.f32.mxu0 %vm6611_vm0, %v6610_v0  ;;  %6329 = vmatpush3.msra.mxu0 %v4399_v19  ;;  %v4452_v19 = vld [vmem:[%s9409_s3 + $0x8f0] sm:$0xff] }
0x171b   :  { %6330 = vmatprep.subr.mxu0 %v6610_v0 }
0x171c   :  { %6331 = vmatpush3.msra.mxu0 %v4398_v20  ;;  %v4451_v20 = vld [vmem:[%s9409_s3 + $0x8e8] sm:$0xff] }
0x171d   :  { %6332 = vmatprep.subr.mxu0 %v6610_v0 }
0x171e   :  { %6333 = vmatpush3.msra.mxu0 %v4397_v21  ;;  %v4450_v21 = vld [vmem:[%s9409_s3 + $0x8e0] sm:$0xff] }
0x171f   :  { %6334 = vmatprep.subr.mxu0 %v6610_v0 }
0x1720   :  { %6335 = vmatpush3.msra.mxu0 %v4396_v22  ;;  %v4449_v22 = vld [vmem:[%s9409_s3 + $0x8d8] sm:$0xff] }
0x1721   :  { %6336 = vmatprep.subr.mxu0 %v6610_v0 }
0x1722   :  { %6337 = vmatpush3.msra.mxu0 %v4395_v23  ;;  %v4448_v23 = vld [vmem:[%s9409_s3 + $0x8d0] sm:$0xff] }
0x1723   :  { %6338 = vmatprep.subr.mxu0 %v6610_v0 }
0x1724   :  { %6339 = vmatpush3.msra.mxu0 %v4394_v24  ;;  %v4447_v24 = vld [vmem:[%s9409_s3 + $0x8c8] sm:$0xff] }
0x1725   :  { %6340 = vmatprep.subr.mxu0 %v6610_v0 }
0x1726   :  { %6341 = vmatpush3.msra.mxu0 %v4393_v25  ;;  %v4446_v25 = vld [vmem:[%s9409_s3 + $0x8c0] sm:$0xff] }
0x1727   :  { %6342 = vmatprep.subr.mxu0 %v6610_v0 }
0x1728   :  { %6343 = vmatpush3.msra.mxu0 %v4392_v26  ;;  %v4445_v26 = vld [vmem:[%s9409_s3 + $0x8b8] sm:$0xff] }
0x1729   :  { %6344 = vmatprep.subr.mxu0 %v6610_v0 }
0x172a   :  { %6345 = vmatpush3.msra.mxu0 %v4391_v27  ;;  %v4444_v27 = vld [vmem:[%s9409_s3 + $0x8b0] sm:$0xff] }
0x172b   :  { %6346 = vmatprep.subr.mxu0 %v6610_v0 }
0x172c   :  { %6347 = vmatpush3.msra.mxu0 %v4390_v28  ;;  %v4443_v28 = vld [vmem:[%s9409_s3 + $0x8a8] sm:$0xff] }
0x172d   :  { %6348 = vmatprep.subr.mxu0 %v6610_v0 }
0x172e   :  { %6349 = vmatpush3.msra.mxu0 %v4389_v29  ;;  %v4442_v29 = vld [vmem:[%s9409_s3 + $0x8a0] sm:$0xff] }
0x172f   :  { %6350 = vmatprep.subr.mxu0 %v6610_v0 }
0x1730   :  { %6351 = vmatpush3.msra.mxu0 %v4388_v30  ;;  %v4441_v30 = vld [vmem:[%s9409_s3 + $0x898] sm:$0xff] }
0x1731   :  { %6352 = vmatprep.subr.mxu0 %v6610_v0 }
0x1732   :  { %6353 = vmatpush3.msra.mxu0 %v4387_v31  ;;  %v4419_v31 = vld [vmem:[%s9412_s4 + $0x10] ss:$0 sm:$0xff] }
0x1733   :  { %6354 = vmatprep.subr.mxu0 %v6610_v0 }
0x1734   :  { %6355 = vmatpush3.msra.mxu0 %v4386_v32 }
0x1735   :  { %6356 = vmatprep.subr.mxu0 %v6610_v0 }
0x1736   :  { %6357 = vmatpush3.msra.mxu0 %v4385_v38  ;;  %v4471_v38 = vld [vmem:[%s9408_s1 + $0x978] sm:$0xff] }
0x1737   :  { %6358 = vmatprep.subr.mxu0 %v6610_v0 }
0x1738   :  { %6359 = vmatpush3.msra.mxu0 %v4384_v39  ;;  %v4470_v39 = vld [vmem:[%s9408_s1 + $0x970] sm:$0xff] }
0x1739   :  { %6398 = vmatprep.subr.mxu0 %v6610_v0 }
0x17d9   :  { %v2973_v34 = vpop.f32.mrf.mxu0 }
0x17da   :  { %v2974_v35 = vadd.f32 %v4365_v33, %v2973_v34 }
0x17db   :  { %v6292_v36 = vpop.f32.mrf.mxu0 }
0x17dc   :  { %v2977_v37 = vmax.f32 %v2974_v35, 0.0  ;;  %v4440_v35 = vld [vmem:[%s9409_s3 + $0x890] sm:$0xff]  ;;  %v4439_v36 = vld [vmem:[%s9409_s3 + $0x888] sm:$0xff] }
0x17de   :  { %6326 = vmatmul.mubr.f32.vlgmr.msra.gmra.mxu1 %v2977_v37  ;;  %v4438_v37 = vld [vmem:[%s9409_s3 + $0x880] sm:$0xff] }
0x17df   :  { %6395 = vmatprep.mubr.msk.f32.mxu1 %vm6611_vm0, %v6610_v0  ;;  %6364 = vmatpush3.msra.mxu1 %v4417_v40  ;;  %v4469_v40 = vld [vmem:[%s9408_s1 + $0x968] sm:$0xff] }
0x17e0   :  { %6365 = vmatprep.subr.mxu1 %v6610_v0 }
0x17e1   :  { %6366 = vmatpush3.msra.mxu1 %v4416_v41  ;;  %v4468_v41 = vld [vmem:[%s9408_s1 + $0x960] sm:$0xff] }
0x17e2   :  { %6367 = vmatprep.subr.mxu1 %v6610_v0 }
0x17e3   :  { %6368 = vmatpush3.msra.mxu1 %v4415_v42  ;;  %v4467_v42 = vld [vmem:[%s9408_s1 + $0x958] sm:$0xff] }
0x17e4   :  { %6369 = vmatprep.subr.mxu1 %v6610_v0 }
0x17e5   :  { %6370 = vmatpush3.msra.mxu1 %v4414_v43  ;;  %v4466_v43 = vld [vmem:[%s9408_s1 + $0x950] sm:$0xff] }
0x17e6   :  { %6371 = vmatprep.subr.mxu1 %v6610_v0 }
0x17e7   :  { %6372 = vmatpush3.msra.mxu1 %v4413_v44  ;;  %v4465_v44 = vld [vmem:[%s9408_s1 + $0x948] sm:$0xff] }
0x17e8   :  { %6373 = vmatprep.subr.mxu1 %v6610_v0 }
0x17e9   :  { %6374 = vmatpush3.msra.mxu1 %v4412_v45  ;;  %v4464_v45 = vld [vmem:[%s9408_s1 + $0x940] sm:$0xff] }
0x17ea   :  { %6375 = vmatprep.subr.mxu1 %v6610_v0 }
0x17eb   :  { %6376 = vmatpush3.msra.mxu1 %v4411_v46  ;;  %v4463_v46 = vld [vmem:[%s9408_s1 + $0x938] sm:$0xff] }
0x17ec   :  { %6377 = vmatprep.subr.mxu1 %v6610_v0 }
0x17ed   :  { %6378 = vmatpush3.msra.mxu1 %v4410_v47  ;;  %v4462_v47 = vld [vmem:[%s9408_s1 + $0x930] sm:$0xff] }
0x17ee   :  { %6379 = vmatprep.subr.mxu1 %v6610_v0 }
0x17ef   :  { %6380 = vmatpush3.msra.mxu1 %v4409_v48  ;;  %v4461_v48 = vld [vmem:[%s9408_s1 + $0x928] sm:$0xff] }
0x17f0   :  { %6381 = vmatprep.subr.mxu1 %v6610_v0 }
0x17f1   :  { %6382 = vmatpush3.msra.mxu1 %v4408_v49  ;;  %v4460_v49 = vld [vmem:[%s9408_s1 + $0x920] sm:$0xff] }
0x17f2   :  { %6383 = vmatprep.subr.mxu1 %v6610_v0 }
0x17f3   :  { %6384 = vmatpush3.msra.mxu1 %v4407_v50  ;;  %v4459_v50 = vld [vmem:[%s9408_s1 + $0x918] sm:$0xff] }
0x17f4   :  { %6385 = vmatprep.subr.mxu1 %v6610_v0 }
0x17f5   :  { %6386 = vmatpush3.msra.mxu1 %v4406_v51  ;;  %v4458_v51 = vld [vmem:[%s9408_s1 + $0x910] sm:$0xff] }
0x17f6   :  { %6387 = vmatprep.subr.mxu1 %v6610_v0 }
0x17f7   :  { %6388 = vmatpush3.msra.mxu1 %v4405_v52  ;;  %v4437_v52 = vld [vmem:[%s9411_s2 + $0x11] ss:$0 sm:$0xff] }
0x17f8   :  { %6389 = vmatprep.subr.mxu1 %v6610_v0 }
0x17f9   :  { %6390 = vmatpush3.msra.mxu1 %v4404_v57  ;;  %v4457_v57 = vld [vmem:[%s9408_s1 + $0x908] sm:$0xff] }
0x17fa   :  { %6391 = vmatprep.subr.mxu1 %v6610_v0 }
0x17fb   :  { %6392 = vmatpush3.msra.mxu1 %v4403_v58  ;;  %v4456_v58 = vld [vmem:[%s9408_s1 + $0x900] sm:$0xff] }
0x17fc   :  { %6393 = vmatprep.subr.mxu1 %v6610_v0 }
0x17fd   :  { %6394 = vmatpush3.msra.mxu1 %v4402_v59  ;;  %v4489_v59 = vld [vmem:[%s9409_s3 + $0x978] sm:$0xff] }
0x17fe   :  { %6433 = vmatprep.subr.mxu1 %v6610_v0 }
0x189e   :  { %v3069_v54 = vpop.f32.mrf.mxu1 }
0x189f   :  { %v3070_v55 = vadd.f32 %v4383_v53, %v3069_v54 }
0x18a0   :  { %v6327_v56 = vpop.f32.mrf.mxu1 }
0x18a1   :  { %6361 = vmatmul.mubr.f32.vlgmr.msra.gmra.mxu0 %v3070_v55 }
0x18a2   :  { %6430 = vmatprep.mubr.msk.f32.mxu0 %vm6611_vm0, %v6610_v0  ;;  %6399 = vmatpush3.msra.mxu0 %v4435_v60  ;;  %v4488_v60 = vld [vmem:[%s9409_s3 + $0x970] sm:$0xff] }
0x18a3   :  { %6400 = vmatprep.subr.mxu0 %v6610_v0 }
0x18a4   :  { %6401 = vmatpush3.msra.mxu0 %v4434_v61  ;;  %v4487_v61 = vld [vmem:[%s9409_s3 + $0x968] sm:$0xff] }
0x18a5   :  { %6402 = vmatprep.subr.mxu0 %v6610_v0 }
0x18a6   :  { %6403 = vmatpush3.msra.mxu0 %v4433_v62  ;;  %v4486_v62 = vld [vmem:[%s9409_s3 + $0x960] sm:$0xff] }
0x18a7   :  { %6404 = vmatprep.subr.mxu0 %v6610_v0 }
0x18a8   :  { %6405 = vmatpush3.msra.mxu0 %v4432_v63  ;;  %v4485_v63 = vld [vmem:[%s9409_s3 + $0x958] sm:$0xff] }
0x18a9   :  { %6406 = vmatprep.subr.mxu0 %v6610_v0 }
0x18aa   :  { %6407 = vmatpush3.msra.mxu0 %v4431_v1  ;;  %v4484_v1 = vld [vmem:[%s9409_s3 + $0x950] sm:$0xff] }
0x18ab   :  { %6408 = vmatprep.subr.mxu0 %v6610_v0 }
0x18ac   :  { %6409 = vmatpush3.msra.mxu0 %v4430_v2  ;;  %v4483_v2 = vld [vmem:[%s9409_s3 + $0x948] sm:$0xff] }
0x18ad   :  { %6410 = vmatprep.subr.mxu0 %v6610_v0 }
0x18ae   :  { %6411 = vmatpush3.msra.mxu0 %v4429_v3  ;;  %v4482_v3 = vld [vmem:[%s9409_s3 + $0x940] sm:$0xff] }
0x18af   :  { %6412 = vmatprep.subr.mxu0 %v6610_v0 }
0x18b0   :  { %6413 = vmatpush3.msra.mxu0 %v4428_v4  ;;  %v4481_v4 = vld [vmem:[%s9409_s3 + $0x938] sm:$0xff] }
0x18b1   :  { %6414 = vmatprep.subr.mxu0 %v6610_v0 }
0x18b2   :  { %6415 = vmatpush3.msra.mxu0 %v4427_v5  ;;  %v4480_v5 = vld [vmem:[%s9409_s3 + $0x930] sm:$0xff] }
0x18b3   :  { %6416 = vmatprep.subr.mxu0 %v6610_v0 }
0x18b4   :  { %6417 = vmatpush3.msra.mxu0 %v4426_v6  ;;  %v4479_v6 = vld [vmem:[%s9409_s3 + $0x928] sm:$0xff] }
0x18b5   :  { %6418 = vmatprep.subr.mxu0 %v6610_v0 }
0x18b6   :  { %6419 = vmatpush3.msra.mxu0 %v4425_v7  ;;  %v4478_v7 = vld [vmem:[%s9409_s3 + $0x920] sm:$0xff] }
0x18b7   :  { %6420 = vmatprep.subr.mxu0 %v6610_v0 }
0x18b8   :  { %6421 = vmatpush3.msra.mxu0 %v4424_v8  ;;  %v4477_v8 = vld [vmem:[%s9409_s3 + $0x918] sm:$0xff] }
0x18b9   :  { %6422 = vmatprep.subr.mxu0 %v6610_v0 }
0x18ba   :  { %6423 = vmatpush3.msra.mxu0 %v4423_v9  ;;  %v4455_v9 = vld [vmem:[%s9412_s4 + $0x11] ss:$0 sm:$0xff] }
0x18bb   :  { %6424 = vmatprep.subr.mxu0 %v6610_v0 }
0x18bc   :  { %6425 = vmatpush3.msra.mxu0 %v4422_v10 }
0x18bd   :  { %6426 = vmatprep.subr.mxu0 %v6610_v0 }
0x18be   :  { %6427 = vmatpush3.msra.mxu0 %v4421_v16  ;;  %v4507_v16 = vld [vmem:[%s9408_s1 + $0x9f8] sm:$0xff] }
0x18bf   :  { %6428 = vmatprep.subr.mxu0 %v6610_v0 }
0x18c0   :  { %6429 = vmatpush3.msra.mxu0 %v4420_v17  ;;  %v4506_v17 = vld [vmem:[%s9408_s1 + $0x9f0] sm:$0xff] }
0x18c1   :  { %6468 = vmatprep.subr.mxu0 %v6610_v0 }
0x1961   :  { %v3164_v12 = vpop.f32.mrf.mxu0 }
0x1962   :  { %v3165_v13 = vadd.f32 %v4401_v11, %v3164_v12 }
0x1963   :  { %v6362_v14 = vpop.f32.mrf.mxu0 }
0x1964   :  { %v3168_v15 = vmax.f32 %v3165_v13, 0.0  ;;  %v4476_v13 = vld [vmem:[%s9409_s3 + $0x910] sm:$0xff]  ;;  %v4475_v14 = vld [vmem:[%s9409_s3 + $0x908] sm:$0xff] }
0x1966   :  { %6396 = vmatmul.mubr.f32.vlgmr.msra.gmra.mxu1 %v3168_v15  ;;  %v4474_v15 = vld [vmem:[%s9409_s3 + $0x900] sm:$0xff] }
0x1967   :  { %6465 = vmatprep.mubr.msk.f32.mxu1 %vm6611_vm0, %v6610_v0  ;;  %6434 = vmatpush3.msra.mxu1 %v4453_v18  ;;  %v4505_v18 = vld [vmem:[%s9408_s1 + $0x9e8] sm:$0xff] }
0x1968   :  { %6435 = vmatprep.subr.mxu1 %v6610_v0 }
0x1969   :  { %6436 = vmatpush3.msra.mxu1 %v4452_v19  ;;  %v4504_v19 = vld [vmem:[%s9408_s1 + $0x9e0] sm:$0xff] }
0x196a   :  { %6437 = vmatprep.subr.mxu1 %v6610_v0 }
0x196b   :  { %6438 = vmatpush3.msra.mxu1 %v4451_v20  ;;  %v4503_v20 = vld [vmem:[%s9408_s1 + $0x9d8] sm:$0xff] }
0x196c   :  { %6439 = vmatprep.subr.mxu1 %v6610_v0 }
0x196d   :  { %6440 = vmatpush3.msra.mxu1 %v4450_v21  ;;  %v4502_v21 = vld [vmem:[%s9408_s1 + $0x9d0] sm:$0xff] }
0x196e   :  { %6441 = vmatprep.subr.mxu1 %v6610_v0 }
0x196f   :  { %6442 = vmatpush3.msra.mxu1 %v4449_v22  ;;  %v4501_v22 = vld [vmem:[%s9408_s1 + $0x9c8] sm:$0xff] }
0x1970   :  { %6443 = vmatprep.subr.mxu1 %v6610_v0 }
0x1971   :  { %6444 = vmatpush3.msra.mxu1 %v4448_v23  ;;  %v4500_v23 = vld [vmem:[%s9408_s1 + $0x9c0] sm:$0xff] }
0x1972   :  { %6445 = vmatprep.subr.mxu1 %v6610_v0 }
0x1973   :  { %6446 = vmatpush3.msra.mxu1 %v4447_v24  ;;  %v4499_v24 = vld [vmem:[%s9408_s1 + $0x9b8] sm:$0xff] }
0x1974   :  { %6447 = vmatprep.subr.mxu1 %v6610_v0 }
0x1975   :  { %6448 = vmatpush3.msra.mxu1 %v4446_v25  ;;  %v4498_v25 = vld [vmem:[%s9408_s1 + $0x9b0] sm:$0xff] }
0x1976   :  { %6449 = vmatprep.subr.mxu1 %v6610_v0 }
0x1977   :  { %6450 = vmatpush3.msra.mxu1 %v4445_v26  ;;  %v4497_v26 = vld [vmem:[%s9408_s1 + $0x9a8] sm:$0xff] }
0x1978   :  { %6451 = vmatprep.subr.mxu1 %v6610_v0 }
0x1979   :  { %6452 = vmatpush3.msra.mxu1 %v4444_v27  ;;  %v4496_v27 = vld [vmem:[%s9408_s1 + $0x9a0] sm:$0xff] }
0x197a   :  { %6453 = vmatprep.subr.mxu1 %v6610_v0 }
0x197b   :  { %6454 = vmatpush3.msra.mxu1 %v4443_v28  ;;  %v4495_v28 = vld [vmem:[%s9408_s1 + $0x998] sm:$0xff] }
0x197c   :  { %6455 = vmatprep.subr.mxu1 %v6610_v0 }
0x197d   :  { %6456 = vmatpush3.msra.mxu1 %v4442_v29  ;;  %v4494_v29 = vld [vmem:[%s9408_s1 + $0x990] sm:$0xff] }
0x197e   :  { %6457 = vmatprep.subr.mxu1 %v6610_v0 }
0x197f   :  { %6458 = vmatpush3.msra.mxu1 %v4441_v30  ;;  %v4473_v30 = vld [vmem:[%s9411_s2 + $0x12] ss:$0 sm:$0xff] }
0x1980   :  { %6459 = vmatprep.subr.mxu1 %v6610_v0 }
0x1981   :  { %6460 = vmatpush3.msra.mxu1 %v4440_v35  ;;  %v4493_v35 = vld [vmem:[%s9408_s1 + $0x988] sm:$0xff] }
0x1982   :  { %6461 = vmatprep.subr.mxu1 %v6610_v0 }
0x1983   :  { %6462 = vmatpush3.msra.mxu1 %v4439_v36  ;;  %v4492_v36 = vld [vmem:[%s9408_s1 + $0x980] sm:$0xff] }
0x1984   :  { %6463 = vmatprep.subr.mxu1 %v6610_v0 }
0x1985   :  { %6464 = vmatpush3.msra.mxu1 %v4438_v37  ;;  %v4525_v37 = vld [vmem:[%s9409_s3 + $0x9f8] sm:$0xff] }
0x1986   :  { %6503 = vmatprep.subr.mxu1 %v6610_v0 }
0x1a26   :  { %v3260_v32 = vpop.f32.mrf.mxu1 }
0x1a27   :  { %v3261_v33 = vadd.f32 %v4419_v31, %v3260_v32 }
0x1a28   :  { %v6397_v34 = vpop.f32.mrf.mxu1 }
0x1a29   :  { %6431 = vmatmul.mubr.f32.vlgmr.msra.gmra.mxu0 %v3261_v33 }
0x1a2a   :  { %6500 = vmatprep.mubr.msk.f32.mxu0 %vm6611_vm0, %v6610_v0  ;;  %6469 = vmatpush3.msra.mxu0 %v4471_v38  ;;  %v4524_v38 = vld [vmem:[%s9409_s3 + $0x9f0] sm:$0xff] }
0x1a2b   :  { %6470 = vmatprep.subr.mxu0 %v6610_v0 }
0x1a2c   :  { %6471 = vmatpush3.msra.mxu0 %v4470_v39  ;;  %v4523_v39 = vld [vmem:[%s9409_s3 + $0x9e8] sm:$0xff] }
0x1a2d   :  { %6472 = vmatprep.subr.mxu0 %v6610_v0 }
0x1a2e   :  { %6473 = vmatpush3.msra.mxu0 %v4469_v40  ;;  %v4522_v40 = vld [vmem:[%s9409_s3 + $0x9e0] sm:$0xff] }
0x1a2f   :  { %6474 = vmatprep.subr.mxu0 %v6610_v0 }
0x1a30   :  { %6475 = vmatpush3.msra.mxu0 %v4468_v41  ;;  %v4521_v41 = vld [vmem:[%s9409_s3 + $0x9d8] sm:$0xff] }
0x1a31   :  { %6476 = vmatprep.subr.mxu0 %v6610_v0 }
0x1a32   :  { %6477 = vmatpush3.msra.mxu0 %v4467_v42  ;;  %v4520_v42 = vld [vmem:[%s9409_s3 + $0x9d0] sm:$0xff] }
0x1a33   :  { %6478 = vmatprep.subr.mxu0 %v6610_v0 }
0x1a34   :  { %6479 = vmatpush3.msra.mxu0 %v4466_v43  ;;  %v4519_v43 = vld [vmem:[%s9409_s3 + $0x9c8] sm:$0xff] }
0x1a35   :  { %6480 = vmatprep.subr.mxu0 %v6610_v0 }
0x1a36   :  { %6481 = vmatpush3.msra.mxu0 %v4465_v44  ;;  %v4518_v44 = vld [vmem:[%s9409_s3 + $0x9c0] sm:$0xff] }
0x1a37   :  { %6482 = vmatprep.subr.mxu0 %v6610_v0 }
0x1a38   :  { %6483 = vmatpush3.msra.mxu0 %v4464_v45  ;;  %v4517_v45 = vld [vmem:[%s9409_s3 + $0x9b8] sm:$0xff] }
0x1a39   :  { %6484 = vmatprep.subr.mxu0 %v6610_v0 }
0x1a3a   :  { %6485 = vmatpush3.msra.mxu0 %v4463_v46  ;;  %v4516_v46 = vld [vmem:[%s9409_s3 + $0x9b0] sm:$0xff] }
0x1a3b   :  { %6486 = vmatprep.subr.mxu0 %v6610_v0 }
0x1a3c   :  { %6487 = vmatpush3.msra.mxu0 %v4462_v47  ;;  %v4515_v47 = vld [vmem:[%s9409_s3 + $0x9a8] sm:$0xff] }
0x1a3d   :  { %6488 = vmatprep.subr.mxu0 %v6610_v0 }
0x1a3e   :  { %6489 = vmatpush3.msra.mxu0 %v4461_v48  ;;  %v4514_v48 = vld [vmem:[%s9409_s3 + $0x9a0] sm:$0xff] }
0x1a3f   :  { %6490 = vmatprep.subr.mxu0 %v6610_v0 }
0x1a40   :  { %6491 = vmatpush3.msra.mxu0 %v4460_v49  ;;  %v4513_v49 = vld [vmem:[%s9409_s3 + $0x998] sm:$0xff] }
0x1a41   :  { %6492 = vmatprep.subr.mxu0 %v6610_v0 }
0x1a42   :  { %6493 = vmatpush3.msra.mxu0 %v4459_v50  ;;  %v4491_v50 = vld [vmem:[%s9412_s4 + $0x12] ss:$0 sm:$0xff] }
0x1a43   :  { %6494 = vmatprep.subr.mxu0 %v6610_v0 }
0x1a44   :  { %6495 = vmatpush3.msra.mxu0 %v4458_v51 }
0x1a45   :  { %6496 = vmatprep.subr.mxu0 %v6610_v0 }
0x1a46   :  { %6497 = vmatpush3.msra.mxu0 %v4457_v57  ;;  %v4509_v57 = vld [vmem:[%s9411_s2 + $0x13] ss:$0 sm:$0xff] }
0x1a47   :  { %6498 = vmatprep.subr.mxu0 %v6610_v0 }
0x1a48   :  { %6499 = vmatpush3.msra.mxu0 %v4456_v58 }
0x1a49   :  { %6538 = vmatprep.subr.mxu0 %v6610_v0 }
0x1ae9   :  { %v3355_v53 = vpop.f32.mrf.mxu0 }
0x1aea   :  { %v3356_v54 = vadd.f32 %v4437_v52, %v3355_v53 }
0x1aeb   :  { %v6432_v55 = vpop.f32.mrf.mxu0 }
0x1aec   :  { %v3359_v56 = vmax.f32 %v3356_v54, 0.0  ;;  %v4512_v54 = vld [vmem:[%s9409_s3 + $0x990] sm:$0xff]  ;;  %v4511_v55 = vld [vmem:[%s9409_s3 + $0x988] sm:$0xff] }
0x1aee   :  { %6466 = vmatmul.mubr.f32.vlgmr.msra.gmra.mxu1 %v3359_v56  ;;  %v4510_v56 = vld [vmem:[%s9409_s3 + $0x980] sm:$0xff] }
0x1aef   :  { %6535 = vmatprep.mubr.msk.f32.mxu1 %vm6611_vm0, %v6610_v0  ;;  %6504 = vmatpush3.msra.mxu1 %v4489_v59 }
0x1af0   :  { %6505 = vmatprep.subr.mxu1 %v6610_v0 }
0x1af1   :  { %6506 = vmatpush3.msra.mxu1 %v4488_v60 }
0x1af2   :  { %6507 = vmatprep.subr.mxu1 %v6610_v0 }
0x1af3   :  { %6508 = vmatpush3.msra.mxu1 %v4487_v61 }
0x1af4   :  { %6509 = vmatprep.subr.mxu1 %v6610_v0 }
0x1af5   :  { %6510 = vmatpush3.msra.mxu1 %v4486_v62  ;;  %v4527_v62 = vld [vmem:[%s9412_s4 + $0x13] ss:$0 sm:$0xff] }
0x1af6   :  { %6511 = vmatprep.subr.mxu1 %v6610_v0 }
0x1af7   :  { %6512 = vmatpush3.msra.mxu1 %v4485_v63 }
0x1af8   :  { %6513 = vmatprep.subr.mxu1 %v6610_v0 }
0x1af9   :  { %6514 = vmatpush3.msra.mxu1 %v4484_v1 }
0x1afa   :  { %6515 = vmatprep.subr.mxu1 %v6610_v0 }
0x1afb   :  { %6516 = vmatpush3.msra.mxu1 %v4483_v2 }
0x1afc   :  { %6517 = vmatprep.subr.mxu1 %v6610_v0 }
0x1afd   :  { %6518 = vmatpush3.msra.mxu1 %v4482_v3 }
0x1afe   :  { %6519 = vmatprep.subr.mxu1 %v6610_v0 }
0x1aff   :  { %6520 = vmatpush3.msra.mxu1 %v4481_v4 }
0x1b00   :  { %6521 = vmatprep.subr.mxu1 %v6610_v0 }
0x1b01   :  { %6522 = vmatpush3.msra.mxu1 %v4480_v5 }
0x1b02   :  { %6523 = vmatprep.subr.mxu1 %v6610_v0 }
0x1b03   :  { %6524 = vmatpush3.msra.mxu1 %v4479_v6 }
0x1b04   :  { %6525 = vmatprep.subr.mxu1 %v6610_v0 }
0x1b05   :  { %6526 = vmatpush3.msra.mxu1 %v4478_v7 }
0x1b06   :  { %6527 = vmatprep.subr.mxu1 %v6610_v0 }
0x1b07   :  { %6528 = vmatpush3.msra.mxu1 %v4477_v8 }
0x1b08   :  { %6529 = vmatprep.subr.mxu1 %v6610_v0 }
0x1b09   :  { %6530 = vmatpush3.msra.mxu1 %v4476_v13 }
0x1b0a   :  { %6531 = vmatprep.subr.mxu1 %v6610_v0 }
0x1b0b   :  { %6532 = vmatpush3.msra.mxu1 %v4475_v14 }
0x1b0c   :  { %6533 = vmatprep.subr.mxu1 %v6610_v0 }
0x1b0d   :  { %6534 = vmatpush3.msra.mxu1 %v4474_v15 }
0x1b0e   :  { %6573 = vmatprep.subr.mxu1 %v6610_v0 }
0x1bae   :  { %v3451_v10 = vpop.f32.mrf.mxu1 }
0x1baf   :  { %v3452_v11 = vadd.f32 %v4455_v9, %v3451_v10 }
0x1bb0   :  { %v6467_v12 = vpop.f32.mrf.mxu1 }
0x1bb1   :  { %6501 = vmatmul.mubr.f32.vlgmr.msra.gmra.mxu0 %v3452_v11 }
0x1bb2   :  { %6570 = vmatprep.mubr.msk.f32.mxu0 %vm6611_vm0, %v6610_v0  ;;  %6539 = vmatpush3.msra.mxu0 %v4507_v16 }
0x1bb3   :  { %6540 = vmatprep.subr.mxu0 %v6610_v0 }
0x1bb4   :  { %6541 = vmatpush3.msra.mxu0 %v4506_v17 }
0x1bb5   :  { %6542 = vmatprep.subr.mxu0 %v6610_v0 }
0x1bb6   :  { %6543 = vmatpush3.msra.mxu0 %v4505_v18 }
0x1bb7   :  { %6544 = vmatprep.subr.mxu0 %v6610_v0 }
0x1bb8   :  { %6545 = vmatpush3.msra.mxu0 %v4504_v19 }
0x1bb9   :  { %6546 = vmatprep.subr.mxu0 %v6610_v0 }
0x1bba   :  { %6547 = vmatpush3.msra.mxu0 %v4503_v20 }
0x1bbb   :  { %6548 = vmatprep.subr.mxu0 %v6610_v0 }
0x1bbc   :  { %6549 = vmatpush3.msra.mxu0 %v4502_v21 }
0x1bbd   :  { %6550 = vmatprep.subr.mxu0 %v6610_v0 }
0x1bbe   :  { %6551 = vmatpush3.msra.mxu0 %v4501_v22 }
0x1bbf   :  { %6552 = vmatprep.subr.mxu0 %v6610_v0 }
0x1bc0   :  { %6553 = vmatpush3.msra.mxu0 %v4500_v23 }
0x1bc1   :  { %6554 = vmatprep.subr.mxu0 %v6610_v0 }
0x1bc2   :  { %6555 = vmatpush3.msra.mxu0 %v4499_v24 }
0x1bc3   :  { %6556 = vmatprep.subr.mxu0 %v6610_v0 }
0x1bc4   :  { %6557 = vmatpush3.msra.mxu0 %v4498_v25 }
0x1bc5   :  { %6558 = vmatprep.subr.mxu0 %v6610_v0 }
0x1bc6   :  { %6559 = vmatpush3.msra.mxu0 %v4497_v26 }
0x1bc7   :  { %6560 = vmatprep.subr.mxu0 %v6610_v0 }
0x1bc8   :  { %6561 = vmatpush3.msra.mxu0 %v4496_v27 }
0x1bc9   :  { %6562 = vmatprep.subr.mxu0 %v6610_v0 }
0x1bca   :  { %6563 = vmatpush3.msra.mxu0 %v4495_v28 }
0x1bcb   :  { %6564 = vmatprep.subr.mxu0 %v6610_v0 }
0x1bcc   :  { %6565 = vmatpush3.msra.mxu0 %v4494_v29 }
0x1bcd   :  { %6566 = vmatprep.subr.mxu0 %v6610_v0 }
0x1bce   :  { %6567 = vmatpush3.msra.mxu0 %v4493_v35 }
0x1bcf   :  { %6568 = vmatprep.subr.mxu0 %v6610_v0 }
0x1bd0   :  { %6569 = vmatpush3.msra.mxu0 %v4492_v36 }
0x1c71   :  { %v3546_v31 = vpop.f32.mrf.mxu0 }
0x1c72   :  { %v3547_v32 = vadd.f32 %v4473_v30, %v3546_v31 }
0x1c73   :  { %v6502_v33 = vpop.f32.mrf.mxu0 }
0x1c74   :  { %v3550_v34 = vmax.f32 %v3547_v32, 0.0 }
0x1c76   :  { %6536 = vmatmul.mubr.f32.vlgmr.msra.gmra.mxu1 %v3550_v34 }
0x1c77   :  { %6605 = vmatprep.mubr.msk.f32.mxu1 %vm6611_vm0, %v6610_v0  ;;  %6574 = vmatpush3.msra.mxu1 %v4525_v37 }
0x1c78   :  { %6575 = vmatprep.subr.mxu1 %v6610_v0 }
0x1c79   :  { %6576 = vmatpush3.msra.mxu1 %v4524_v38 }
0x1c7a   :  { %6577 = vmatprep.subr.mxu1 %v6610_v0 }
0x1c7b   :  { %6578 = vmatpush3.msra.mxu1 %v4523_v39 }
0x1c7c   :  { %6579 = vmatprep.subr.mxu1 %v6610_v0 }
0x1c7d   :  { %6580 = vmatpush3.msra.mxu1 %v4522_v40 }
0x1c7e   :  { %6581 = vmatprep.subr.mxu1 %v6610_v0 }
0x1c7f   :  { %6582 = vmatpush3.msra.mxu1 %v4521_v41 }
0x1c80   :  { %6583 = vmatprep.subr.mxu1 %v6610_v0 }
0x1c81   :  { %6584 = vmatpush3.msra.mxu1 %v4520_v42 }
0x1c82   :  { %6585 = vmatprep.subr.mxu1 %v6610_v0 }
0x1c83   :  { %6586 = vmatpush3.msra.mxu1 %v4519_v43 }
0x1c84   :  { %6587 = vmatprep.subr.mxu1 %v6610_v0 }
0x1c85   :  { %6588 = vmatpush3.msra.mxu1 %v4518_v44 }
0x1c86   :  { %6589 = vmatprep.subr.mxu1 %v6610_v0 }
0x1c87   :  { %6590 = vmatpush3.msra.mxu1 %v4517_v45 }
0x1c88   :  { %6591 = vmatprep.subr.mxu1 %v6610_v0 }
0x1c89   :  { %6592 = vmatpush3.msra.mxu1 %v4516_v46 }
0x1c8a   :  { %6593 = vmatprep.subr.mxu1 %v6610_v0 }
0x1c8b   :  { %6594 = vmatpush3.msra.mxu1 %v4515_v47 }
0x1c8c   :  { %6595 = vmatprep.subr.mxu1 %v6610_v0 }
0x1c8d   :  { %6596 = vmatpush3.msra.mxu1 %v4514_v48 }
0x1c8e   :  { %6597 = vmatprep.subr.mxu1 %v6610_v0 }
0x1c8f   :  { %6598 = vmatpush3.msra.mxu1 %v4513_v49 }
0x1c90   :  { %6599 = vmatprep.subr.mxu1 %v6610_v0 }
0x1c91   :  { %6600 = vmatpush3.msra.mxu1 %v4512_v54 }
0x1c92   :  { %6601 = vmatprep.subr.mxu1 %v6610_v0 }
0x1c93   :  { %6602 = vmatpush3.msra.mxu1 %v4511_v55 }
0x1c94   :  { %6603 = vmatprep.subr.mxu1 %v6610_v0 }
0x1c95   :  { %6604 = vmatpush3.msra.mxu1 %v4510_v56 }
0x1d36   :  { %v3642_v51 = vpop.f32.mrf.mxu1 }
0x1d37   :  { %v3643_v52 = vadd.f32 %v4491_v50, %v3642_v51 }
0x1d38   :  { %v6537_v53 = vpop.f32.mrf.mxu1 }
0x1d39   :  { %6571 = vmatmul.mubr.f32.vlgmr.msra.gmra.mxu0 %v3643_v52 }
0x1df9   :  { %v3737_v58 = vpop.f32.mrf.mxu0 }
0x1dfa   :  { %v3738_v59 = vadd.f32 %v4509_v57, %v3737_v58 }
0x1dfb   :  { %v6572_v60 = vpop.f32.mrf.mxu0 }
0x1dfc   :  { %v3741_v61 = vmax.f32 %v3738_v59, 0.0 }
0x1dfe   :  { %6606 = vmatmul.mubr.f32.vlgmr.msra.gmra.mxu1 %v3741_v61 }
0x1ebe   :  { %v3833_v63 = vpop.f32.mrf.mxu1 }
0x1ebf   :  { %v3834_v0 = vadd.f32 %v4527_v62, %v3833_v63 }
0x1ec0   :  { %v6607_v1 = vpop.f32.mrf.mxu1 }
0x1ec1   :  { %3837 = vst [vmem:[%s9413_s5] sm:$0xff] %v3834_v0 }

</bundles_post_ra>
